<compile_context>
chip_gen: v7x
topology: tpu7x:2x2x1
jax: 0.10.0
libtpu: 0.0.40
codegen_flags: <defaults>
</compile_context>

<pallas_src>
import functools

import jax
import jax.numpy as jnp
from jax import lax
from jax.experimental import pallas as pl
from jax.experimental.pallas import tpu as pltpu


def _round_up(x, m):
    return (x + m - 1) // m * m


def _residual_block2_kernel(has_residual, H, W, xp_ref, mask_ref, w1_ref,
                            b1_ref, w2_ref, b2_ref, *rest):
    # xp_ref  : (1, (H+2)*(W+2), Cin_p) bf16   spatially zero-padded input
    # mask_ref: ((H+2)*(W+2), 1) f32           1.0 interior / 0.0 halo rows
    # w1_ref  : (Cin_p, Cout_p) bf16           b1_ref: (1, Cout_p) f32
    # w2_ref  : (9, Cout_p, Cout_p) bf16       b2_ref: (1, Cout_p) f32
    # w3_ref  : (Cin_p, Cout_p) bf16           b3_ref: (1, Cout_p) f32  (opt)
    # o_ref   : (1, H*(W+2), Cout_p) f32
    # tpad_ref: (n_rows, Cout_p) bf16          flat padded conv1 output
    if has_residual:
        w3_ref, b3_ref, o_ref, tpad_ref = rest
    else:
        o_ref, tpad_ref = rest

    Hp, Wp = H + 2, W + 2
    M1 = Hp * Wp          # rows of the padded grid
    M2 = H * Wp           # rows computed for conv2 (wrap cols cropped later)
    n_rows, Cp = tpad_ref.shape

    # conv1 (1x1) + bias + ReLU on the padded grid; the mask re-zeroes the
    # 1-px halo that bias+ReLU would otherwise make nonzero.
    t = jnp.dot(xp_ref[0], w1_ref[...], preferred_element_type=jnp.float32)
    t = jnp.maximum(t + b1_ref[...], 0.0) * mask_ref[...]
    tpad_ref[0:M1, :] = t.astype(tpad_ref.dtype)
    if n_rows > M1:
        # alignment tail; only ever read by discarded wrap-column outputs
        tpad_ref[M1:n_rows, :] = jnp.zeros((n_rows - M1, Cp), tpad_ref.dtype)

    # conv2 (3x3, padding=1): 9 accumulating MXU matmuls over contiguous
    # row-offset views of the flat padded buffer (no im2col slab).
    acc = jnp.dot(tpad_ref[0:M2, :], w2_ref[0],
                  preferred_element_type=jnp.float32)
    for k in range(1, 9):
        off = (k // 3) * Wp + (k % 3)
        acc = acc + jnp.dot(tpad_ref[off:off + M2, :], w2_ref[k],
                            preferred_element_type=jnp.float32)
    acc = acc + b2_ref[...]

    # residual path: rows [Wp+1, Wp+1+M2) of the padded input are exactly the
    # original pixels x[y, x] in the same (y*Wp + x) ordering as `acc`.
    res_in = xp_ref[0, Wp + 1:Wp + 1 + M2, :]
    if has_residual:
        res = jnp.dot(res_in, w3_ref[...], preferred_element_type=jnp.float32)
        res = res + b3_ref[...]
    else:
        # TODO(synk): identity skip carries the bf16-rounded x (matmul-operand
        # cast); pass an extra f32 copy if exact f32 skip-add parity matters.
        res = res_in.astype(jnp.float32)

    o_ref[0] = jnp.maximum(acc + res, 0.0).astype(o_ref.dtype)


def _vmem_limit_bytes():
    cap = 64 * 1024 * 1024            # conservative fallback (v7x physical)
    try:
        info = pltpu.get_tpu_info()
        cap = int(getattr(info, "vmem_capacity_bytes", cap))
    except Exception:
        pass
    # ~100 MiB on 128 MiB parts (v5e/v6e); leave headroom below physical
    # on 64 MiB parts (v7x).
    return int(min(cap - 8 * 1024 * 1024, 100 * 1024 * 1024))


@jax.jit
def residual_block2(x_nchw, w1, b1, w2, b2, w3=None, b3=None):
    """x_nchw: (N, Cin, H, W) f32. Conv weights in PyTorch OIHW layout.

    w3/b3 = None means inchannels == outchannels (identity residual).
    """
    N, Cin, H, W = x_nchw.shape
    Cout = w1.shape[0]
    has_res = w3 is not None
    Hp, Wp = H + 2, W + 2
    Cin_p = _round_up(Cin, 128)
    Cout_p = _round_up(Cout, 128)
    M1, M2 = Hp * Wp, H * Wp
    n_rows = _round_up(M1 + 2, 8)     # conv2 taps read up to row M1+2

    # NHWC + 1px spatial zero pad + channel zero pad -> flat (N, M1, Cin_p) bf16.
    x_nhwc = jnp.transpose(x_nchw, (0, 2, 3, 1))
    xp = jnp.pad(x_nhwc, ((0, 0), (1, 1), (1, 1), (0, Cin_p - Cin)))
    xp = xp.reshape(N, M1, Cin_p).astype(jnp.bfloat16)

    # Interior mask over the padded grid (1.0 inside, 0.0 on the halo).
    iy = jnp.arange(Hp)
    ix = jnp.arange(Wp)
    m2d = ((iy >= 1) & (iy <= H))[:, None] & ((ix >= 1) & (ix <= W))[None, :]
    mask = m2d.reshape(M1, 1).astype(jnp.float32)

    # Weights: channel-padded, matmul-ready layouts, bf16.
    w1_k = jnp.zeros((Cin_p, Cout_p), jnp.float32).at[:Cin, :Cout].set(
        jnp.transpose(w1[:, :, 0, 0], (1, 0))).astype(jnp.bfloat16)
    b1_k = jnp.zeros((1, Cout_p), jnp.float32).at[:, :Cout].set(
        b1.reshape(1, Cout))
    w2_t = jnp.transpose(w2, (2, 3, 1, 0)).reshape(9, Cout, Cout)  # (tap, I, O)
    w2_k = jnp.zeros((9, Cout_p, Cout_p), jnp.float32).at[:, :Cout, :Cout].set(
        w2_t).astype(jnp.bfloat16)
    b2_k = jnp.zeros((1, Cout_p), jnp.float32).at[:, :Cout].set(
        b2.reshape(1, Cout))

    in_specs = [
        pl.BlockSpec((1, M1, Cin_p), lambda n: (n, 0, 0)),
        pl.BlockSpec((M1, 1), lambda n: (0, 0)),
        pl.BlockSpec((Cin_p, Cout_p), lambda n: (0, 0)),
        pl.BlockSpec((1, Cout_p), lambda n: (0, 0)),
        pl.BlockSpec((9, Cout_p, Cout_p), lambda n: (0, 0, 0)),
        pl.BlockSpec((1, Cout_p), lambda n: (0, 0)),
    ]
    args = [xp, mask, w1_k, b1_k, w2_k, b2_k]
    if has_res:
        w3_k = jnp.zeros((Cin_p, Cout_p), jnp.float32).at[:Cin, :Cout].set(
            jnp.transpose(w3[:, :, 0, 0], (1, 0))).astype(jnp.bfloat16)
        b3_k = jnp.zeros((1, Cout_p), jnp.float32).at[:, :Cout].set(
            b3.reshape(1, Cout))
        in_specs += [pl.BlockSpec((Cin_p, Cout_p), lambda n: (0, 0)),
                     pl.BlockSpec((1, Cout_p), lambda n: (0, 0))]
        args += [w3_k, b3_k]

    flops = 2 * N * (M1 * Cin_p * Cout_p + 9 * M2 * Cout_p * Cout_p
                     + (M2 * Cin_p * Cout_p if has_res else 0))
    bytes_accessed = (xp.size * 2 + mask.size * 4
                      + (w1_k.size + w2_k.size) * 2
                      + (b1_k.size + b2_k.size) * 4
                      + ((w3_k.size * 2 + b3_k.size * 4) if has_res else 0)
                      + N * M2 * Cout_p * 4)

    out_flat = pl.pallas_call(
        functools.partial(_residual_block2_kernel, has_res, H, W),
        out_shape=jax.ShapeDtypeStruct((N, M2, Cout_p), jnp.float32),
        grid_spec=pltpu.PrefetchScalarGridSpec(
            num_scalar_prefetch=0,
            grid=(N,),
            in_specs=in_specs,
            out_specs=pl.BlockSpec((1, M2, Cout_p), lambda n: (n, 0, 0)),
            scratch_shapes=[
                pltpu.VMEM((n_rows, Cout_p), jnp.bfloat16),  # flat padded conv1 out
            ]),
        compiler_params=pltpu.CompilerParams(
            dimension_semantics=("parallel",),
            vmem_limit_bytes=_vmem_limit_bytes()),
        cost_estimate=pl.CostEstimate(flops=flops, transcendentals=0,
                                      bytes_accessed=bytes_accessed),
    )(*args)

    # Drop the wrap columns (W, W+1) of each Wp-wide row and the padded
    # channels, then back to NCHW.
    out = out_flat.reshape(N, H, Wp, Cout_p)[:, :, :W, :Cout]
    return jnp.transpose(out, (0, 3, 1, 2))


# ---------------- pure-JAX reference (for correctness check) ----------------
def _conv2d_ref(x, w, b, padding):
    out = lax.conv_general_dilated(
        x, w, window_strides=(1, 1),
        padding=[(padding, padding), (padding, padding)],
        dimension_numbers=("NCHW", "OIHW", "NCHW"))
    return out + b[None, :, None, None]


def ref_forward(x, w1, b1, w2, b2, w3, b3):
    out = jnp.maximum(_conv2d_ref(x, w1, b1, 0), 0.0)
    out = _conv2d_ref(out, w2, b2, 1)
    res = _conv2d_ref(x, w3, b3, 0) if w3 is not None else x
    return jnp.maximum(out + res, 0.0)


if __name__ == "__main__":
    key = jax.random.PRNGKey(0)
    k = jax.random.split(key, 8)

    # Case 1: inchannels != outchannels -> residual conv1x1 branch.
    N, Cin, Cout, H, W = 2, 4, 8, 16, 16
    x = jax.random.normal(k[0], (N, Cin, H, W), jnp.float32)
    w1 = jax.random.normal(k[1], (Cout, Cin, 1, 1), jnp.float32) * 0.2
    b1 = jax.random.normal(k[2], (Cout,), jnp.float32) * 0.1
    w2 = jax.random.normal(k[3], (Cout, Cout, 3, 3), jnp.float32) * 0.1
    b2 = jax.random.normal(k[4], (Cout,), jnp.float32) * 0.1
    w3 = jax.random.normal(k[5], (Cout, Cin, 1, 1), jnp.float32) * 0.2
    b3 = jax.random.normal(k[6], (Cout,), jnp.float32) * 0.1

    out = jax.block_until_ready(residual_block2(x, w1, b1, w2, b2, w3, b3))
    ref = ref_forward(x, w1, b1, w2, b2, w3, b3)
    assert out.shape == (N, Cout, H, W)
    # bf16 matmul operands (f32 accumulation) -> relaxed tolerance vs f32 ref.
    assert jnp.allclose(out, ref, atol=5e-2, rtol=5e-2), "mismatch (conv1x1 residual)"

    # Case 2: inchannels == outchannels -> identity residual (no w3 matmul).
    x2 = jax.random.normal(k[7], (N, Cout, H, W), jnp.float32)
    w1b = jax.random.normal(k[1], (Cout, Cout, 1, 1), jnp.float32) * 0.2
    out2 = jax.block_until_ready(residual_block2(x2, w1b, b1, w2, b2, None, None))
    ref2 = ref_forward(x2, w1b, b1, w2, b2, None, None)
    assert out2.shape == (N, Cout, H, W)
    assert jnp.allclose(out2, ref2, atol=5e-2, rtol=5e-2), "mismatch (identity residual)"

    print("KERNEL_OK")
</pallas_src>

<mosaic_0001>
module attributes {stable_mosaic.version = 11 : i64} {
  func.func @_residual_block2_kernel(%arg0: i32, %arg1: memref<1x324x128xbf16, #tpu.memory_space<vmem>>, %arg2: memref<324x1xf32, #tpu.memory_space<vmem>>, %arg3: memref<128x128xbf16, #tpu.memory_space<vmem>>, %arg4: memref<1x128xf32, #tpu.memory_space<vmem>>, %arg5: memref<9x128x128xbf16, #tpu.memory_space<vmem>>, %arg6: memref<1x128xf32, #tpu.memory_space<vmem>>, %arg7: memref<128x128xbf16, #tpu.memory_space<vmem>>, %arg8: memref<1x128xf32, #tpu.memory_space<vmem>>, %arg9: memref<1x288x128xf32, #tpu.memory_space<vmem>>, %arg10: memref<328x128xbf16, #tpu.memory_space<vmem>>) attributes {dimension_semantics = [#tpu.dimension_semantics<parallel>], iteration_bounds = array<i64: 2>, scalar_prefetch = 0 : i64, scratch_operands = 1 : i64, tpu.core_type = #tpu.core_type<tc>, window_params = [{transform_indices = @transform_0, window_bounds = array<i64: 1, 324, 128>}, {pipeline_mode = #tpu.pipeline_mode<synchronous>, transform_indices = @transform_1, window_bounds = array<i64: 324, 1>}, {pipeline_mode = #tpu.pipeline_mode<synchronous>, transform_indices = @transform_2, window_bounds = array<i64: 128, 128>}, {pipeline_mode = #tpu.pipeline_mode<synchronous>, transform_indices = @transform_3, window_bounds = array<i64: 1, 128>}, {pipeline_mode = #tpu.pipeline_mode<synchronous>, transform_indices = @transform_4, window_bounds = array<i64: 9, 128, 128>}, {pipeline_mode = #tpu.pipeline_mode<synchronous>, transform_indices = @transform_5, window_bounds = array<i64: 1, 128>}, {pipeline_mode = #tpu.pipeline_mode<synchronous>, transform_indices = @transform_6, window_bounds = array<i64: 128, 128>}, {pipeline_mode = #tpu.pipeline_mode<synchronous>, transform_indices = @transform_7, window_bounds = array<i64: 1, 128>}, {transform_indices = @transform_8, window_bounds = array<i64: 1, 288, 128>}]} {
    %c0 = arith.constant 0 : index
    %c0_0 = arith.constant 0 : index
    %c0_1 = arith.constant 0 : index
    %0 = vector.load %arg1[%c0, %c0_0, %c0_1] : memref<1x324x128xbf16, #tpu.memory_space<vmem>>, vector<1x324x128xbf16>
    %1 = vector.shape_cast %0 : vector<1x324x128xbf16> to vector<324x128xbf16>
    %c0_2 = arith.constant 0 : index
    %c0_3 = arith.constant 0 : index
    %2 = vector.load %arg3[%c0_2, %c0_3] : memref<128x128xbf16, #tpu.memory_space<vmem>>, vector<128x128xbf16>
    %cst = arith.constant dense<0.000000e+00> : vector<324x128xf32>
    %3 = tpu.matmul %1, %2, %cst {dimension_numbers = #tpu.dot_dimension_numbers<[1], [0], [0], [1], [0, 0, 1, 1], [], []>} : vector<324x128xbf16>, vector<128x128xbf16>, vector<324x128xf32> -> vector<324x128xf32>
    %c0_4 = arith.constant 0 : index
    %c0_5 = arith.constant 0 : index
    %4 = vector.load %arg4[%c0_4, %c0_5] : memref<1x128xf32, #tpu.memory_space<vmem>>, vector<1x128xf32>
    %5 = vector.broadcast %4 : vector<1x128xf32> to vector<324x128xf32>
    %6 = arith.addf %3, %5 : vector<324x128xf32>
    %cst_6 = arith.constant 0.000000e+00 : f32
    %7 = vector.broadcast %cst_6 : f32 to vector<324x128xf32>
    %8 = arith.maximumf %6, %7 : vector<324x128xf32>
    %c0_7 = arith.constant 0 : index
    %c0_8 = arith.constant 0 : index
    %9 = vector.load %arg2[%c0_7, %c0_8] : memref<324x1xf32, #tpu.memory_space<vmem>>, vector<324x1xf32>
    %10 = vector.broadcast %9 : vector<324x1xf32> to vector<324x128xf32>
    %11 = arith.mulf %8, %10 : vector<324x128xf32>
    %12 = arith.truncf %11 : vector<324x128xf32> to vector<324x128xbf16>
    %c0_9 = arith.constant 0 : index
    %c0_10 = arith.constant 0 : index
    %13 = vector.load %arg10[%c0_9, %c0_10] : memref<328x128xbf16, #tpu.memory_space<vmem>>, vector<324x128xbf16>
    tpu.vector_store %arg10[%c0_9, %c0_10], %12 {strides = array<i32>} : memref<328x128xbf16, #tpu.memory_space<vmem>>, vector<324x128xbf16>,
    %cst_11 = arith.constant 0.000000e+00 : bf16
    %14 = vector.broadcast %cst_11 : bf16 to vector<4x128xbf16>
    %c324 = arith.constant 324 : index
    %c0_12 = arith.constant 0 : index
    %15 = vector.load %arg10[%c324, %c0_12] : memref<328x128xbf16, #tpu.memory_space<vmem>>, vector<4x128xbf16>
    tpu.vector_store %arg10[%c324, %c0_12], %14 {strides = array<i32>} : memref<328x128xbf16, #tpu.memory_space<vmem>>, vector<4x128xbf16>,
    %c0_13 = arith.constant 0 : index
    %c0_14 = arith.constant 0 : index
    %16 = vector.load %arg10[%c0_13, %c0_14] : memref<328x128xbf16, #tpu.memory_space<vmem>>, vector<288x128xbf16>
    %c0_15 = arith.constant 0 : index
    %c0_16 = arith.constant 0 : index
    %c0_17 = arith.constant 0 : index
    %17 = vector.load %arg5[%c0_15, %c0_16, %c0_17] : memref<9x128x128xbf16, #tpu.memory_space<vmem>>, vector<1x128x128xbf16>
    %18 = vector.shape_cast %17 : vector<1x128x128xbf16> to vector<128x128xbf16>
    %cst_18 = arith.constant dense<0.000000e+00> : vector<288x128xf32>
    %19 = tpu.matmul %16, %18, %cst_18 {dimension_numbers = #tpu.dot_dimension_numbers<[1], [0], [0], [1], [0, 0, 1, 1], [], []>} : vector<288x128xbf16>, vector<128x128xbf16>, vector<288x128xf32> -> vector<288x128xf32>
    %c1 = arith.constant 1 : index
    %c0_19 = arith.constant 0 : index
    %20 = vector.load %arg10[%c1, %c0_19] : memref<328x128xbf16, #tpu.memory_space<vmem>>, vector<288x128xbf16>
    %c1_20 = arith.constant 1 : index
    %c0_21 = arith.constant 0 : index
    %c0_22 = arith.constant 0 : index
    %21 = vector.load %arg5[%c1_20, %c0_21, %c0_22] : memref<9x128x128xbf16, #tpu.memory_space<vmem>>, vector<1x128x128xbf16>
    %22 = vector.shape_cast %21 : vector<1x128x128xbf16> to vector<128x128xbf16>
    %cst_23 = arith.constant dense<0.000000e+00> : vector<288x128xf32>
    %23 = tpu.matmul %20, %22, %cst_23 {dimension_numbers = #tpu.dot_dimension_numbers<[1], [0], [0], [1], [0, 0, 1, 1], [], []>} : vector<288x128xbf16>, vector<128x128xbf16>, vector<288x128xf32> -> vector<288x128xf32>
    %24 = arith.addf %19, %23 : vector<288x128xf32>
    %c2 = arith.constant 2 : index
    %c0_24 = arith.constant 0 : index
    %25 = vector.load %arg10[%c2, %c0_24] : memref<328x128xbf16, #tpu.memory_space<vmem>>, vector<288x128xbf16>
    %c2_25 = arith.constant 2 : index
    %c0_26 = arith.constant 0 : index
    %c0_27 = arith.constant 0 : index
    %26 = vector.load %arg5[%c2_25, %c0_26, %c0_27] : memref<9x128x128xbf16, #tpu.memory_space<vmem>>, vector<1x128x128xbf16>
    %27 = vector.shape_cast %26 : vector<1x128x128xbf16> to vector<128x128xbf16>
    %cst_28 = arith.constant dense<0.000000e+00> : vector<288x128xf32>
    %28 = tpu.matmul %25, %27, %cst_28 {dimension_numbers = #tpu.dot_dimension_numbers<[1], [0], [0], [1], [0, 0, 1, 1], [], []>} : vector<288x128xbf16>, vector<128x128xbf16>, vector<288x128xf32> -> vector<288x128xf32>
    %29 = arith.addf %24, %28 : vector<288x128xf32>
    %c18 = arith.constant 18 : index
    %c0_29 = arith.constant 0 : index
    %30 = vector.load %arg10[%c18, %c0_29] : memref<328x128xbf16, #tpu.memory_space<vmem>>, vector<288x128xbf16>
    %c3 = arith.constant 3 : index
    %c0_30 = arith.constant 0 : index
    %c0_31 = arith.constant 0 : index
    %31 = vector.load %arg5[%c3, %c0_30, %c0_31] : memref<9x128x128xbf16, #tpu.memory_space<vmem>>, vector<1x128x128xbf16>
    %32 = vector.shape_cast %31 : vector<1x128x128xbf16> to vector<128x128xbf16>
    %cst_32 = arith.constant dense<0.000000e+00> : vector<288x128xf32>
    %33 = tpu.matmul %30, %32, %cst_32 {dimension_numbers = #tpu.dot_dimension_numbers<[1], [0], [0], [1], [0, 0, 1, 1], [], []>} : vector<288x128xbf16>, vector<128x128xbf16>, vector<288x128xf32> -> vector<288x128xf32>
    %34 = arith.addf %29, %33 : vector<288x128xf32>
    %c19 = arith.constant 19 : index
    %c0_33 = arith.constant 0 : index
    %35 = vector.load %arg10[%c19, %c0_33] : memref<328x128xbf16, #tpu.memory_space<vmem>>, vector<288x128xbf16>
    %c4 = arith.constant 4 : index
    %c0_34 = arith.constant 0 : index
    %c0_35 = arith.constant 0 : index
    %36 = vector.load %arg5[%c4, %c0_34, %c0_35] : memref<9x128x128xbf16, #tpu.memory_space<vmem>>, vector<1x128x128xbf16>
    %37 = vector.shape_cast %36 : vector<1x128x128xbf16> to vector<128x128xbf16>
    %cst_36 = arith.constant dense<0.000000e+00> : vector<288x128xf32>
    %38 = tpu.matmul %35, %37, %cst_36 {dimension_numbers = #tpu.dot_dimension_numbers<[1], [0], [0], [1], [0, 0, 1, 1], [], []>} : vector<288x128xbf16>, vector<128x128xbf16>, vector<288x128xf32> -> vector<288x128xf32>
    %39 = arith.addf %34, %38 : vector<288x128xf32>
    %c20 = arith.constant 20 : index
    %c0_37 = arith.constant 0 : index
    %40 = vector.load %arg10[%c20, %c0_37] : memref<328x128xbf16, #tpu.memory_space<vmem>>, vector<288x128xbf16>
    %c5 = arith.constant 5 : index
    %c0_38 = arith.constant 0 : index
    %c0_39 = arith.constant 0 : index
    %41 = vector.load %arg5[%c5, %c0_38, %c0_39] : memref<9x128x128xbf16, #tpu.memory_space<vmem>>, vector<1x128x128xbf16>
    %42 = vector.shape_cast %41 : vector<1x128x128xbf16> to vector<128x128xbf16>
    %cst_40 = arith.constant dense<0.000000e+00> : vector<288x128xf32>
    %43 = tpu.matmul %40, %42, %cst_40 {dimension_numbers = #tpu.dot_dimension_numbers<[1], [0], [0], [1], [0, 0, 1, 1], [], []>} : vector<288x128xbf16>, vector<128x128xbf16>, vector<288x128xf32> -> vector<288x128xf32>
    %44 = arith.addf %39, %43 : vector<288x128xf32>
    %c36 = arith.constant 36 : index
    %c0_41 = arith.constant 0 : index
    %45 = vector.load %arg10[%c36, %c0_41] : memref<328x128xbf16, #tpu.memory_space<vmem>>, vector<288x128xbf16>
    %c6 = arith.constant 6 : index
    %c0_42 = arith.constant 0 : index
    %c0_43 = arith.constant 0 : index
    %46 = vector.load %arg5[%c6, %c0_42, %c0_43] : memref<9x128x128xbf16, #tpu.memory_space<vmem>>, vector<1x128x128xbf16>
    %47 = vector.shape_cast %46 : vector<1x128x128xbf16> to vector<128x128xbf16>
    %cst_44 = arith.constant dense<0.000000e+00> : vector<288x128xf32>
    %48 = tpu.matmul %45, %47, %cst_44 {dimension_numbers = #tpu.dot_dimension_numbers<[1], [0], [0], [1], [0, 0, 1, 1], [], []>} : vector<288x128xbf16>, vector<128x128xbf16>, vector<288x128xf32> -> vector<288x128xf32>
    %49 = arith.addf %44, %48 : vector<288x128xf32>
    %c37 = arith.constant 37 : index
    %c0_45 = arith.constant 0 : index
    %50 = vector.load %arg10[%c37, %c0_45] : memref<328x128xbf16, #tpu.memory_space<vmem>>, vector<288x128xbf16>
    %c7 = arith.constant 7 : index
    %c0_46 = arith.constant 0 : index
    %c0_47 = arith.constant 0 : index
    %51 = vector.load %arg5[%c7, %c0_46, %c0_47] : memref<9x128x128xbf16, #tpu.memory_space<vmem>>, vector<1x128x128xbf16>
    %52 = vector.shape_cast %51 : vector<1x128x128xbf16> to vector<128x128xbf16>
    %cst_48 = arith.constant dense<0.000000e+00> : vector<288x128xf32>
    %53 = tpu.matmul %50, %52, %cst_48 {dimension_numbers = #tpu.dot_dimension_numbers<[1], [0], [0], [1], [0, 0, 1, 1], [], []>} : vector<288x128xbf16>, vector<128x128xbf16>, vector<288x128xf32> -> vector<288x128xf32>
    %54 = arith.addf %49, %53 : vector<288x128xf32>
    %c38 = arith.constant 38 : index
    %c0_49 = arith.constant 0 : index
    %55 = vector.load %arg10[%c38, %c0_49] : memref<328x128xbf16, #tpu.memory_space<vmem>>, vector<288x128xbf16>
    %c8 = arith.constant 8 : index
    %c0_50 = arith.constant 0 : index
    %c0_51 = arith.constant 0 : index
    %56 = vector.load %arg5[%c8, %c0_50, %c0_51] : memref<9x128x128xbf16, #tpu.memory_space<vmem>>, vector<1x128x128xbf16>
    %57 = vector.shape_cast %56 : vector<1x128x128xbf16> to vector<128x128xbf16>
    %cst_52 = arith.constant dense<0.000000e+00> : vector<288x128xf32>
    %58 = tpu.matmul %55, %57, %cst_52 {dimension_numbers = #tpu.dot_dimension_numbers<[1], [0], [0], [1], [0, 0, 1, 1], [], []>} : vector<288x128xbf16>, vector<128x128xbf16>, vector<288x128xf32> -> vector<288x128xf32>
    %59 = arith.addf %54, %58 : vector<288x128xf32>
    %c0_53 = arith.constant 0 : index
    %c0_54 = arith.constant 0 : index
    %60 = vector.load %arg6[%c0_53, %c0_54] : memref<1x128xf32, #tpu.memory_space<vmem>>, vector<1x128xf32>
    %61 = vector.broadcast %60 : vector<1x128xf32> to vector<288x128xf32>
    %62 = arith.addf %59, %61 : vector<288x128xf32>
    %c0_55 = arith.constant 0 : index
    %c19_56 = arith.constant 19 : index
    %c0_57 = arith.constant 0 : index
    %63 = vector.load %arg1[%c0_55, %c19_56, %c0_57] : memref<1x324x128xbf16, #tpu.memory_space<vmem>>, vector<1x288x128xbf16>
    %64 = vector.shape_cast %63 : vector<1x288x128xbf16> to vector<288x128xbf16>
    %c0_58 = arith.constant 0 : index
    %c0_59 = arith.constant 0 : index
    %65 = vector.load %arg7[%c0_58, %c0_59] : memref<128x128xbf16, #tpu.memory_space<vmem>>, vector<128x128xbf16>
    %cst_60 = arith.constant dense<0.000000e+00> : vector<288x128xf32>
    %66 = tpu.matmul %64, %65, %cst_60 {dimension_numbers = #tpu.dot_dimension_numbers<[1], [0], [0], [1], [0, 0, 1, 1], [], []>} : vector<288x128xbf16>, vector<128x128xbf16>, vector<288x128xf32> -> vector<288x128xf32>
    %c0_61 = arith.constant 0 : index
    %c0_62 = arith.constant 0 : index
    %67 = vector.load %arg8[%c0_61, %c0_62] : memref<1x128xf32, #tpu.memory_space<vmem>>, vector<1x128xf32>
    %68 = vector.broadcast %67 : vector<1x128xf32> to vector<288x128xf32>
    %69 = arith.addf %66, %68 : vector<288x128xf32>
    %70 = arith.addf %62, %69 : vector<288x128xf32>
    %cst_63 = arith.constant 0.000000e+00 : f32
    %71 = vector.broadcast %cst_63 : f32 to vector<288x128xf32>
    %72 = arith.maximumf %70, %71 : vector<288x128xf32>
    %c0_64 = arith.constant 0 : index
    %c0_65 = arith.constant 0 : index
    %c0_66 = arith.constant 0 : index
    %73 = vector.load %arg9[%c0_64, %c0_65, %c0_66] : memref<1x288x128xf32, #tpu.memory_space<vmem>>, vector<1x288x128xf32>
    %74 = vector.shape_cast %73 : vector<1x288x128xf32> to vector<288x128xf32>
    %75 = vector.shape_cast %72 : vector<288x128xf32> to vector<1x288x128xf32>
    tpu.vector_store %arg9[%c0_64, %c0_65, %c0_66], %75 {strides = array<i32>} : memref<1x288x128xf32, #tpu.memory_space<vmem>>, vector<1x288x128xf32>,
    return
  }
  func.func @transform_0(%arg0: i32) -> (i32, i32, i32) {
    %c0_i32 = arith.constant 0 : i32
    %c0_i32_0 = arith.constant 0 : i32
    %c0_i32_1 = arith.constant 0 : i32
    return %arg0, %c0_i32, %c0_i32_0 : i32, i32, i32
  }
  func.func @transform_1(%arg0: i32) -> (i32, i32) {
    %c0_i32 = arith.constant 0 : i32
    %c0_i32_0 = arith.constant 0 : i32
    %c0_i32_1 = arith.constant 0 : i32
    return %c0_i32, %c0_i32_0 : i32, i32
  }
  func.func @transform_2(%arg0: i32) -> (i32, i32) {
    %c0_i32 = arith.constant 0 : i32
    %c0_i32_0 = arith.constant 0 : i32
    %c0_i32_1 = arith.constant 0 : i32
    return %c0_i32, %c0_i32_0 : i32, i32
  }
  func.func @transform_3(%arg0: i32) -> (i32, i32) {
    %c0_i32 = arith.constant 0 : i32
    %c0_i32_0 = arith.constant 0 : i32
    %c0_i32_1 = arith.constant 0 : i32
    return %c0_i32, %c0_i32_0 : i32, i32
  }
  func.func @transform_4(%arg0: i32) -> (i32, i32, i32) {
    %c0_i32 = arith.constant 0 : i32
    %c0_i32_0 = arith.constant 0 : i32
    %c0_i32_1 = arith.constant 0 : i32
    %c0_i32_2 = arith.constant 0 : i32
    return %c0_i32, %c0_i32_0, %c0_i32_1 : i32, i32, i32
  }
  func.func @transform_5(%arg0: i32) -> (i32, i32) {
    %c0_i32 = arith.constant 0 : i32
    %c0_i32_0 = arith.constant 0 : i32
    %c0_i32_1 = arith.constant 0 : i32
    return %c0_i32, %c0_i32_0 : i32, i32
  }
  func.func @transform_6(%arg0: i32) -> (i32, i32) {
    %c0_i32 = arith.constant 0 : i32
    %c0_i32_0 = arith.constant 0 : i32
    %c0_i32_1 = arith.constant 0 : i32
    return %c0_i32, %c0_i32_0 : i32, i32
  }
  func.func @transform_7(%arg0: i32) -> (i32, i32) {
    %c0_i32 = arith.constant 0 : i32
    %c0_i32_0 = arith.constant 0 : i32
    %c0_i32_1 = arith.constant 0 : i32
    return %c0_i32, %c0_i32_0 : i32, i32
  }
  func.func @transform_8(%arg0: i32) -> (i32, i32, i32) {
    %c0_i32 = arith.constant 0 : i32
    %c0_i32_0 = arith.constant 0 : i32
    %c0_i32_1 = arith.constant 0 : i32
    return %arg0, %c0_i32, %c0_i32_0 : i32, i32, i32
  }
}

</mosaic_0001>

<bundles_post_ra>
// kernel: residual_block2.1
= control target key start
LH: loop header
LB: loop body
LE: loop exit
PB: predicated region body
PF: predicated region fallthrough
CT: control target
= control target key end

     0   :  { %s7856_s27 = smov 0   ;;  %s9470_s0 = inlined_call_operand.vmem [shape: bf16[2,324,128], index: 0, kind: input, shape index: {}]   ;;  %s9471_s1 = inlined_call_operand.vmem [shape: f32[324,1], index: 1, kind: input, shape index: {}]   ;;  %s9472_s2 = inlined_call_operand.vmem [shape: bf16[128,128], index: 2, kind: input, shape index: {}]   ;;  %s9473_s3 = inlined_call_operand.vmem [shape: f32[1,128], index: 3, kind: input, shape index: {}]   ;;  %s9474_s4 = inlined_call_operand.vmem [shape: bf16[9,128,128], index: 4, kind: input, shape index: {}]   ;;  %s9475_s5 = inlined_call_operand.vmem [shape: f32[1,128], index: 5, kind: input, shape index: {}]   ;;  %s9476_s6 = inlined_call_operand.vmem [shape: bf16[128,128], index: 6, kind: input, shape index: {}]   ;;  %s9477_s7 = inlined_call_operand.vmem [shape: f32[1,128], index: 7, kind: input, shape index: {}]   ;;  %s9478_s8 = inlined_call_operand.vmem [shape: f32[2,288,128], index: 8, kind: output, shape index: {}]  }
   0x1 LB: > { %s5730_s28 = sadd.s32 4294967295, %s7806_s27   ;;  %p5734_p0 = scmp.ge.s32.totalorder %s7806_s27, 1  ;;  %s7806_s27 = sphi %s7856_s27, %s18_s27  }
   0x2   : > { %p262_p1 = scmp.lt.s32.totalorder %s7806_s27, 3 }
   0x4   : > { %p263_p2 = pnand %p5734_p0, %p262_p1 }
   0x6   : > { %266 = sbr.rel (%p263_p2) target bundleno = 1023 (0x3ff), region = 52 }
   0xd   : > { %v7597_v0 = vld [vmem:[%s9472_s2] sm:$0xff]   ;;  %v7808_v1 = vmov 0.0   ;;  %v7598_v2 = vld [vmem:[%s9472_s2 + $0x8] sm:$0xff]   ;;  %vm7809_vm0 = vmmov 0   ;;  %p296_p3 = scmp.lt.s32.totalorder %s5730_s28, 1  ;;  %v7810_v3 = vmov 0  }
   0xe   : > { %6550 = vmatprep.subr.bf16.mxu0 %v7808_v1  ;;  %6566 = vmatprep.mubr.msk.bf16.mxu0 %vm7809_vm0, %v7808_v1  ;;  %v7599_v4 = vld [vmem:[%s9472_s2 + $0x10] sm:$0xff]   ;;  %v788_v6 = vld [vmem:[%s9471_s1 + $0x20] sm:$0xff]  ;;  %v7600_v7 = vld [vmem:[%s9472_s2 + $0x18] sm:$0xff]   ;;  %vm1441_vm1 = vsmask.f32 7424  ;;  %vm2097_vm2 = vcmask 1046528  }
   0xf   : > { %6551 = vmatpush3.bf16.msra.mxu0 %v7597_v0  ;;  %s9544_s28 = smov (!%p296_p3, %s5730_s28), 1  ;;  %7595 = vset.pattern.permute.xlu0 %v7810_v3  ;;  %v786_v5 = vld [vmem:[%s9471_s1 + $0x10] sm:$0xff]  ;;  %v787_v8 = vld [vmem:[%s9471_s1 + $0x18] sm:$0xff]  ;;  %v789_v9 = vld [vmem:[%s9471_s1 + $0x28] sm:$0xff]  ;;  %vm3369_vm3 = vcmask 1045504   ;;  %vm4641_vm6 = vcmask 1044480  }
  0x10   : > { %6552 = vmatprep.subr.bf16.mxu0 %v7808_v1  ;;  %7596 = vset.pattern.permute.xlu1 %v7810_v3  ;;  %s7582_s13 = smul.u32 164, %s9544_s28  ;;  %v7601_v10 = vld [vmem:[%s9472_s2 + $0x20] sm:$0xff]   ;;  %v790_v11 = vld [vmem:[%s9471_s1 + $0x30] sm:$0xff]  ;;  %v791_v12 = vld [vmem:[%s9471_s1 + $0x38] sm:$0xff]  ;;  %vm2898_vm4 = vsmask.f32 6400 }
  0x11   : > { %837 = vperm.xlu0 %7595, %v786_v5   ;;  %847 = vperm.xlu1 %7596, %v788_v6   ;;  %v7602_v13 = vld [vmem:[%s9472_s2 + $0x28] sm:$0xff]   ;;  %v792_v14 = vld [vmem:[%s9471_s1 + $0x40] sm:$0xff]  ;;  %v7603_v16 = vld [vmem:[%s9472_s2 + $0x30] sm:$0xff]   ;;  %vm4170_vm5 = vsmask.f32 5376  ;;  %s7583_s29 = smul.u32 288, %s9544_s28 }
  0x12   : > { %s7884_s16 = scalar_lea.vmem %s9470_s0, %s7582_s13  ;;  %v793_v15 = vld [vmem:[%s9471_s1 + $0x48] sm:$0xff]  ;;  %v794_v17 = vld [vmem:[%s9471_s1 + $0x50] sm:$0xff]  ;;  %v795_v18 = vld [vmem:[%s9471_s1 + $0x58] sm:$0xff] }
  0x13   : > { %6553 = vmatpush3.bf16.msra.mxu0 %v7598_v2  ;;  %v7604_v19 = vld [vmem:[%s9472_s2 + $0x38] sm:$0xff]   ;;  %v796_v20 = vld [vmem:[%s9471_s1 + $0x60] sm:$0xff]  ;;  %v797_v21 = vld [vmem:[%s9471_s1 + $0x68] sm:$0xff]  ;;  %s9303_s28 = scalar_lea.vmem %s9478_s8, %s7583_s29 }
  0x14   : > { %6554 = vmatprep.subr.bf16.mxu0 %v7808_v1  ;;  %v7605_v22 = vld [vmem:[%s7884_s16] sm:$0xff]   ;;  %v798_v23 = vld [vmem:[%s9471_s1 + $0x70] sm:$0xff]  ;;  %v799_v24 = vld [vmem:[%s9471_s1 + $0x78] sm:$0xff] }
  0x15   : > { %842 = vperm.xlu0 %7595, %v787_v8   ;;  %852 = vperm.xlu1 %7596, %v789_v9   ;;  %v800_v25 = vld [vmem:[%s9471_s1 + $0x80] sm:$0xff]  ;;  %v801_v26 = vld [vmem:[%s9471_s1 + $0x88] sm:$0xff]  ;;  %v802_v28 = vld [vmem:[%s9471_s1 + $0x90] sm:$0xff] }
  0x16   : > { %v7606_v27 = vld [vmem:[%s7884_s16 + $0x8] sm:$0xff]   ;;  %v803_v29 = vld [vmem:[%s9471_s1 + $0x98] sm:$0xff]  ;;  %v804_v30 = vld [vmem:[%s9471_s1 + $0xa0] sm:$0xff] }
  0x17   : > { %6555 = vmatpush3.bf16.msra.mxu0 %v7599_v4  ;;  %v805_v31 = vld [vmem:[%s9471_s1 + $0xa8] sm:$0xff]  ;;  %v7607_v32 = vld [vmem:[%s7884_s16 + $0x10] sm:$0xff]   ;;  %v807_v34 = vld [vmem:[%s9471_s1 + $0xb8] sm:$0xff] }
  0x18   : > { %6556 = vmatprep.subr.bf16.mxu0 %v7808_v1  ;;  %v806_v33 = vld [vmem:[%s9471_s1 + $0xb0] sm:$0xff]  ;;  %v808_v35 = vld [vmem:[%s9471_s1 + $0xc0] sm:$0xff]  ;;  %v809_v36 = vld [vmem:[%s9471_s1 + $0xc8] sm:$0xff] }
  0x19   : > { %857 = vperm.xlu0 %7595, %v790_v11   ;;  %862 = vperm.xlu1 %7596, %v791_v12   ;;  %v7608_v37 = vld [vmem:[%s7884_s16 + $0x18] sm:$0xff]   ;;  %v810_v38 = vld [vmem:[%s9471_s1 + $0xd0] sm:$0xff]  ;;  %v812_v40 = vld [vmem:[%s9471_s1 + $0xe0] sm:$0xff] }
  0x1a   : > { %v811_v39 = vld [vmem:[%s9471_s1 + $0xd8] sm:$0xff]  ;;  %v813_v41 = vld [vmem:[%s9471_s1 + $0xe8] sm:$0xff]  ;;  %v7609_v42 = vld [vmem:[%s7884_s16 + $0x20] sm:$0xff]  }
  0x1b   : > { %6557 = vmatpush3.bf16.msra.mxu0 %v7600_v7  ;;  %v814_v43 = vld [vmem:[%s9471_s1 + $0xf0] sm:$0xff]  ;;  %v815_v44 = vld [vmem:[%s9471_s1 + $0xf8] sm:$0xff]  ;;  %v816_v45 = vld [vmem:[%s9471_s1 + $0x100] sm:$0xff] }
  0x1c   : > { %6558 = vmatprep.subr.bf16.mxu0 %v7808_v1  ;;  %v817_v46 = vld [vmem:[%s9471_s1 + $0x108] sm:$0xff]  ;;  %v818_v48 = vld [vmem:[%s9471_s1 + $0x110] sm:$0xff]  ;;  %v819_v49 = vld [vmem:[%s9471_s1 + $0x118] sm:$0xff] }
  0x1d   : > { %867 = vperm.xlu0 %7595, %v792_v14   ;;  %872 = vperm.xlu1 %7596, %v793_v15   ;;  %v7610_v47 = vld [vmem:[%s7884_s16 + $0x28] sm:$0xff]   ;;  %v820_v50 = vld [vmem:[%s9471_s1 + $0x120] sm:$0xff]  ;;  %v7611_v52 = vld [vmem:[%s7884_s16 + $0x30] sm:$0xff]  }
  0x1e   : > { %v821_v51 = vld [vmem:[%s9471_s1 + $0x128] sm:$0xff]  ;;  %v822_v53 = vld [vmem:[%s9471_s1 + $0x130] sm:$0xff]  ;;  %v823_v54 = vld [vmem:[%s9471_s1 + $0x138] sm:$0xff] }
  0x1f   : > { %6559 = vmatpush3.bf16.msra.mxu0 %v7601_v10  ;;  %v784_v55 = vld [vmem:[%s9471_s1] sm:$0xff]  ;;  %v785_v56 = vld [vmem:[%s9471_s1 + $0x8] sm:$0xff]  ;;  %v7612_v57 = vld [vmem:[%s7884_s16 + $0x38] sm:$0xff]  }
  0x20   : > { %6560 = vmatprep.subr.bf16.mxu0 %v7808_v1  ;;  %v824_v58 = vld [vmem:[%s9471_s1 + $0x140] sm:$0xf]  ;;  %v7614_v60 = vld [vmem:[%s7884_s16 + $0x48] sm:$0xff]   ;;  %v7615_v61 = vld [vmem:[%s7884_s16 + $0x50] sm:$0xff]  }
  0x21   : > { %877 = vperm.xlu0 %7595, %v794_v17   ;;  %882 = vperm.xlu1 %7596, %v795_v18   ;;  %v7613_v59 = vld [vmem:[%s7884_s16 + $0x40] sm:$0xff]   ;;  %v7616_v62 = vld [vmem:[%s7884_s16 + $0x58] sm:$0xff]   ;;  %v7627_v2 = vld [vmem:[%s9474_s4 + $0x48] sm:$0xff]  }
  0x22   : > { %v7626_v63 = vld [vmem:[%s9474_s4 + $0x40] sm:$0xff]   ;;  %v7629_v4 = vld [vmem:[%s9474_s4 + $0x50] sm:$0xff]   ;;  %v7618_v5 = vld [vmem:[%s7884_s16 + $0x68] sm:$0xff]  }
  0x23   : > { %6561 = vmatpush3.bf16.msra.mxu0 %v7602_v13  ;;  %v7617_v0 = vld [vmem:[%s7884_s16 + $0x60] sm:$0xff]   ;;  %v7630_v6 = vld [vmem:[%s9474_s4 + $0xc8] sm:$0xff]   ;;  %v7631_v7 = vld [vmem:[%s9474_s4 + $0x58] sm:$0xff]  }
  0x24   : > { %6562 = vmatprep.subr.bf16.mxu0 %v7808_v1  ;;  %v7628_v3 = vld [vmem:[%s9474_s4 + $0xc0] sm:$0xff]   ;;  %v7632_v10 = vld [vmem:[%s9474_s4 + $0xd0] sm:$0xff]   ;;  %v7634_v15 = vld [vmem:[%s9474_s4 + $0xd8] sm:$0xff]  }
  0x25   : > { %887 = vperm.xlu0 %7595, %v796_v20   ;;  %892 = vperm.xlu1 %7596, %v797_v21   ;;  %v7633_v11 = vld [vmem:[%s9474_s4 + $0x60] sm:$0xff]   ;;  %v7619_v14 = vld [vmem:[%s7884_s16 + $0x70] sm:$0xff]   ;;  %v7620_v21 = vld [vmem:[%s7884_s16 + $0x78] sm:$0xff]  }
  0x26   : > { %6806 = vmatprep.subr.bf16.mxu1 %v7628_v3  ;;  %v7636_v17 = vld [vmem:[%s9474_s4 + $0xe0] sm:$0xff]   ;;  %v7637_v20 = vld [vmem:[%s9474_s4 + $0x70] sm:$0xff]  }
  0x27   : > { %6563 = vmatpush3.bf16.msra.mxu0 %v7603_v16  ;;  %6807 = vmatpush3.bf16.msra.mxu1 %v7628_v3  ;;  %v7635_v16 = vld [vmem:[%s9474_s4 + $0x68] sm:$0xff]  }
  0x28   : > { %6564 = vmatprep.subr.bf16.mxu0 %v7808_v1  ;;  %6808 = vmatprep.subr.bf16.mxu1 %v7630_v6 }
  0x29   : > { %897 = vperm.xlu0 %7595, %v798_v23   ;;  %902 = vperm.xlu1 %7596, %v799_v24   ;;  %v7641_v23 = vld [vmem:[%s9474_s4 + $0x78] sm:$0xff]  }
  0x2b   : > { %6565 = vmatpush3.bf16.msra.mxu0 %v7604_v19  ;;  %6809 = vmatpush3.bf16.msra.mxu1 %v7630_v6 }
  0x2c   : > { %6650 = vmatprep.subr.bf16.mxu0 %v7626_v63  ;;  %6810 = vmatprep.subr.bf16.mxu1 %v7632_v10 }
  0x2d   : > { %907 = vperm.xlu0 %7595, %v800_v25   ;;  %912 = vperm.xlu1 %7596, %v801_v26   ;;  %v7642_v26 = vld [vmem:[%s9474_s4 + $0xf0] sm:$0xff]  }
  0x2e   : > { %6567 = vmatmul.mubr.bf16.vlgmr.msra.gmra.mrb[0].mxu0 %v7605_v22  ;;  %v7640_v22 = vld [vmem:[%s9474_s4 + $0xe8] sm:$0xff]  }
  0x2f   : > { %6570 = vmatprep.mubr.msk.bf16.mxu0 %vm7809_vm0, %v7808_v1  ;;  %6651 = vmatpush3.bf16.msra.mxu0 %v7626_v63 }
  0x30   : > { %6652 = vmatprep.subr.bf16.mxu0 %v7627_v2  ;;  %6811 = vmatpush3.bf16.msra.mxu1 %v7632_v10 }
  0x31   : > { %917 = vperm.xlu0 %7595, %v802_v28   ;;  %922 = vperm.xlu1 %7596, %v803_v29  }
  0x32   : > { %6812 = vmatprep.subr.bf16.mxu1 %v7634_v15 }
  0x33   : > { %6653 = vmatpush3.bf16.msra.mxu0 %v7627_v2 }
  0x34   : > { %6654 = vmatprep.subr.bf16.mxu0 %v7629_v4  ;;  %6813 = vmatpush3.bf16.msra.mxu1 %v7634_v15 }
  0x35   : > { %927 = vperm.xlu0 %7595, %v804_v30   ;;  %932 = vperm.xlu1 %7596, %v805_v31   ;;  %v7646_v30 = vld [vmem:[%s9474_s4 + $0xf8] sm:$0xff]  }
  0x36   : > { %6571 = vmatmul.mubr.bf16.gmra.mrb[4].mxu0 %v7606_v27  ;;  %6814 = vmatprep.subr.bf16.mxu1 %v7636_v17  ;;  %v7621_v27 = vld [vmem:[%s7884_s16 + $0x80] sm:$0xff]  }
  0x37   : > { %6574 = vmatprep.mubr.msk.bf16.mxu0 %vm7809_vm0, %v7808_v1  ;;  %6655 = vmatpush3.bf16.msra.mxu0 %v7629_v4 }
  0x38   : > { %6656 = vmatprep.subr.bf16.mxu0 %v7631_v7  ;;  %6815 = vmatpush3.bf16.msra.mxu1 %v7636_v17 }
  0x39   : > { %937 = vperm.xlu0 %7595, %v806_v33   ;;  %942 = vperm.xlu1 %7596, %v807_v34   ;;  %v7622_v33 = vld [vmem:[%s7884_s16 + $0x88] sm:$0xff]  }
  0x3a   : > { %6816 = vmatprep.subr.bf16.mxu1 %v7640_v22 }
  0x3b   : > { %6657 = vmatpush3.bf16.msra.mxu0 %v7631_v7 }
  0x3c   : > { %6658 = vmatprep.subr.bf16.mxu0 %v7633_v11  ;;  %6817 = vmatpush3.bf16.msra.mxu1 %v7640_v22 }
  0x3d   : > { %947 = vperm.xlu0 %7595, %v808_v35   ;;  %952 = vperm.xlu1 %7596, %v809_v36   ;;  %v7623_v36 = vld [vmem:[%s7884_s16 + $0x90] sm:$0xff]  }
  0x3e   : > { %6575 = vmatmul.mubr.bf16.gmra.mrb[8].mxu0 %v7607_v32  ;;  %6818 = vmatprep.subr.bf16.mxu1 %v7642_v26 }
  0x3f   : > { %6578 = vmatprep.mubr.msk.bf16.mxu0 %vm7809_vm0, %v7808_v1  ;;  %6659 = vmatpush3.bf16.msra.mxu0 %v7633_v11 }
  0x40   : > { %6660 = vmatprep.subr.bf16.mxu0 %v7635_v16  ;;  %6819 = vmatpush3.bf16.msra.mxu1 %v7642_v26 }
  0x41   : > { %957 = vperm.xlu0 %7595, %v810_v38   ;;  %962 = vperm.xlu1 %7596, %v811_v39   ;;  %v7624_v39 = vld [vmem:[%s7884_s16 + $0x98] sm:$0xff]  }
  0x42   : > { %6820 = vmatprep.subr.bf16.mxu1 %v7646_v30 }
  0x43   : > { %6661 = vmatpush3.bf16.msra.mxu0 %v7635_v16 }
  0x44   : > { %6662 = vmatprep.subr.bf16.mxu0 %v7637_v20  ;;  %6821 = vmatpush3.bf16.msra.mxu1 %v7646_v30 }
  0x45   : > { %967 = vperm.xlu0 %7595, %v812_v40   ;;  %972 = vperm.xlu1 %7596, %v813_v41  }
  0x46   : > { %6579 = vmatmul.mubr.bf16.gmra.mrb[12].mxu0 %v7608_v37 }
  0x47   : > { %6582 = vmatprep.mubr.msk.bf16.mxu0 %vm7809_vm0, %v7808_v1  ;;  %6663 = vmatpush3.bf16.msra.mxu0 %v7637_v20 }
  0x48   : > { %6664 = vmatprep.subr.bf16.mxu0 %v7641_v23 }
  0x49   : > { %977 = vperm.xlu0 %7595, %v814_v43   ;;  %982 = vperm.xlu1 %7596, %v815_v44   ;;  %v7625_v44 = vld [vmem:[%s7884_s16 + $0xa0] ss:$0 sps:$4 sm:$0x33]  }
  0x4b   : > { %6665 = vmatpush3.bf16.msra.mxu0 %v7641_v23 }
  0x4d   : > { %987 = vperm.xlu0 %7595, %v816_v45   ;;  %992 = vperm.xlu1 %7596, %v817_v46  }
  0x4e   : > { %6583 = vmatmul.mubr.bf16.gmra.mrb[16].mxu0 %v7609_v42 }
  0x4f   : > { %6586 = vmatprep.mubr.msk.bf16.mxu0 %vm7809_vm0, %v7808_v1 }
  0x51   : > { %997 = vperm.xlu0 %7595, %v818_v48   ;;  %1002 = vperm.xlu1 %7596, %v819_v49  }
  0x55   : > { %1007 = vperm.xlu0 %7595, %v820_v50   ;;  %1012 = vperm.xlu1 %7596, %v821_v51  }
  0x56   : > { %6587 = vmatmul.mubr.bf16.gmra.mrb[20].mxu0 %v7610_v47 }
  0x57   : > { %6590 = vmatprep.mubr.msk.bf16.mxu0 %vm7809_vm0, %v7808_v1 }
  0x59   : > { %1017 = vperm.xlu0 %7595, %v822_v53   ;;  %1022 = vperm.xlu1 %7596, %v823_v54  }
  0x5d   : > { %827 = vperm.xlu0 %7595, %v784_v55   ;;  %832 = vperm.xlu1 %7596, %v785_v56  }
  0x5e   : > { %6591 = vmatmul.mubr.bf16.gmra.mrb[24].mxu0 %v7611_v52 }
  0x5f   : > { %6594 = vmatprep.mubr.msk.bf16.mxu0 %vm7809_vm0, %v7808_v1 }
  0x61   : > { %1027 = vperm.xlu0 %7595, %v824_v58   ;;  %v8209_v58 = vld [vmem:[%s9474_s4 + $0x100] sm:$0xff]  }
  0x62   : > { %6858 = vmatprep.subr.bf16.mxu1 %v8209_v58 }
  0x66   : > { %6595 = vmatmul.mubr.bf16.gmra.mrb[28].mxu0 %v7612_v57 }
  0x67   : > { %6598 = vmatprep.mubr.msk.bf16.mxu0 %vm7809_vm0, %v7808_v1 }
  0x6e   : > { %6599 = vmatmul.mubr.bf16.gmra.mrb[32].mxu0 %v7613_v59 }
  0x6f   : > { %6602 = vmatprep.mubr.msk.bf16.mxu0 %vm7809_vm0, %v7808_v1 }
  0x76   : > { %6603 = vmatmul.mubr.bf16.gmra.mrb[36].mxu0 %v7614_v60 }
  0x77   : > { %6606 = vmatprep.mubr.msk.bf16.mxu0 %vm7809_vm0, %v7808_v1 }
  0x7e   : > { %6607 = vmatmul.mubr.bf16.gmra.mrb[40].mxu0 %v7615_v61 }
  0x7f   : > { %6610 = vmatprep.mubr.msk.bf16.mxu0 %vm7809_vm0, %v7808_v1 }
  0x86   : > { %6611 = vmatmul.mubr.bf16.gmra.mrb[44].mxu0 %v7616_v62  ;;  %v8221_v62 = vld [vmem:[%s9473_s3] ss:$0 sm:$0xff] }
  0x87   : > { %6614 = vmatprep.mubr.msk.bf16.mxu0 %vm7809_vm0, %v7808_v1 }
  0x8e   : > { %6615 = vmatmul.mubr.bf16.gmra.mrb[48].mxu0 %v7617_v0 }
  0x8f   : > { %6618 = vmatprep.mubr.msk.bf16.mxu0 %vm7809_vm0, %v7808_v1 }
  0x90   : > { %v8087_v8 = vpop.permute.xlu0 %837  ;;  %v8089_v9 = vpop.permute.xlu1 %847 }
  0x94   : > { %v8099_v12 = vpop.permute.xlu0 %842  ;;  %v8101_v13 = vpop.permute.xlu1 %852 }
  0x96   : > { %6619 = vmatmul.mubr.bf16.gmra.mrb[52].mxu0 %v7618_v5 }
  0x97   : > { %6622 = vmatprep.mubr.msk.bf16.mxu0 %vm7809_vm0, %v7808_v1 }
  0x98   : > { %v8115_v18 = vpop.permute.xlu0 %857  ;;  %v8117_v19 = vpop.permute.xlu1 %862 }
  0x9c   : > { %v8129_v24 = vpop.permute.xlu0 %867  ;;  %v8131_v25 = vpop.permute.xlu1 %872 }
  0x9e   : > { %6623 = vmatmul.mubr.bf16.gmra.mrb[56].mxu0 %v7619_v14 }
  0x9f   : > { %6626 = vmatprep.mubr.msk.bf16.mxu0 %vm7809_vm0, %v7808_v1 }
  0xa0   : > { %v8139_v28 = vpop.permute.xlu0 %877  ;;  %v8141_v29 = vpop.permute.xlu1 %882 }
  0xa4   : > { %v8148_v31 = vpop.permute.xlu0 %887  ;;  %v8150_v32 = vpop.permute.xlu1 %892 }
  0xa6   : > { %6627 = vmatmul.mubr.bf16.gmra.mrb[60].mxu0 %v7620_v21 }
  0xa7   : > { %6630 = vmatprep.mubr.msk.bf16.mxu0 %vm7809_vm0, %v7808_v1 }
  0xa8   : > { %v8155_v34 = vpop.permute.xlu0 %897  ;;  %v8157_v35 = vpop.permute.xlu1 %902 }
  0xac   : > { %v8160_v37 = vpop.permute.xlu0 %907  ;;  %v8162_v38 = vpop.permute.xlu1 %912 }
  0xae   : > { %6631 = vmatmul.mubr.bf16.gmra.mrb[64].mxu0 %v7621_v27 }
  0xaf   : > { %6634 = vmatprep.mubr.msk.bf16.mxu0 %vm7809_vm0, %v7808_v1 }
  0xb0   : > { %v8167_v40 = vpop.permute.xlu0 %917  ;;  %v8169_v41 = vpop.permute.xlu1 %922 }
  0xb4   : > { %v8173_v42 = vpop.permute.xlu0 %927  ;;  %v8175_v43 = vpop.permute.xlu1 %932 }
  0xb6   : > { %6635 = vmatmul.mubr.bf16.gmra.mrb[68].mxu0 %v7622_v33 }
  0xb7   : > { %6638 = vmatprep.mubr.msk.bf16.mxu0 %vm7809_vm0, %v7808_v1 }
  0xb8   : > { %v8178_v45 = vpop.permute.xlu0 %937  ;;  %v8180_v46 = vpop.permute.xlu1 %942 }
  0xbc   : > { %v8182_v47 = vpop.permute.xlu0 %947  ;;  %v8184_v48 = vpop.permute.xlu1 %952 }
  0xbe   : > { %6639 = vmatmul.mubr.bf16.gmra.mrb[72].mxu0 %v7623_v36 }
  0xbf   : > { %6642 = vmatprep.mubr.msk.bf16.mxu0 %vm7809_vm0, %v7808_v1 }
  0xc0   : > { %v8186_v49 = vpop.permute.xlu0 %957  ;;  %v8188_v50 = vpop.permute.xlu1 %962 }
  0xc4   : > { %v8190_v51 = vpop.permute.xlu0 %967 }
  0xc6   : > { %6643 = vmatmul.mubr.bf16.gmra.mrb[76].mxu0 %v7624_v39 }
  0xc7   : > { %6646 = vmatprep.mubr.msk.bf16.mxu0 %vm7809_vm0, %v7808_v1  ;;  %v8192_v1 = vpop.permute.xlu1 %972 }
  0xc8   : > { %v8194_v52 = vpop.permute.xlu0 %977 }
  0xcb   : > { %v8196_v53 = vpop.permute.xlu1 %982 }
  0xcc   : > { %v8198_v54 = vpop.permute.xlu0 %987 }
  0xce   : > { %6647 = vmatmul.mubr.bf16.gmra.mrb[80].mxu0 %v7625_v44 }
  0xcf   : > { %v8200_v55 = vpop.permute.xlu1 %992 }
  0xd0   : > { %v8202_v56 = vpop.permute.xlu0 %997 }
  0xd3   : > { %v8204_v57 = vpop.permute.xlu1 %1002 }
  0xd4   : > { %v8212_v59 = vpop.permute.xlu0 %1007 }
  0xd7   : > { %v8214_v60 = vpop.permute.xlu1 %1012 }
  0xd8   : > { %v8216_v61 = vpop.permute.xlu0 %1017 }
  0xdb   : > { %v8223_v63 = vpop.permute.xlu1 %1022 }
  0xdc   : > { %v828_v10 = vpop.permute.xlu0 %827 }
  0xdf   : > { %v833_v11 = vpop.permute.xlu1 %832 }
 0x101   : > { %v577_v0 = vpop.f32.mrb[0].mxu0 }
 0x102   : > { %v578_v2 = vadd.f32 %v8221_v62, %v577_v0  ;;  %v6568_v3 = vpop.f32.mrb[1].mxu0 }
 0x103   : > { %v580_v4 = vpop.f32.mrb[2].mxu0 }
 0x104   : > { %v743_v5 = vmax.f32 %v578_v2, 0.0  ;;  %v581_v6 = vadd.f32 %v8221_v62, %v580_v4  ;;  %v6569_v7 = vpop.f32.mrb[3].mxu0  ;;  %v8235_v4 = vld [vmem:[%s9474_s4] sm:$0xff]  }
 0x105   : > { %6702 = vmatprep.subr.bf16.mxu0 %v8235_v4 }
 0x106   : > { %v744_v14 = vmax.f32 %v581_v6, 0.0  ;;  %v1030_v15 = vmul.f32 %v828_v10, %v743_v5 }
 0x108   : > { %v1031_v16 = vmul.f32 %v833_v11, %v744_v14 }
 0x109   : > { %v585_v17 = vpop.f32.mrb[4].mxu0 }
 0x10a   : > { %v6145_v20 = vpack.c.bf16 %v1031_v16, %v1030_v15  ;;  %v586_v21 = vadd.f32 %v8221_v62, %v585_v17  ;;  %v6572_v22 = vpop.f32.mrb[5].mxu0 }
 0x10b   : > { %v588_v23 = vpop.f32.mrb[6].mxu0 }
 0x10c   : > { %6146 = vst [vmem:[#allocation2] sm:$0xff] %v6145_v20   ;;  %v745_v26 = vmax.f32 %v586_v21, 0.0  ;;  %v589_v27 = vadd.f32 %v8221_v62, %v588_v23  ;;  %v6573_v30 = vpop.f32.mrb[7].mxu0 }
 0x10e   : > { %v746_v33 = vmax.f32 %v589_v27, 0.0  ;;  %v1032_v36 = vmul.f32 %v8087_v8, %v745_v26 }
 0x110   : > { %v1033_v39 = vmul.f32 %v8099_v12, %v746_v33 }
 0x111   : > { %v593_v44 = vpop.f32.mrb[8].mxu0 }
 0x112   : > { %v6150_v0 = vpack.c.bf16 %v1033_v39, %v1032_v36  ;;  %v594_v2 = vadd.f32 %v8221_v62, %v593_v44  ;;  %v6576_v3 = vpop.f32.mrb[9].mxu0 }
 0x113   : > { %v596_v5 = vpop.f32.mrb[10].mxu0  ;;  %v1278_v6 = vld [vmem:[#allocation2] sm:$0xf]  ;;  %v1279_v7 = vld [vmem:[#allocation2 + $0x4] sm:$0xf] }
 0x114   : > { %6242 = vst [vmem:[#allocation2 + $0x8] sm:$0xff] %v6150_v0   ;;  %v747_v10 = vmax.f32 %v594_v2, 0.0  ;;  %v597_v11 = vadd.f32 %v8221_v62, %v596_v5  ;;  %v6577_v8 = vpop.f32.mrb[11].mxu0  ;;  %v8238_v14 = vcombine.low %v1278_v6, %v1279_v7 }
 0x116   : > { %v748_v12 = vmax.f32 %v597_v11, 0.0  ;;  %v1445_v15 = vshll.u32 %v8238_v14, 16  ;;  %v1034_v16 = vmul.f32 %v8089_v9, %v747_v10  ;;  %v1443_v2 = vshrl.u32 %v8238_v14, 16 }
 0x118   : > { %v1035_v17 = vmul.f32 %v8101_v13, %v748_v12  ;;  %v1447_v26 = vrot.slane %v1445_v15, 1 }
 0x119   : > { %v601_v20 = vpop.f32.mrb[12].mxu0 }
 0x11a   : > { %v6155_v21 = vpack.c.bf16 %v1035_v17, %v1034_v16  ;;  %v602_v22 = vadd.f32 %v8221_v62, %v601_v20  ;;  %v6580_v23 = vpop.f32.mrb[13].mxu0  ;;  %v1448_v6 = vor.u32 %v1447_v26, %v1443_v2 }
 0x11b   : > { %v604_v27 = vpop.f32.mrb[14].mxu0  ;;  %v7639_v30 = vld [vmem:[#allocation2 + $0x8] sm:$0xff]  }
 0x11c   : > { %6243 = vst [vmem:[#allocation2 + $0x10] sm:$0xff] %v6155_v21   ;;  %v749_v33 = vmax.f32 %v602_v22, 0.0  ;;  %v605_v36 = vadd.f32 %v8221_v62, %v604_v27  ;;  %v6581_v39 = vpop.f32.mrb[15].mxu0  ;;  %v2414_v44 = vld [vmem:[#allocation2 + $0x8] sm:$0xe]  ;;  %v1450_v9 = vshll.u32 %v7639_v30, 16 }
 0x11d   : > { %v2415_v0 = vld [vmem:[#allocation2 + $0xc] sm:$0xf]  ;;  %v3348_v5 = vld [vmem:[#allocation2 + $0x8] sm:$0xc] }
 0x11e   : > { %v5900_v3 = vcombine.low %v2414_v44, %v2415_v0  ;;  %v750_v13 = vmax.f32 %v605_v36, 0.0  ;;  %v1452_v7 = vrot.slane %v1450_v9, 1  ;;  %v1036_v10 = vmul.f32 %v8115_v18, %v749_v33 }
 0x11f   : > { %v5968_v16 = vcombine.low %v3348_v5, %v2415_v0 }
 0x120   : > { %v1037_v11 = vmul.f32 %v8117_v19, %v750_v13  ;;  %v1453_v12 = vsel %vm1441_vm1, %v1448_v6, %v1452_v7  ;;  %v2561_v15 = vrot.slane %v5900_v3, 1  ;;  %v2900_v22 = vshrl.u32 %v5900_v3, 16 }
 0x121   : > { %v609_v8 = vpop.f32.mrb[16].mxu0  ;;  %6666 = vmatprep.mubr.bf16.mxu0 %v1453_v12  ;;  %v2903_v23 = vshll.u32 %v5900_v3, 16  ;;  %v3370_v6 = vrot.slane %v5968_v16, 2 }
 0x122   : > { %v6160_v17 = vpack.c.bf16 %v1037_v11, %v1036_v10  ;;  %v610_v20 = vadd.f32 %v8221_v62, %v609_v8  ;;  %v6584_v21 = vpop.f32.mrb[17].mxu0  ;;  %v2902_v13 = vrot.slane %v2900_v22, 1  ;;  %v1454_v10 = vshrl.u32 %v7639_v30, 16 }
 0x123   : > { %v612_v26 = vpop.f32.mrb[18].mxu0  ;;  %v7644_v27 = vld [vmem:[#allocation2 + $0x10] sm:$0xff]   ;;  %v2905_v5 = vrot.slane %v2903_v23, 2 }
 0x124   : > { %6244 = vst [vmem:[#allocation2 + $0x18] sm:$0xff] %v6160_v17   ;;  %v751_v18 = vmax.f32 %v610_v20, 0.0  ;;  %v613_v19 = vadd.f32 %v8221_v62, %v612_v26  ;;  %v6585_v33 = vpop.f32.mrb[19].mxu0  ;;  %v2562_v36 = vrot.slane %v7644_v27, 1  ;;  %v7645_v39 = vld [vmem:[#allocation2 + $0x10] sm:$0xff]   ;;  %v2908_v44 = vshrl.u32 %v7644_v27, 16 }
 0x125   : > { %v2911_v2 = vshll.u32 %v7644_v27, 16  ;;  %v3371_v0 = vrot.slane %v7644_v27, 2  ;;  %v1458_v3 = vshll.u32 %v7645_v39, 16  ;;  %v1456_v26 = vor.u32 %v1454_v10, %v1452_v7 }
 0x126   : > { %v752_v9 = vmax.f32 %v613_v19, 0.0  ;;  %v2563_v11 = vsel %vm2097_vm2, %v2561_v15, %v2562_v36  ;;  %v2910_v8 = vrot.slane %v2908_v44, 1  ;;  %v1038_v12 = vmul.f32 %v8129_v24, %v751_v18  ;;  %v7679_v15 = vld [vmem:[%s9474_s4 + $0x8] sm:$0xff]  }
 0x127   : > { %6822 = vmatprep.mubr.bf16.mxu1 %v2563_v11  ;;  %v2913_v20 = vrot.slane %v2911_v2, 2  ;;  %v8256_v21 = vsel %vm3369_vm3, %v3370_v6, %v3371_v0  ;;  %v1460_v19 = vrot.slane %v1458_v3, 1  ;;  %v2906_v24 = vor.u32 %v2905_v5, %v2902_v13  ;;  %v7667_v13 = vld [vmem:[%s9474_s4 + $0x108] sm:$0xff]   ;;  %v7682_v5 = vld [vmem:[%s9474_s4 + $0x10] sm:$0xff]  }
 0x128   : > { %v1039_v17 = vmul.f32 %v8131_v25, %v752_v9 }
 0x129   : > { %v617_v27 = vpop.f32.mrb[20].mxu0  ;;  %v2914_v23 = vor.u32 %v2913_v20, %v2910_v8  ;;  %v1461_v18 = vsel %vm1441_vm1, %v1456_v26, %v1460_v19  ;;  %v1462_v20 = vshrl.u32 %v7645_v39, 16 }
 0x12a   : > { %v6165_v22 = vpack.c.bf16 %v1039_v17, %v1038_v12  ;;  %v618_v30 = vadd.f32 %v8221_v62, %v617_v27  ;;  %v6588_v16 = vpop.f32.mrb[21].mxu0  ;;  %6667 = vmatmul.mubr.bf16.vlgmr.msra.gmra.mrb[84].mxu0 %v1461_v18 }
 0x12b   : > { %v620_v25 = vpop.f32.mrb[22].mxu0  ;;  %v8263_v33 = vld [vmem:[#allocation2 + $0x18] sm:$0xff]   ;;  %v8267_v9 = vsel %vm2898_vm4, %v2906_v24, %v2914_v23  ;;  %6703 = vmatpush3.bf16.msra.mxu0 %v8235_v4 }
 0x12c   : > { %6245 = vst [vmem:[#allocation2 + $0x20] sm:$0xff] %v6165_v22   ;;  %v753_v7 = vmax.f32 %v618_v30, 0.0  ;;  %v621_v44 = vadd.f32 %v8221_v62, %v620_v25  ;;  %v6589_v2 = vpop.f32.mrb[23].mxu0  ;;  %v2564_v6 = vrot.slane %v8263_v33, 1  ;;  %v8270_v10 = vld [vmem:[#allocation2 + $0x18] sm:$0xff]   ;;  %v2917_v11 = vshrl.u32 %v8263_v33, 16  ;;  %6704 = vmatprep.subr.bf16.mxu0 %v7679_v15 }
 0x12d   : > { %v2920_v3 = vshll.u32 %v8263_v33, 16  ;;  %v3373_v12 = vrot.slane %v8263_v33, 2  ;;  %v1466_v26 = vshll.u32 %v8270_v10, 16  ;;  %v1464_v25 = vor.u32 %v1462_v20, %v1460_v19 }
 0x12e   : > { %v754_v8 = vmax.f32 %v621_v44, 0.0  ;;  %v2565_v17 = vsel %vm2097_vm2, %v2562_v36, %v2564_v6  ;;  %v2919_v27 = vrot.slane %v2917_v11, 1  ;;  %v1040_v4 = vmul.f32 %v8139_v28, %v753_v7  ;;  %v7670_v28 = vld [vmem:[%s9474_s4 + $0x110] sm:$0xff]  }
 0x12f   : > { %6823 = vmatmul.mubr.bf16.vlgmr.msra.gmra.mrb[0].mxu1 %v2565_v17  ;;  %v2922_v30 = vrot.slane %v2920_v3, 2  ;;  %v8287_v16 = vsel %vm3369_vm3, %v3371_v0, %v3373_v12  ;;  %v1468_v18 = vrot.slane %v1466_v26, 1  ;;  %6705 = vmatpush3.bf16.msra.mxu0 %v7679_v15  ;;  %v7674_v17 = vld [vmem:[%s9474_s4 + $0x118] sm:$0xff]  }
 0x130   : > { %v1041_v22 = vmul.f32 %v8141_v29, %v754_v8  ;;  %6859 = vmatpush3.bf16.msra.mxu1 %v8209_v58  ;;  %6706 = vmatprep.subr.bf16.mxu0 %v7682_v5  ;;  %v7684_v29 = vld [vmem:[%s9474_s4 + $0x18] sm:$0xff]  }
 0x131   : > { %v625_v24 = vpop.f32.mrb[24].mxu0  ;;  %6860 = vmatprep.subr.bf16.mxu1 %v7667_v13  ;;  %v2923_v0 = vor.u32 %v2922_v30, %v2919_v27  ;;  %v1469_v7 = vsel %vm1441_vm1, %v1464_v25, %v1468_v18 }
 0x132   : > { %v6170_v36 = vpack.c.bf16 %v1041_v22, %v1040_v4  ;;  %v626_v39 = vadd.f32 %v8221_v62, %v625_v24  ;;  %v6592_v33 = vpop.f32.mrb[25].mxu0  ;;  %6670 = vmatprep.mubr.bf16.mxu0 %v1469_v7  ;;  %v1470_v22 = vshrl.u32 %v8270_v10, 16 }
 0x133   : > { %v628_v19 = vpop.f32.mrb[26].mxu0  ;;  %v8298_v58 = vld [vmem:[#allocation2 + $0x20] sm:$0xff]   ;;  %v8302_v11 = vsel %vm2898_vm4, %v2914_v23, %v2923_v0  ;;  %6707 = vmatpush3.bf16.msra.mxu0 %v7682_v5 }
 0x134   : > { %6246 = vst [vmem:[#allocation2 + $0x28] sm:$0xff] %v6170_v36   ;;  %v755_v15 = vmax.f32 %v626_v39, 0.0  ;;  %v629_v44 = vadd.f32 %v8221_v62, %v628_v19  ;;  %v6593_v2 = vpop.f32.mrb[27].mxu0  ;;  %v2566_v3 = vrot.slane %v8298_v58, 1  ;;  %v8305_v8 = vld [vmem:[#allocation2 + $0x20] sm:$0xff]   ;;  %6861 = vmatpush3.bf16.msra.mxu1 %v7667_v13  ;;  %v2926_v20 = vshrl.u32 %v8298_v58, 16  ;;  %6708 = vmatprep.subr.bf16.mxu0 %v7684_v29 }
 0x135   : > { %v2929_v26 = vshll.u32 %v8298_v58, 16  ;;  %v3375_v27 = vrot.slane %v8298_v58, 2  ;;  %6862 = vmatprep.subr.bf16.mxu1 %v7670_v28  ;;  %v7687_v23 = vld [vmem:[%s9474_s4 + $0x20] sm:$0xff]   ;;  %v1474_v30 = vshll.u32 %v8305_v8, 16  ;;  %v1472_v19 = vor.u32 %v1470_v22, %v1468_v18 }
 0x136   : > { %v756_v4 = vmax.f32 %v629_v44, 0.0  ;;  %v2567_v13 = vsel %vm2097_vm2, %v2564_v6, %v2566_v3  ;;  %v2928_v5 = vrot.slane %v2926_v20, 1  ;;  %v1042_v24 = vmul.f32 %v8148_v31, %v755_v15  ;;  %v7678_v31 = vld [vmem:[%s9474_s4 + $0x120] sm:$0xff]  }
 0x137   : > { %6826 = vmatprep.mubr.bf16.mxu1 %v2567_v13  ;;  %v2931_v36 = vrot.slane %v2929_v26, 2  ;;  %v8322_v39 = vsel %vm3369_vm3, %v3373_v12, %v3375_v27  ;;  %v1476_v7 = vrot.slane %v1474_v30, 1  ;;  %6709 = vmatpush3.bf16.msra.mxu0 %v7684_v29  ;;  %v7683_v13 = vld [vmem:[%s9474_s4 + $0x128] sm:$0xff]  }
 0x138   : > { %v1043_v25 = vmul.f32 %v8150_v32, %v756_v4  ;;  %6863 = vmatpush3.bf16.msra.mxu1 %v7670_v28  ;;  %6710 = vmatprep.subr.bf16.mxu0 %v7687_v23  ;;  %v7689_v32 = vld [vmem:[%s9474_s4 + $0x28] sm:$0xff]  }
 0x139   : > { %v633_v33 = vpop.f32.mrb[28].mxu0  ;;  %6864 = vmatprep.subr.bf16.mxu1 %v7674_v17  ;;  %v2932_v12 = vor.u32 %v2931_v36, %v2928_v5  ;;  %v1477_v18 = vsel %vm1441_vm1, %v1472_v19, %v1476_v7 }
 0x13a   : > { %v6175_v6 = vpack.c.bf16 %v1043_v25, %v1042_v24  ;;  %v634_v10 = vadd.f32 %v8221_v62, %v633_v33  ;;  %v6596_v58 = vpop.f32.mrb[29].mxu0  ;;  %6671 = vmatmul.mubr.bf16.gmra.mrb[88].mxu0 %v1477_v18  ;;  %v1478_v25 = vshrl.u32 %v8305_v8, 16 }
 0x13b   : > { %v636_v15 = vpop.f32.mrb[30].mxu0  ;;  %v8332_v28 = vld [vmem:[#allocation2 + $0x28] sm:$0xff]   ;;  %v8336_v20 = vsel %vm2898_vm4, %v2923_v0, %v2932_v12  ;;  %6711 = vmatpush3.bf16.msra.mxu0 %v7687_v23  ;;  %v7692_v0 = vld [vmem:[%s9474_s4 + $0x30] sm:$0xff]  }
 0x13c   : > { %6247 = vst [vmem:[#allocation2 + $0x30] sm:$0xff] %v6175_v6   ;;  %v757_v29 = vmax.f32 %v634_v10, 0.0  ;;  %v637_v44 = vadd.f32 %v8221_v62, %v636_v15  ;;  %v6597_v2 = vpop.f32.mrb[31].mxu0  ;;  %v2568_v26 = vrot.slane %v8332_v28, 1  ;;  %v8339_v4 = vld [vmem:[#allocation2 + $0x28] sm:$0xff]   ;;  %6865 = vmatpush3.bf16.msra.mxu1 %v7674_v17  ;;  %v2935_v22 = vshrl.u32 %v8332_v28, 16  ;;  %6712 = vmatprep.subr.bf16.mxu0 %v7689_v32 }
 0x13d   : > { %v2938_v30 = vshll.u32 %v8332_v28, 16  ;;  %v3377_v5 = vrot.slane %v8332_v28, 2  ;;  %6866 = vmatprep.subr.bf16.mxu1 %v7678_v31  ;;  %v1482_v36 = vshll.u32 %v8339_v4, 16  ;;  %v1480_v15 = vor.u32 %v1478_v25, %v1476_v7 }
 0x13e   : > { %v758_v24 = vmax.f32 %v637_v44, 0.0  ;;  %v2569_v17 = vsel %vm2097_vm2, %v2566_v3, %v2568_v26  ;;  %v2937_v23 = vrot.slane %v2935_v22, 1  ;;  %v1044_v33 = vmul.f32 %v8155_v34, %v757_v29  ;;  %v7688_v34 = vld [vmem:[%s9474_s4 + $0x130] sm:$0xff]  }
 0x13f   : > { %6827 = vmatmul.mubr.bf16.gmra.mrb[4].mxu1 %v2569_v17  ;;  %v2940_v6 = vrot.slane %v2938_v30, 2  ;;  %v8356_v10 = vsel %vm3369_vm3, %v3375_v27, %v3377_v5  ;;  %v1484_v18 = vrot.slane %v1482_v36, 1  ;;  %6713 = vmatpush3.bf16.msra.mxu0 %v7689_v32 }
 0x140   : > { %v1045_v19 = vmul.f32 %v8157_v35, %v758_v24  ;;  %6867 = vmatpush3.bf16.msra.mxu1 %v7678_v31  ;;  %6714 = vmatprep.subr.bf16.mxu0 %v7692_v0  ;;  %v7693_v35 = vld [vmem:[%s9474_s4 + $0x38] sm:$0xff]  }
 0x141   : > { %v641_v58 = vpop.f32.mrb[32].mxu0  ;;  %6868 = vmatprep.subr.bf16.mxu1 %v7683_v13  ;;  %v2941_v27 = vor.u32 %v2940_v6, %v2937_v23  ;;  %v1485_v7 = vsel %vm1441_vm1, %v1480_v15, %v1484_v18 }
 0x142   : > { %v6180_v3 = vpack.c.bf16 %v1045_v19, %v1044_v33  ;;  %v642_v8 = vadd.f32 %v8221_v62, %v641_v58  ;;  %v6600_v28 = vpop.f32.mrb[33].mxu0  ;;  %6674 = vmatprep.mubr.bf16.mxu0 %v1485_v7  ;;  %v7694_v33 = vld [vmem:[%s9474_s4 + $0x138] sm:$0xff]   ;;  %v1486_v19 = vshrl.u32 %v8339_v4, 16 }
 0x143   : > { %v644_v29 = vpop.f32.mrb[34].mxu0  ;;  %v8366_v31 = vld [vmem:[#allocation2 + $0x30] sm:$0xff]   ;;  %v8370_v22 = vsel %vm2898_vm4, %v2932_v12, %v2941_v27  ;;  %6715 = vmatpush3.bf16.msra.mxu0 %v7692_v0 }
 0x144   : > { %6248 = vst [vmem:[#allocation2 + $0x38] sm:$0xff] %v6180_v3   ;;  %v759_v32 = vmax.f32 %v642_v8, 0.0  ;;  %v645_v44 = vadd.f32 %v8221_v62, %v644_v29  ;;  %v6601_v2 = vpop.f32.mrb[35].mxu0  ;;  %v2570_v30 = vrot.slane %v8366_v31, 1  ;;  %v7654_v24 = vld [vmem:[#allocation2 + $0x30] sm:$0xff]   ;;  %6869 = vmatpush3.bf16.msra.mxu1 %v7683_v13  ;;  %v2944_v17 = vshrl.u32 %v8366_v31, 16  ;;  %6716 = vmatprep.subr.bf16.mxu0 %v7693_v35 }
 0x145   : > { %v2947_v25 = vshll.u32 %v8366_v31, 16  ;;  %v3379_v36 = vrot.slane %v8366_v31, 2  ;;  %6870 = vmatprep.subr.bf16.mxu1 %v7688_v34  ;;  %v1490_v6 = vshll.u32 %v7654_v24, 16  ;;  %v1488_v28 = vor.u32 %v1486_v19, %v1484_v18 }
 0x146   : > { %v760_v23 = vmax.f32 %v645_v44, 0.0  ;;  %v2571_v12 = vsel %vm2097_vm2, %v2568_v26, %v2570_v30  ;;  %v2946_v13 = vrot.slane %v2944_v17, 1  ;;  %v1046_v0 = vmul.f32 %v8160_v37, %v759_v32  ;;  %v8390_v37 = vld [vmem:[%s9474_s4 + $0x140] sm:$0xff]  }
 0x147   : > { %6830 = vmatprep.mubr.bf16.mxu1 %v2571_v12  ;;  %v2949_v15 = vrot.slane %v2947_v25, 2  ;;  %v8384_v3 = vsel %vm3369_vm3, %v3377_v5, %v3379_v36  ;;  %v1492_v29 = vrot.slane %v1490_v6, 1  ;;  %6717 = vmatpush3.bf16.msra.mxu0 %v7693_v35 }
 0x148   : > { %v1047_v58 = vmul.f32 %v8162_v38, %v760_v23  ;;  %6871 = vmatpush3.bf16.msra.mxu1 %v7688_v34 }
 0x149   : > { %v649_v8 = vpop.f32.mrb[36].mxu0  ;;  %6872 = vmatprep.subr.bf16.mxu1 %v7694_v33  ;;  %v2950_v38 = vor.u32 %v2949_v15, %v2946_v13  ;;  %v1493_v5 = vsel %vm1441_vm1, %v1488_v28, %v1492_v29  ;;  %v1494_v13 = vshrl.u32 %v7654_v24, 16 }
 0x14a   : > { %v6185_v7 = vpack.c.bf16 %v1047_v58, %v1046_v0  ;;  %v650_v26 = vadd.f32 %v8221_v62, %v649_v8  ;;  %v6604_v4 = vpop.f32.mrb[37].mxu0  ;;  %6675 = vmatmul.mubr.bf16.gmra.mrb[92].mxu0 %v1493_v5 }
 0x14b   : > { %v652_v31 = vpop.f32.mrb[38].mxu0  ;;  %v7655_v32 = vld [vmem:[#allocation2 + $0x38] sm:$0xff]   ;;  %v8395_v44 = vsel %vm2898_vm4, %v2941_v27, %v2950_v38 }
 0x14c   : > { %6249 = vst [vmem:[#allocation2 + $0x40] sm:$0xff] %v6185_v7   ;;  %v761_v18 = vmax.f32 %v650_v26, 0.0  ;;  %v653_v34 = vadd.f32 %v8221_v62, %v652_v31  ;;  %v6605_v35 = vpop.f32.mrb[39].mxu0  ;;  %v2572_v2 = vrot.slane %v7655_v32, 1  ;;  %v7656_v17 = vld [vmem:[#allocation2 + $0x38] sm:$0xff]   ;;  %6873 = vmatpush3.bf16.msra.mxu1 %v7694_v33  ;;  %v2953_v25 = vshrl.u32 %v7655_v32, 16 }
 0x14d   : > { %v2956_v23 = vshll.u32 %v7655_v32, 16  ;;  %v3381_v12 = vrot.slane %v7655_v32, 2  ;;  %6910 = vmatprep.subr.bf16.mxu1 %v8390_v37  ;;  %v1498_v0 = vshll.u32 %v7656_v17, 16  ;;  %v1496_v7 = vor.u32 %v1494_v13, %v1492_v29 }
 0x14e   : > { %v762_v19 = vmax.f32 %v653_v34, 0.0  ;;  %v2573_v6 = vsel %vm2097_vm2, %v2570_v30, %v2572_v2  ;;  %v2955_v58 = vrot.slane %v2953_v25, 1  ;;  %v1048_v15 = vmul.f32 %v8167_v40, %v761_v18 }
 0x14f   : > { %6831 = vmatmul.mubr.bf16.gmra.mrb[8].mxu1 %v2573_v6  ;;  %v2958_v27 = vrot.slane %v2956_v23, 2  ;;  %v8402_v28 = vsel %vm3369_vm3, %v3379_v36, %v3381_v12  ;;  %v1500_v26 = vrot.slane %v1498_v0, 1  ;;  %v1502_v0 = vshrl.u32 %v7656_v17, 16  ;;  %v8420_v17 = vld [vmem:[%s9474_s4 + $0x80] sm:$0xff]  }
 0x150   : > { %v1049_v8 = vmul.f32 %v8169_v41, %v762_v19  ;;  %6754 = vmatprep.subr.bf16.mxu0 %v8420_v17 }
 0x151   : > { %v657_v33 = vpop.f32.mrb[40].mxu0  ;;  %v2959_v30 = vor.u32 %v2958_v27, %v2955_v58  ;;  %v1501_v32 = vsel %vm1441_vm1, %v1496_v7, %v1500_v26 }
 0x152   : > { %v6190_v4 = vpack.c.bf16 %v1049_v8, %v1048_v15  ;;  %v658_v31 = vadd.f32 %v8221_v62, %v657_v33  ;;  %v6608_v5 = vpop.f32.mrb[41].mxu0  ;;  %6678 = vmatprep.mubr.bf16.mxu0 %v1501_v32 }
 0x153   : > { %v660_v24 = vpop.f32.mrb[42].mxu0  ;;  %v7657_v34 = vld [vmem:[#allocation2 + $0x40] sm:$0xff]   ;;  %v8408_v36 = vsel %vm2898_vm4, %v2950_v38, %v2959_v30 }
 0x154   : > { %6250 = vst [vmem:[#allocation2 + $0x48] sm:$0xff] %v6190_v4   ;;  %v763_v40 = vmax.f32 %v658_v31, 0.0  ;;  %v661_v41 = vadd.f32 %v8221_v62, %v660_v24  ;;  %v6609_v18 = vpop.f32.mrb[43].mxu0  ;;  %v2574_v29 = vrot.slane %v7657_v34, 1  ;;  %v7658_v35 = vld [vmem:[#allocation2 + $0x40] sm:$0xff]   ;;  %v2962_v25 = vshrl.u32 %v7657_v34, 16 }
 0x155   : > { %v2965_v23 = vshll.u32 %v7657_v34, 16  ;;  %v3383_v19 = vrot.slane %v7657_v34, 2  ;;  %v1506_v58 = vshll.u32 %v7658_v35, 16  ;;  %v1504_v4 = vor.u32 %v1502_v0, %v1500_v26 }
 0x156   : > { %v764_v6 = vmax.f32 %v661_v41, 0.0  ;;  %v2575_v13 = vsel %vm2097_vm2, %v2572_v2, %v2574_v29  ;;  %v2964_v15 = vrot.slane %v2962_v25, 1  ;;  %v1050_v8 = vmul.f32 %v8173_v42, %v763_v40 }
 0x157   : > { %6834 = vmatprep.mubr.bf16.mxu1 %v2575_v13  ;;  %v2967_v33 = vrot.slane %v2965_v23, 2  ;;  %v8414_v38 = vsel %vm3369_vm3, %v3381_v12, %v3383_v19  ;;  %v1508_v31 = vrot.slane %v1506_v58, 1 }
 0x158   : > { %v1051_v27 = vmul.f32 %v8175_v43, %v764_v6 }
 0x159   : > { %v665_v7 = vpop.f32.mrb[44].mxu0  ;;  %v2968_v2 = vor.u32 %v2967_v33, %v2964_v15  ;;  %v1509_v43 = vsel %vm1441_vm1, %v1504_v4, %v1508_v31  ;;  %v1510_v15 = vshrl.u32 %v7658_v35, 16 }
 0x15a   : > { %v6195_v5 = vpack.c.bf16 %v1051_v27, %v1050_v8  ;;  %v666_v24 = vadd.f32 %v8221_v62, %v665_v7  ;;  %v6612_v32 = vpop.f32.mrb[45].mxu0  ;;  %6679 = vmatmul.mubr.bf16.gmra.mrb[96].mxu0 %v1509_v43 }
 0x15b   : > { %v668_v42 = vpop.f32.mrb[46].mxu0  ;;  %v7659_v34 = vld [vmem:[#allocation2 + $0x48] sm:$0xff]   ;;  %v8425_v41 = vsel %vm2898_vm4, %v2959_v30, %v2968_v2 }
 0x15c   : > { %6251 = vst [vmem:[#allocation2 + $0x50] sm:$0xff] %v6195_v5   ;;  %v765_v12 = vmax.f32 %v666_v24, 0.0  ;;  %v669_v40 = vadd.f32 %v8221_v62, %v668_v42  ;;  %v6613_v26 = vpop.f32.mrb[47].mxu0  ;;  %v2576_v18 = vrot.slane %v7659_v34, 1  ;;  %v8428_v25 = vld [vmem:[#allocation2 + $0x48] sm:$0xff]   ;;  %v2971_v23 = vshrl.u32 %v7659_v34, 16 }
 0x15d   : > { %v2974_v6 = vshll.u32 %v7659_v34, 16  ;;  %v3385_v0 = vrot.slane %v7659_v34, 2  ;;  %v1514_v8 = vshll.u32 %v8428_v25, 16  ;;  %v1512_v24 = vor.u32 %v1510_v15, %v1508_v31 }
 0x15e   : > { %v766_v13 = vmax.f32 %v669_v40, 0.0  ;;  %v2577_v58 = vsel %vm2097_vm2, %v2574_v29, %v2576_v18  ;;  %v2973_v27 = vrot.slane %v2971_v23, 1  ;;  %v1052_v33 = vmul.f32 %v8178_v45, %v765_v12 }
 0x15f   : > { %6835 = vmatmul.mubr.bf16.gmra.mrb[12].mxu1 %v2577_v58  ;;  %v2976_v7 = vrot.slane %v2974_v6, 2  ;;  %v8435_v4 = vsel %vm3369_vm3, %v3383_v19, %v3385_v0  ;;  %v1516_v32 = vrot.slane %v1514_v8, 1 }
 0x160   : > { %v1053_v30 = vmul.f32 %v8180_v46, %v766_v13 }
 0x161   : > { %v673_v5 = vpop.f32.mrb[48].mxu0  ;;  %v2977_v35 = vor.u32 %v2976_v7, %v2973_v27  ;;  %v1517_v40 = vsel %vm1441_vm1, %v1512_v24, %v1516_v32  ;;  %v1518_v27 = vshrl.u32 %v8428_v25, 16 }
 0x162   : > { %v6200_v42 = vpack.c.bf16 %v1053_v30, %v1052_v33  ;;  %v674_v43 = vadd.f32 %v8221_v62, %v673_v5  ;;  %v6616_v29 = vpop.f32.mrb[49].mxu0  ;;  %6682 = vmatprep.mubr.bf16.mxu0 %v1517_v40 }
 0x163   : > { %v676_v34 = vpop.f32.mrb[50].mxu0  ;;  %v7661_v26 = vld [vmem:[#allocation2 + $0x50] sm:$0xff]   ;;  %v8441_v19 = vsel %vm2898_vm4, %v2968_v2, %v2977_v35 }
 0x164   : > { %6252 = vst [vmem:[#allocation2 + $0x58] sm:$0xff] %v6200_v42   ;;  %v767_v45 = vmax.f32 %v674_v43, 0.0  ;;  %v677_v46 = vadd.f32 %v8221_v62, %v676_v34  ;;  %v6617_v12 = vpop.f32.mrb[51].mxu0  ;;  %v2578_v31 = vrot.slane %v7661_v26, 1  ;;  %v8443_v23 = vld [vmem:[#allocation2 + $0x50] sm:$0xff]   ;;  %v2980_v6 = vshrl.u32 %v7661_v26, 16 }
 0x165   : > { %v2983_v13 = vshll.u32 %v7661_v26, 16  ;;  %v3387_v15 = vrot.slane %v7661_v26, 2  ;;  %v1522_v33 = vshll.u32 %v8443_v23, 16  ;;  %v1520_v43 = vor.u32 %v1518_v27, %v1516_v32 }
 0x166   : > { %v768_v58 = vmax.f32 %v677_v46, 0.0  ;;  %v2579_v8 = vsel %vm2097_vm2, %v2576_v18, %v2578_v31  ;;  %v2982_v30 = vrot.slane %v2980_v6, 1  ;;  %v1054_v7 = vmul.f32 %v8182_v47, %v767_v45 }
 0x167   : > { %6838 = vmatprep.mubr.bf16.mxu1 %v2579_v8  ;;  %v2985_v2 = vrot.slane %v2983_v13, 2  ;;  %v8451_v24 = vsel %vm3369_vm3, %v3385_v0, %v3387_v15  ;;  %v1524_v29 = vrot.slane %v1522_v33, 1 }
 0x168   : > { %v1055_v5 = vmul.f32 %v8184_v48, %v768_v58  ;;  %9482 = vst [vmem:[#allocation3_spill] sm:$0xff] %v8451_v24 }
 0x169   : > { %v681_v42 = vpop.f32.mrb[52].mxu0  ;;  %v2986_v26 = vor.u32 %v2985_v2, %v2982_v30  ;;  %v1525_v12 = vsel %vm1441_vm1, %v1520_v43, %v1524_v29 }
 0x16a   : > { %v6205_v34 = vpack.c.bf16 %v1055_v5, %v1054_v7  ;;  %v682_v18 = vadd.f32 %v8221_v62, %v681_v42  ;;  %v6620_v40 = vpop.f32.mrb[53].mxu0  ;;  %6683 = vmatmul.mubr.bf16.gmra.mrb[100].mxu0 %v1525_v12  ;;  %v1526_v7 = vshrl.u32 %v8443_v23, 16 }
 0x16b   : > { %v684_v46 = vpop.f32.mrb[54].mxu0  ;;  %v7664_v6 = vld [vmem:[#allocation2 + $0x58] sm:$0xff]   ;;  %v8457_v0 = vsel %vm2898_vm4, %v2977_v35, %v2986_v26 }
 0x16c   : > { %6253 = vst [vmem:[#allocation2 + $0x60] sm:$0xff] %v6205_v34   ;;  %v769_v47 = vmax.f32 %v682_v18, 0.0  ;;  %v685_v48 = vadd.f32 %v8221_v62, %v684_v46  ;;  %v6621_v45 = vpop.f32.mrb[55].mxu0  ;;  %v2580_v32 = vrot.slane %v7664_v6, 1  ;;  %v8459_v13 = vld [vmem:[#allocation2 + $0x58] sm:$0xff]   ;;  %v2989_v58 = vshrl.u32 %v7664_v6, 16 }
 0x16d   : > { %v2992_v8 = vshll.u32 %v7664_v6, 16  ;;  %v3389_v33 = vrot.slane %v7664_v6, 2  ;;  %v1530_v5 = vshll.u32 %v8459_v13, 16  ;;  %v1528_v40 = vor.u32 %v1526_v7, %v1524_v29 }
 0x16e   : > { %v770_v27 = vmax.f32 %v685_v48, 0.0  ;;  %v2581_v30 = vsel %vm2097_vm2, %v2578_v31, %v2580_v32  ;;  %v2991_v2 = vrot.slane %v2989_v58, 1  ;;  %v1056_v42 = vmul.f32 %v8186_v49, %v769_v47 }
 0x16f   : > { %6839 = vmatmul.mubr.bf16.gmra.mrb[16].mxu1 %v2581_v30  ;;  %v2994_v35 = vrot.slane %v2992_v8, 2  ;;  %v8467_v34 = vsel %vm3369_vm3, %v3387_v15, %v3389_v33  ;;  %v1532_v46 = vrot.slane %v1530_v5, 1 }
 0x170   : > { %v1057_v43 = vmul.f32 %v8188_v50, %v770_v27  ;;  %9483 = vst [vmem:[#allocation4_spill] sm:$0xff] %v8467_v34 }
 0x171   : > { %v689_v18 = vpop.f32.mrb[56].mxu0  ;;  %v2995_v48 = vor.u32 %v2994_v35, %v2991_v2  ;;  %v1533_v58 = vsel %vm1441_vm1, %v1528_v40, %v1532_v46 }
 0x172   : > { %v6210_v12 = vpack.c.bf16 %v1057_v43, %v1056_v42  ;;  %v690_v31 = vadd.f32 %v8221_v62, %v689_v18  ;;  %v6624_v6 = vpop.f32.mrb[57].mxu0  ;;  %6686 = vmatprep.mubr.bf16.mxu0 %v1533_v58  ;;  %v1534_v42 = vshrl.u32 %v8459_v13, 16 }
 0x173   : > { %v692_v45 = vpop.f32.mrb[58].mxu0  ;;  %v7666_v24 = vld [vmem:[#allocation2 + $0x60] sm:$0xff]   ;;  %v8473_v15 = vsel %vm2898_vm4, %v2986_v26, %v2995_v48 }
 0x174   : > { %6254 = vst [vmem:[#allocation2 + $0x68] sm:$0xff] %v6210_v12   ;;  %v771_v49 = vmax.f32 %v690_v31, 0.0  ;;  %v693_v50 = vadd.f32 %v8221_v62, %v692_v45  ;;  %v6625_v47 = vpop.f32.mrb[59].mxu0  ;;  %v2582_v29 = vrot.slane %v7666_v24, 1  ;;  %v8475_v8 = vld [vmem:[#allocation2 + $0x60] sm:$0xff]   ;;  %v2998_v27 = vshrl.u32 %v7666_v24, 16 }
 0x175   : > { %v3001_v30 = vshll.u32 %v7666_v24, 16  ;;  %v3391_v5 = vrot.slane %v7666_v24, 2  ;;  %v1538_v43 = vshll.u32 %v8475_v8, 16  ;;  %v1536_v31 = vor.u32 %v1534_v42, %v1532_v46 }
 0x176   : > { %v772_v7 = vmax.f32 %v693_v50, 0.0  ;;  %v2583_v2 = vsel %vm2097_vm2, %v2580_v32, %v2582_v29  ;;  %v3000_v35 = vrot.slane %v2998_v27, 1  ;;  %v1058_v62 = vmul.f32 %v8190_v51, %v771_v49  ;;  %v8488_v32 = vld [vmem:[%s9473_s3] ss:$0 sm:$0xff] }
 0x177   : > { %6842 = vmatprep.mubr.bf16.mxu1 %v2583_v2  ;;  %v3003_v26 = vrot.slane %v3001_v30, 2  ;;  %v8483_v40 = vsel %vm3369_vm3, %v3389_v33, %v3391_v5  ;;  %v1540_v6 = vrot.slane %v1538_v43, 1 }
 0x178   : > { %v1059_v18 = vmul.f32 %v8192_v1, %v772_v7  ;;  %9484 = vst [vmem:[#allocation5_spill] sm:$0xff] %v8483_v40 }
 0x179   : > { %v697_v12 = vpop.f32.mrb[60].mxu0  ;;  %v3004_v51 = vor.u32 %v3003_v26, %v3000_v35  ;;  %v1541_v1 = vsel %vm1441_vm1, %v1536_v31, %v1540_v6 }
 0x17a   : > { %v6215_v24 = vpack.c.bf16 %v1059_v18, %v1058_v62  ;;  %v698_v45 = vadd.f32 %v8488_v32, %v697_v12  ;;  %v6628_v58 = vpop.f32.mrb[61].mxu0  ;;  %6687 = vmatmul.mubr.bf16.gmra.mrb[104].mxu0 %v1541_v1  ;;  %v1542_v18 = vshrl.u32 %v8475_v8, 16 }
 0x17b   : > { %v700_v49 = vpop.f32.mrb[62].mxu0  ;;  %v7669_v50 = vld [vmem:[#allocation2 + $0x68] sm:$0xff]   ;;  %v8494_v27 = vsel %vm2898_vm4, %v2995_v48, %v3004_v51 }
 0x17c   : > { %6255 = vst [vmem:[#allocation2 + $0x70] sm:$0xff] %v6215_v24   ;;  %v773_v33 = vmax.f32 %v698_v45, 0.0  ;;  %v701_v47 = vadd.f32 %v8488_v32, %v700_v49  ;;  %v6629_v46 = vpop.f32.mrb[63].mxu0  ;;  %v2584_v30 = vrot.slane %v7669_v50, 1  ;;  %v8496_v7 = vld [vmem:[#allocation2 + $0x68] sm:$0xff]   ;;  %v3007_v2 = vshrl.u32 %v7669_v50, 16 }
 0x17d   : > { %v3010_v42 = vshll.u32 %v7669_v50, 16  ;;  %v3393_v43 = vrot.slane %v7669_v50, 2  ;;  %v1546_v26 = vshll.u32 %v8496_v7, 16  ;;  %v1544_v49 = vor.u32 %v1542_v18, %v1540_v6 }
 0x17e   : > { %v774_v35 = vmax.f32 %v701_v47, 0.0  ;;  %v2585_v62 = vsel %vm2097_vm2, %v2582_v29, %v2584_v30  ;;  %v3009_v12 = vrot.slane %v3007_v2, 1  ;;  %v1060_v31 = vmul.f32 %v8194_v52, %v773_v33 }
 0x17f   : > { %6843 = vmatmul.mubr.bf16.gmra.mrb[20].mxu1 %v2585_v62  ;;  %v3012_v48 = vrot.slane %v3010_v42, 2  ;;  %v8504_v45 = vsel %vm3369_vm3, %v3391_v5, %v3393_v43  ;;  %v1548_v1 = vrot.slane %v1546_v26, 1 }
 0x180   : > { %v1061_v24 = vmul.f32 %v8196_v53, %v774_v35  ;;  %9485 = vst [vmem:[#allocation6_spill] sm:$0xff] %v8504_v45 }
 0x181   : > { %v705_v58 = vpop.f32.mrb[64].mxu0  ;;  %v3013_v46 = vor.u32 %v3012_v48, %v3009_v12  ;;  %v1549_v2 = vsel %vm1441_vm1, %v1544_v49, %v1548_v1 }
 0x182   : > { %v6220_v50 = vpack.c.bf16 %v1061_v24, %v1060_v31  ;;  %v706_v29 = vadd.f32 %v8488_v32, %v705_v58  ;;  %v6632_v47 = vpop.f32.mrb[65].mxu0  ;;  %6690 = vmatprep.mubr.bf16.mxu0 %v1549_v2  ;;  %v1550_v31 = vshrl.u32 %v8496_v7, 16 }
 0x183   : > { %v708_v40 = vpop.f32.mrb[66].mxu0  ;;  %v7672_v34 = vld [vmem:[#allocation2 + $0x70] sm:$0xff]   ;;  %v8510_v5 = vsel %vm2898_vm4, %v3004_v51, %v3013_v46 }
 0x184   : > { %6256 = vst [vmem:[#allocation2 + $0x78] sm:$0xff] %v6220_v50   ;;  %v775_v52 = vmax.f32 %v706_v29, 0.0  ;;  %v709_v53 = vadd.f32 %v8488_v32, %v708_v40  ;;  %v6633_v33 = vpop.f32.mrb[67].mxu0  ;;  %v2586_v6 = vrot.slane %v7672_v34, 1  ;;  %v8512_v42 = vld [vmem:[#allocation2 + $0x70] sm:$0xff]   ;;  %v3016_v35 = vshrl.u32 %v7672_v34, 16 }
 0x185   : > { %v3019_v62 = vshll.u32 %v7672_v34, 16  ;;  %v3395_v18 = vrot.slane %v7672_v34, 2  ;;  %v1554_v24 = vshll.u32 %v8512_v42, 16  ;;  %v1552_v29 = vor.u32 %v1550_v31, %v1548_v1 }
 0x186   : > { %v776_v26 = vmax.f32 %v709_v53, 0.0  ;;  %v2587_v12 = vsel %vm2097_vm2, %v2584_v30, %v2586_v6  ;;  %v3018_v48 = vrot.slane %v3016_v35, 1  ;;  %v1062_v40 = vmul.f32 %v8198_v54, %v775_v52 }
 0x187   : > { %6846 = vmatprep.mubr.bf16.mxu1 %v2587_v12  ;;  %v3021_v51 = vrot.slane %v3019_v62, 2  ;;  %v8520_v49 = vsel %vm3369_vm3, %v3393_v43, %v3395_v18  ;;  %v1556_v34 = vrot.slane %v1554_v24, 1 }
 0x188   : > { %v1063_v58 = vmul.f32 %v8200_v55, %v776_v26  ;;  %9486 = vst [vmem:[#allocation7_spill] sm:$0xff] %v8520_v49 }
 0x189   : > { %v713_v50 = vpop.f32.mrb[68].mxu0  ;;  %v3022_v53 = vor.u32 %v3021_v51, %v3018_v48  ;;  %v1557_v35 = vsel %vm1441_vm1, %v1552_v29, %v1556_v34 }
 0x18a   : > { %v6225_v47 = vpack.c.bf16 %v1063_v58, %v1062_v40  ;;  %v714_v30 = vadd.f32 %v8488_v32, %v713_v50  ;;  %v6636_v2 = vpop.f32.mrb[69].mxu0  ;;  %6691 = vmatmul.mubr.bf16.gmra.mrb[108].mxu0 %v1557_v35  ;;  %v1558_v40 = vshrl.u32 %v8512_v42, 16 }
 0x18b   : > { %v716_v33 = vpop.f32.mrb[70].mxu0  ;;  %v7675_v45 = vld [vmem:[#allocation2 + $0x78] sm:$0xff]   ;;  %v8526_v43 = vsel %vm2898_vm4, %v3013_v46, %v3022_v53 }
 0x18c   : > { %6257 = vst [vmem:[#allocation2 + $0x80] sm:$0xff] %v6225_v47   ;;  %v777_v54 = vmax.f32 %v714_v30, 0.0  ;;  %v717_v55 = vadd.f32 %v8488_v32, %v716_v33  ;;  %v6637_v52 = vpop.f32.mrb[71].mxu0  ;;  %v2588_v1 = vrot.slane %v7675_v45, 1  ;;  %v8528_v62 = vld [vmem:[#allocation2 + $0x78] sm:$0xff]   ;;  %v3025_v26 = vshrl.u32 %v7675_v45, 16 }
 0x18d   : > { %v3028_v12 = vshll.u32 %v7675_v45, 16  ;;  %v3397_v31 = vrot.slane %v7675_v45, 2  ;;  %v1562_v58 = vshll.u32 %v8528_v62, 16  ;;  %v1560_v2 = vor.u32 %v1558_v40, %v1556_v34 }
 0x18e   : > { %v778_v24 = vmax.f32 %v717_v55, 0.0  ;;  %v2589_v48 = vsel %vm2097_vm2, %v2586_v6, %v2588_v1  ;;  %v3027_v51 = vrot.slane %v3025_v26, 1  ;;  %v1064_v50 = vmul.f32 %v8202_v56, %v777_v54 }
 0x18f   : > { %6847 = vmatmul.mubr.bf16.gmra.mrb[24].mxu1 %v2589_v48  ;;  %v3030_v46 = vrot.slane %v3028_v12, 2  ;;  %v8536_v47 = vsel %vm3369_vm3, %v3395_v18, %v3397_v31  ;;  %v1564_v45 = vrot.slane %v1562_v58, 1 }
 0x190   : > { %v1065_v29 = vmul.f32 %v8204_v57, %v778_v24  ;;  %9487 = vst [vmem:[#allocation8_spill] sm:$0xff] %v8536_v47 }
 0x191   : > { %v721_v30 = vpop.f32.mrb[72].mxu0  ;;  %v3031_v55 = vor.u32 %v3030_v46, %v3027_v51  ;;  %v1565_v26 = vsel %vm1441_vm1, %v1560_v2, %v1564_v45 }
 0x192   : > { %v6230_v33 = vpack.c.bf16 %v1065_v29, %v1064_v50  ;;  %v722_v6 = vadd.f32 %v8488_v32, %v721_v30  ;;  %v6640_v35 = vpop.f32.mrb[73].mxu0  ;;  %6694 = vmatprep.mubr.bf16.mxu0 %v1565_v26  ;;  %v1566_v50 = vshrl.u32 %v8528_v62, 16 }
 0x193   : > { %v724_v52 = vpop.f32.mrb[74].mxu0  ;;  %v7680_v49 = vld [vmem:[#allocation2 + $0x80] sm:$0xff]   ;;  %v8542_v18 = vsel %vm2898_vm4, %v3022_v53, %v3031_v55 }
 0x194   : > { %6258 = vst [vmem:[#allocation2 + $0x88] sm:$0xff] %v6230_v33   ;;  %v779_v56 = vmax.f32 %v722_v6, 0.0  ;;  %v725_v57 = vadd.f32 %v8488_v32, %v724_v52  ;;  %v6641_v54 = vpop.f32.mrb[75].mxu0  ;;  %v2590_v34 = vrot.slane %v7680_v49, 1  ;;  %v8544_v12 = vld [vmem:[#allocation2 + $0x80] sm:$0xff]   ;;  %v3034_v24 = vshrl.u32 %v7680_v49, 16 }
 0x195   : > { %v3037_v48 = vshll.u32 %v7680_v49, 16  ;;  %v3399_v40 = vrot.slane %v7680_v49, 2  ;;  %v1570_v29 = vshll.u32 %v8544_v12, 16  ;;  %v1568_v35 = vor.u32 %v1566_v50, %v1564_v45 }
 0x196   : > { %v780_v58 = vmax.f32 %v725_v57, 0.0  ;;  %v2591_v51 = vsel %vm2097_vm2, %v2588_v1, %v2590_v34  ;;  %v3036_v46 = vrot.slane %v3034_v24, 1  ;;  %v1066_v30 = vmul.f32 %v8212_v59, %v779_v56 }
 0x197   : > { %6850 = vmatprep.mubr.bf16.mxu1 %v2591_v51  ;;  %v3039_v53 = vrot.slane %v3037_v48, 2  ;;  %v8552_v33 = vsel %vm3369_vm3, %v3397_v31, %v3399_v40  ;;  %v1572_v49 = vrot.slane %v1570_v29, 1 }
 0x198   : > { %v1067_v2 = vmul.f32 %v8214_v60, %v780_v58  ;;  %9488 = vst [vmem:[#allocation9_spill] sm:$0xff] %v8552_v33 }
 0x199   : > { %v729_v6 = vpop.f32.mrb[76].mxu0  ;;  %v3040_v57 = vor.u32 %v3039_v53, %v3036_v46  ;;  %v1573_v24 = vsel %vm1441_vm1, %v1568_v35, %v1572_v49 }
 0x19a   : > { %v6235_v52 = vpack.c.bf16 %v1067_v2, %v1066_v30  ;;  %v730_v1 = vadd.f32 %v8488_v32, %v729_v6  ;;  %v6644_v26 = vpop.f32.mrb[77].mxu0  ;;  %6695 = vmatmul.mubr.bf16.gmra.mrb[112].mxu0 %v1573_v24  ;;  %v1574_v30 = vshrl.u32 %v8544_v12, 16 }
 0x19b   : > { %v732_v54 = vpop.f32.mrb[78].mxu0  ;;  %v7685_v47 = vld [vmem:[#allocation2 + $0x88] sm:$0xff]   ;;  %v8558_v31 = vsel %vm2898_vm4, %v3031_v55, %v3040_v57 }
 0x19c   : > { %6259 = vst [vmem:[#allocation2 + $0x90] sm:$0xff] %v6235_v52   ;;  %v781_v59 = vmax.f32 %v730_v1, 0.0  ;;  %v733_v60 = vadd.f32 %v8488_v32, %v732_v54  ;;  %v6645_v56 = vpop.f32.mrb[79].mxu0  ;;  %v2592_v45 = vrot.slane %v7685_v47, 1  ;;  %v8560_v48 = vld [vmem:[#allocation2 + $0x88] sm:$0xff]   ;;  %v3043_v58 = vshrl.u32 %v7685_v47, 16 }
 0x19d   : > { %v3046_v51 = vshll.u32 %v7685_v47, 16  ;;  %v3401_v50 = vrot.slane %v7685_v47, 2  ;;  %v1578_v2 = vshll.u32 %v8560_v48, 16  ;;  %v1576_v26 = vor.u32 %v1574_v30, %v1572_v49 }
 0x19e   : > { %v782_v29 = vmax.f32 %v733_v60, 0.0  ;;  %v2593_v46 = vsel %vm2097_vm2, %v2590_v34, %v2592_v45  ;;  %v3045_v53 = vrot.slane %v3043_v58, 1  ;;  %v1068_v6 = vmul.f32 %v8216_v61, %v781_v59  ;;  %v1028_v59 = vpop.permute.xlu0 %1027 }
 0x19f   : > { %6851 = vmatmul.mubr.bf16.gmra.mrb[28].mxu1 %v2593_v46  ;;  %v3048_v55 = vrot.slane %v3046_v51, 2  ;;  %v8568_v52 = vsel %vm3369_vm3, %v3399_v40, %v3401_v50  ;;  %v1580_v47 = vrot.slane %v1578_v2, 1  ;;  %v1582_v2 = vshrl.u32 %v8560_v48, 16 }
 0x1a0   : > { %v1069_v35 = vmul.f32 %v8223_v63, %v782_v29  ;;  %9489 = vst [vmem:[#allocation10_spill] sm:$0xff] %v8568_v52 }
 0x1a1   : > { %v737_v1 = vpop.f32.mrb[80].mxu0  ;;  %v3049_v24 = vor.u32 %v3048_v55, %v3045_v53  ;;  %v1581_v56 = vsel %vm1441_vm1, %v1576_v26, %v1580_v47 }
 0x1a2   : > { %v6240_v54 = vpack.c.bf16 %v1069_v35, %v1068_v6  ;;  %v738_v34 = vadd.f32 %v8488_v32, %v737_v1  ;;  %v6648_v60 = vpop.f32.mrb[81].mxu0  ;;  %6698 = vmatprep.mubr.bf16.mxu0 %v1581_v56  ;;  %v1584_v1 = vor.u32 %v1582_v2, %v1580_v47  ;;  %v8594_v47 = vld [vmem:[#allocation2 + $0x70] sm:$0xff]  }
 0x1a3   : > { %v7690_v58 = vld [vmem:[#allocation2 + $0x90] sm:$0xff]   ;;  %v740_v33 = vpop.f32.mrb[82].mxu0  ;;  %v8575_v40 = vsel %vm2898_vm4, %v3040_v57, %v3049_v24 }
 0x1a4   : > { %6260 = vst [vmem:[#allocation2 + $0x98] sm:$0xff] %v6240_v54   ;;  %v783_v61 = vmax.f32 %v738_v34, 0.0  ;;  %v8572_v63 = vld [vmem:[#allocation2 + $0x90] ss:$0 sps:$4 sm:$0x11]   ;;  %v2594_v49 = vrot.slane %v7690_v58, 1 }
 0x1a5   : > { %9490 = vst [vmem:[#allocation11_spill] sm:$0xff] %v8572_v63  ;;  %v3052_v51 = vshrl.u32 %v7690_v58, 16  ;;  %v3055_v29 = vshll.u32 %v7690_v58, 16  ;;  %v3403_v46 = vrot.slane %v7690_v58, 2  ;;  %v6649_v32 = vpop.f32.mrb[83].mxu0  ;;  %v1586_v53 = vshll.u32 %v8572_v63, 16 }
 0x1a6   : > { %v1070_v30 = vmul.f32 %v1028_v59, %v783_v61  ;;  %v2595_v33 = vsel %vm2097_vm2, %v2592_v45, %v2594_v49  ;;  %v4279_v32 = vshrl.u32 %v8594_v47, 16 }
 0x1a7   : > { %v3054_v6 = vrot.slane %v3052_v51, 1  ;;  %v3057_v35 = vrot.slane %v3055_v29, 2  ;;  %v8581_v55 = vsel %vm3369_vm3, %v3401_v50, %v3403_v46  ;;  %6854 = vmatprep.mubr.bf16.mxu1 %v2595_v33  ;;  %v1588_v26 = vrot.slane %v1586_v53, 1  ;;  %v8606_v51 = vld [vmem:[#allocation2 + $0x80] sm:$0xff]   ;;  %v8608_v29 = vld [vmem:[#allocation2 + $0x88] sm:$0xff]  }
 0x1a8   : > { %9491 = vst [vmem:[#allocation12_spill] sm:$0xff] %v8581_v55  ;;  %v6141_v57 = vpack.c.bf16 %v1070_v30, %v1070_v30  ;;  %v8611_v30 = vld [vmem:[#allocation2 + $0x8] sm:$0xff]   ;;  %v4281_v2 = vrot.slane %v4279_v32, 2 }
 0x1a9   : > { %v8583_v54 = vor.u32 %v3057_v35, %v3054_v6  ;;  %v1589_v34 = vsel %vm1441_vm1, %v1584_v1, %v1588_v26  ;;  %v7697_v35 = vld [vmem:[%s9474_s4 + $0x148] sm:$0xff]   ;;  %v4300_v26 = vshll.u32 %v8606_v51, 16 }
 0x1aa   : > { %1276 = vst [vmem:[#allocation2 + $0xa0] sm:$0x3] %v6141_v57  ;;  %6699 = vmatmul.mubr.bf16.gmra.mrb[116].mxu0 %v1589_v34  ;;  %v7703_v57 = vld [vmem:[%s9474_s4 + $0x90] sm:$0xff]   ;;  %v4306_v34 = vshrl.u32 %v8608_v29, 16 }
 0x1ab   : > { %v7695_v60 = vld [vmem:[#allocation2 + $0x98] ss:$0 sps:$4 sm:$0x11]   ;;  %v8588_v56 = vsel %vm2898_vm4, %v3049_v24, %v8583_v54  ;;  %6718 = vmatprep.mubr.bf16.mxu0 %v8238_v14  ;;  %v7702_v24 = vld [vmem:[%s9474_s4 + $0x88] sm:$0xff]   ;;  %v4302_v32 = vrot.slane %v4300_v26, 3 }
 0x1ac   : > { %v8591_v45 = vld [vmem:[#allocation2 + $0x98] ss:$0 sps:$4 sm:$0x33]   ;;  %v2596_v50 = vrot.slane %v7695_v60, 1 }
 0x1ad   : > { %v3405_v58 = vrot.slane %v8591_v45, 2  ;;  %v8604_v14 = vld [vmem:[#allocation2 + $0x78] sm:$0xff]  }
 0x1ae   : > { %v2597_v61 = vsel %vm2097_vm2, %v2594_v49, %v2596_v50  ;;  %v4282_v49 = vshll.u32 %v8594_v47, 16  ;;  %v4288_v33 = vshrl.u32 %v8604_v14, 16  ;;  %v4291_v6 = vshll.u32 %v8604_v14, 16  ;;  %v8629_v1 = vld [vmem:[#allocation2 + $0x98] sm:$0xff]  }
 0x1af   : > { %6855 = vmatmul.mubr.bf16.gmra.mrb[32].mxu1 %v2597_v61  ;;  %v8598_v59 = vsel %vm3369_vm3, %v3403_v46, %v3405_v58  ;;  %v8615_v46 = vld [vmem:[#allocation2 + $0x10] sm:$0xff]   ;;  %v4309_v58 = vshll.u32 %v8608_v29, 16  ;;  %v8650_v26 = vld [vmem:[#allocation2 + $0x18] sm:$0xff]  }
 0x1b0   : > { %9492 = vst [vmem:[#allocation13_spill] sm:$0xff] %v8598_v59  ;;  %6874 = vmatprep.mubr.bf16.mxu1 %v8267_v9  ;;  %v8619_v9 = vld [vmem:[#allocation2 + $0x90] sm:$0xff]   ;;  %v4284_v53 = vrot.slane %v4282_v49, 3  ;;  %v4290_v60 = vrot.slane %v4288_v33, 2  ;;  %v4293_v50 = vrot.slane %v4291_v6, 3  ;;  %v4308_v49 = vrot.slane %v4306_v34, 2 }
 0x1b1   : > { %v7705_v59 = vld [vmem:[%s9474_s4 + $0x98] sm:$0xff]   ;;  %v4311_v6 = vrot.slane %v4309_v58, 3  ;;  %v4315_v52 = vshrl.u32 %v8619_v9, 16 }
 0x1b2   : > { %6719 = vmatmul.mubr.bf16.vlgmr.msra.gmra.mrb[84].mxu0 %v8611_v30  ;;  %v8641_v55 = vor.u32 %v4284_v53, %v4281_v2  ;;  %v4294_v33 = vor.u32 %v4293_v50, %v4290_v60  ;;  %v8657_v60 = vld [vmem:[#allocation2 + $0x20] sm:$0xff]  }
 0x1b3   : > { %6722 = vmatprep.mubr.bf16.mxu0 %v8615_v46  ;;  %6755 = vmatpush3.bf16.msra.mxu0 %v8420_v17  ;;  %v4297_v17 = vshrl.u32 %v8606_v51, 16  ;;  %v4312_v53 = vor.u32 %v4311_v6, %v4308_v49  ;;  %v4317_v34 = vrot.slane %v4315_v52, 2  ;;  %v7699_v52 = vld [vmem:[%s9474_s4 + $0x158] sm:$0xff]  }
 0x1b4   : > { %6756 = vmatprep.subr.bf16.mxu0 %v7702_v24  ;;  %v8655_v2 = vsel %vm4170_vm5, %v8641_v55, %v4294_v33 }
 0x1b5   : > { %v4299_v61 = vrot.slane %v4297_v17, 2  ;;  %v4327_v17 = vshll.u32 %v8629_v1, 16 }
 0x1b7   : > { %6875 = vmatmul.mubr.bf16.vlgmr.msra.gmra.mrb[0].mxu1 %v8302_v11  ;;  %6757 = vmatpush3.bf16.msra.mxu0 %v7702_v24  ;;  %v7698_v11 = vld [vmem:[%s9474_s4 + $0x150] sm:$0xff]   ;;  %v4303_v24 = vor.u32 %v4302_v32, %v4299_v61  ;;  %v4329_v32 = vrot.slane %v4327_v17, 3  ;;  %v4671_v17 = vrot.slane %v8608_v29, 3 }
 0x1b8   : > { %6911 = vmatpush3.bf16.msra.mxu1 %v8390_v37  ;;  %6878 = vmatprep.mubr.bf16.mxu1 %v8336_v20  ;;  %v4318_v37 = vshll.u32 %v8619_v9, 16  ;;  %v4324_v20 = vshrl.u32 %v8629_v1, 16 }
 0x1b9   : > { %6912 = vmatprep.subr.bf16.mxu1 %v7697_v35  ;;  %6758 = vmatprep.subr.bf16.mxu0 %v7703_v57  ;;  %v8661_v50 = vsel %vm4170_vm5, %v4294_v33, %v4303_v24  ;;  %v8664_v63 = vsel %vm4170_vm5, %v4303_v24, %v4312_v53  ;;  %v7708_v24 = vld [vmem:[%s9474_s4 + $0xa8] sm:$0xff]  }
 0x1ba   : > { %6723 = vmatmul.mubr.bf16.gmra.mrb[88].mxu0 %v8650_v26  ;;  %v4320_v58 = vrot.slane %v4318_v37, 3  ;;  %v4326_v61 = vrot.slane %v4324_v20, 2  ;;  %v8692_v37 = vld [vmem:[#allocation2 + $0x30] sm:$0xff]   ;;  %v4669_v20 = vrot.slane %v8606_v51, 3 }
 0x1bb   : > { %6726 = vmatprep.mubr.bf16.mxu0 %v8657_v60  ;;  %6759 = vmatpush3.bf16.msra.mxu0 %v7703_v57  ;;  %v7706_v57 = vld [vmem:[%s9474_s4 + $0xa0] sm:$0xff]  }
 0x1bc   : > { %6913 = vmatpush3.bf16.msra.mxu1 %v7697_v35  ;;  %6760 = vmatprep.subr.bf16.mxu0 %v7705_v59  ;;  %v4321_v49 = vor.u32 %v4320_v58, %v4317_v34  ;;  %v8672_v33 = vor.u32 %v4329_v32, %v4326_v61  ;;  %v7709_v34 = vld [vmem:[%s9474_s4 + $0xb0] sm:$0xff]   ;;  %v7763_v58 = vld [vmem:[#allocation2 + $0xa0] ss:$0 sps:$4 sm:$0x77]   ;;  %v4673_v32 = vrot.slane %v8619_v9, 3 }
 0x1bd   : > { %6914 = vmatprep.subr.bf16.mxu1 %v7698_v11 }
 0x1be   : > { %9493 = vst [vmem:[#allocation14_spill] sm:$0xff] %v8672_v33  ;;  %v8676_v35 = vsel %vm4170_vm5, %v4312_v53, %v4321_v49  ;;  %v8680_v6 = vsel %vm4170_vm5, %v4321_v49, %v8672_v33  ;;  %v7704_v53 = vld [vmem:[%s9474_s4 + $0x168] sm:$0xff]   ;;  %v4675_v49 = vrot.slane %v8629_v1, 3  ;;  %v8720_v33 = vsel %vm4641_vm6, %v4671_v17, %v4673_v32 }
 0x1bf   : > { %6879 = vmatmul.mubr.bf16.gmra.mrb[4].mxu1 %v8370_v22  ;;  %6761 = vmatpush3.bf16.msra.mxu0 %v7705_v59  ;;  %v7701_v22 = vld [vmem:[%s9474_s4 + $0x160] sm:$0xff]   ;;  %v8689_v59 = vld [vmem:[#allocation2 + $0x28] sm:$0xff]  }
 0x1c0   : > { %6882 = vmatprep.mubr.bf16.mxu1 %v8395_v44  ;;  %6915 = vmatpush3.bf16.msra.mxu1 %v7698_v11  ;;  %v9481_v44 = vrot.slane %v8594_v47, 3  ;;  %v4667_v11 = vrot.slane %v8604_v14, 3 }
 0x1c1   : > { %6916 = vmatprep.subr.bf16.mxu1 %v7699_v52  ;;  %6762 = vmatprep.subr.bf16.mxu0 %v7706_v57 }
 0x1c2   : > { %6727 = vmatmul.mubr.bf16.gmra.mrb[92].mxu0 %v8689_v59  ;;  %v8708_v61 = vsel %vm4641_vm6, %v9481_v44, %v4667_v11  ;;  %v7711_v44 = vld [vmem:[%s9474_s4 + $0xb8] sm:$0xff]  }
 0x1c3   : > { %6730 = vmatprep.mubr.bf16.mxu0 %v8692_v37  ;;  %6763 = vmatpush3.bf16.msra.mxu0 %v7706_v57  ;;  %v8715_v57 = vsel %vm4641_vm6, %v4669_v20, %v4671_v17  ;;  %v7712_v17 = vld [vmem:[%s9474_s4 + $0x178] sm:$0xff]  }
 0x1c4   : > { %6917 = vmatpush3.bf16.msra.mxu1 %v7699_v52  ;;  %6764 = vmatprep.subr.bf16.mxu0 %v7708_v24  ;;  %v8712_v52 = vsel %vm4641_vm6, %v4667_v11, %v4669_v20  ;;  %v8727_v11 = vsel %vm4641_vm6, %v4673_v32, %v4675_v49  ;;  %v7707_v20 = vld [vmem:[%s9474_s4 + $0x170] sm:$0xff]   ;;  %v2107_v32 = vrot.slane %v8689_v59, 1 }
 0x1c5   : > { %6918 = vmatprep.subr.bf16.mxu1 %v7701_v22 }
 0x1c7   : > { %6883 = vmatmul.mubr.bf16.gmra.mrb[8].mxu1 %v8408_v36  ;;  %6765 = vmatpush3.bf16.msra.mxu0 %v7708_v24  ;;  %v4677_v36 = vrot.slane %v7763_v58, 3  ;;  %v8732_v24 = vld [vmem:[#allocation2 + $0x38] sm:$0xff]   ;;  %v2105_v58 = vrot.slane %v8657_v60, 1  ;;  %v2109_v60 = vrot.slane %v8692_v37, 1 }
 0x1c8   : > { %6886 = vmatprep.mubr.bf16.mxu1 %v8425_v41  ;;  %6919 = vmatpush3.bf16.msra.mxu1 %v7701_v22  ;;  %v8735_v41 = vld [vmem:[#allocation2 + $0x40] sm:$0xff]  }
 0x1c9   : > { %6920 = vmatprep.subr.bf16.mxu1 %v7704_v53  ;;  %6766 = vmatprep.subr.bf16.mxu0 %v7709_v34  ;;  %v8739_v22 = vsel %vm4641_vm6, %v4675_v49, %v4677_v36  ;;  %v2110_v59 = vsel %vm2097_vm2, %v2107_v32, %v2109_v60  ;;  %v7719_v49 = vld [vmem:[%s9474_s4 + $0x1a0] sm:$0xff]  }
 0x1ca   : > { %6731 = vmatmul.mubr.bf16.gmra.mrb[96].mxu0 %v8732_v24 }
 0x1cb   : > { %6734 = vmatprep.mubr.bf16.mxu0 %v8735_v41  ;;  %6767 = vmatpush3.bf16.msra.mxu0 %v7709_v34  ;;  %v7715_v34 = vld [vmem:[%s9474_s4 + $0x180] sm:$0xff]  }
 0x1cc   : > { %6921 = vmatpush3.bf16.msra.mxu1 %v7704_v53  ;;  %6768 = vmatprep.subr.bf16.mxu0 %v7711_v44 }
 0x1cd   : > { %6922 = vmatprep.subr.bf16.mxu1 %v7707_v20 }
 0x1cf   : > { %6887 = vmatmul.mubr.bf16.gmra.mrb[12].mxu1 %v8441_v19  ;;  %6769 = vmatpush3.bf16.msra.mxu0 %v7711_v44  ;;  %v3061_v19 = vshrl.u32 %v8591_v45, 16 }
 0x1d0   : > { %6890 = vmatprep.mubr.bf16.mxu1 %v8457_v0  ;;  %6923 = vmatpush3.bf16.msra.mxu1 %v7707_v20  ;;  %v7796_v0 = vld [vmem:[#allocation2 + $0x4] sm:$0xf]  ;;  %v2113_v20 = vrot.slane %v8735_v41, 1 }
 0x1d1   : > { %6924 = vmatprep.subr.bf16.mxu1 %v7712_v17 }
 0x1d2   : > { %6735 = vmatmul.mubr.bf16.gmra.mrb[100].mxu0 %v8428_v25  ;;  %v2076_v25 = vld [vmem:[#allocation2] sm:$0xe] }
 0x1d3   : > { %6738 = vmatprep.mubr.bf16.mxu0 %v8443_v23  ;;  %v3064_v23 = vshll.u32 %v8591_v45, 16  ;;  %v2101_v45 = vrot.slane %v8615_v46, 1  ;;  %v7716_v46 = vld [vmem:[%s9474_s4 + $0x188] sm:$0xff]  }
 0x1d4   : > { %6925 = vmatpush3.bf16.msra.mxu1 %v7712_v17  ;;  %v7721_v17 = vld [vmem:[%s9474_s4 + $0x1b0] sm:$0xff]  }
 0x1d5   : > { %6962 = vmatprep.subr.bf16.mxu1 %v7715_v34 }
 0x1d7   : > { %6891 = vmatmul.mubr.bf16.gmra.mrb[16].mxu1 %v8473_v15  ;;  %v5875_v15 = vcombine.low %v2076_v25, %v7796_v0  ;;  %v8822_v0 = vld [vmem:[%s9474_s4 + $0x1c0] sm:$0xff]  }
 0x1d8   : > { %6894 = vmatprep.mubr.bf16.mxu1 %v8494_v27  ;;  %v2099_v27 = vrot.slane %v8611_v30, 1  ;;  %v2103_v30 = vrot.slane %v8650_v26, 1  ;;  %v2108_v26 = vsel %vm2097_vm2, %v2105_v58, %v2107_v32 }
 0x1da   : > { %6739 = vmatmul.mubr.bf16.gmra.mrb[104].mxu0 %v8459_v13 }
 0x1db   : > { %6742 = vmatprep.mubr.bf16.mxu0 %v8475_v8 }
 0x1df   : > { %6895 = vmatmul.mubr.bf16.gmra.mrb[20].mxu1 %v8510_v5  ;;  %v3063_v5 = vrot.slane %v3061_v19, 1  ;;  %v9494_v19 = vld [vmem:[#allocation3_spill] sm:$0xff] }
 0x1e0   : > { %6898 = vmatprep.mubr.bf16.mxu1 %v8526_v43  ;;  %v3066_v43 = vrot.slane %v3064_v23, 2 }
 0x1e2   : > { %6743 = vmatmul.mubr.bf16.gmra.mrb[108].mxu0 %v8496_v7  ;;  %v3067_v44 = vor.u32 %v3066_v43, %v3063_v5  ;;  %v9496_v5 = vld [vmem:[#allocation5_spill] sm:$0xff]  ;;  %v8833_v43 = vld [vmem:[%s9476_s6] sm:$0xff]  }
 0x1e3   : > { %6746 = vmatprep.mubr.bf16.mxu0 %v8512_v42  ;;  %7118 = vmatprep.subr.bf16.mxu0 %v8833_v43 }
 0x1e4   : > { %v3068_v53 = vsel %vm2898_vm4, %v8583_v54, %v3067_v44  ;;  %v7717_v54 = vld [vmem:[%s9474_s4 + $0x190] sm:$0xff]   ;;  %v9497_v44 = vld [vmem:[#allocation6_spill] sm:$0xff] }
 0x1e7   : > { %6899 = vmatmul.mubr.bf16.gmra.mrb[24].mxu1 %v8542_v18  ;;  %v2098_v18 = vrot.slane %v5875_v15, 1 }
 0x1e8   : > { %6902 = vmatprep.mubr.bf16.mxu1 %v8558_v31 }
 0x1e9   : > { %v2100_v31 = vsel %vm2097_vm2, %v2098_v18, %v2099_v27 }
 0x1ea   : > { %6747 = vmatmul.mubr.bf16.gmra.mrb[112].mxu0 %v8528_v62 }
 0x1eb   : > { %6750 = vmatprep.mubr.bf16.mxu0 %v8544_v12 }
 0x1ef   : > { %6903 = vmatmul.mubr.bf16.gmra.mrb[28].mxu1 %v8575_v40  ;;  %v2102_v40 = vsel %vm2097_vm2, %v2099_v27, %v2101_v45  ;;  %v9495_v27 = vld [vmem:[#allocation4_spill] sm:$0xff] }
 0x1f0   : > { %6906 = vmatprep.mubr.bf16.mxu1 %v8588_v56  ;;  %v2104_v56 = vsel %vm2097_vm2, %v2101_v45, %v2103_v30  ;;  %v9498_v45 = vld [vmem:[#allocation7_spill] sm:$0xff] }
 0x1f2   : > { %6751 = vmatmul.mubr.bf16.gmra.mrb[116].mxu0 %v8560_v48 }
 0x1f3   : > { %6770 = vmatprep.mubr.bf16.mxu0 %v2100_v31 }
 0x1f7   : > { %6907 = vmatmul.mubr.bf16.gmra.mrb[32].mxu1 %v3068_v53  ;;  %v8846_v53 = vld [vmem:[%s9476_s6 + $0x8] sm:$0xff]  }
 0x1f8   : > { %6926 = vmatprep.mubr.bf16.mxu1 %v8256_v21  ;;  %v2106_v21 = vsel %vm2097_vm2, %v2103_v30, %v2105_v58  ;;  %v9500_v58 = vld [vmem:[#allocation9_spill] sm:$0xff] }
 0x1fa   : > { %6771 = vmatmul.mubr.bf16.vlgmr.msra.gmra.mrb[84].mxu0 %v2102_v40 }
 0x1fb   : > { %6774 = vmatprep.mubr.bf16.mxu0 %v2104_v56  ;;  %7119 = vmatpush3.bf16.msra.mxu0 %v8833_v43  ;;  %v9499_v56 = vld [vmem:[#allocation8_spill] sm:$0xff] }
 0x1fc   : > { %7120 = vmatprep.subr.bf16.mxu0 %v8846_v53 }
 0x1ff   : > { %6927 = vmatmul.mubr.bf16.vlgmr.msra.gmra.mrb[0].mxu1 %v8287_v16  ;;  %v7718_v16 = vld [vmem:[%s9474_s4 + $0x198] sm:$0xff]   ;;  %7121 = vmatpush3.bf16.msra.mxu0 %v8846_v53 }
 0x200   : > { %6963 = vmatpush3.bf16.msra.mxu1 %v7715_v34  ;;  %6930 = vmatprep.mubr.bf16.mxu1 %v8322_v39  ;;  %v2111_v39 = vrot.slane %v8732_v24, 1  ;;  %v7798_v34 = vld [vmem:[#allocation2 + $0x50] sm:$0xff]  }
 0x201   : > { %6964 = vmatprep.subr.bf16.mxu1 %v7716_v46  ;;  %v2117_v25 = vrot.slane %v7798_v34, 1 }
 0x202   : > { %6775 = vmatmul.mubr.bf16.gmra.mrb[88].mxu0 %v2106_v21  ;;  %v2112_v37 = vsel %vm2097_vm2, %v2109_v60, %v2111_v39  ;;  %v2114_v24 = vsel %vm2097_vm2, %v2111_v39, %v2113_v20  ;;  %v9502_v60 = vld [vmem:[#allocation10_spill] sm:$0xff]  ;;  %v9503_v39 = vld [vmem:[#allocation12_spill] sm:$0xff] }
 0x203   : > { %6778 = vmatprep.mubr.bf16.mxu0 %v2108_v26  ;;  %v8866_v26 = vld [vmem:[#allocation2 + $0x14] sm:$0xf] }
 0x204   : > { %6965 = vmatpush3.bf16.msra.mxu1 %v7716_v46  ;;  %v8859_v46 = vld [vmem:[%s9476_s6 + $0x10] sm:$0xff]  }
 0x205   : > { %6966 = vmatprep.subr.bf16.mxu1 %v7717_v54  ;;  %7122 = vmatprep.subr.bf16.mxu0 %v8859_v46 }
 0x206   : > { %7123 = vmatpush3.bf16.msra.mxu0 %v8859_v46 }
 0x207   : > { %6931 = vmatmul.mubr.bf16.gmra.mrb[4].mxu1 %v8356_v10  ;;  %v7720_v10 = vld [vmem:[%s9474_s4 + $0x1a8] sm:$0xff]  }
 0x208   : > { %6934 = vmatprep.mubr.bf16.mxu1 %v8384_v3  ;;  %6967 = vmatpush3.bf16.msra.mxu1 %v7717_v54  ;;  %v7797_v3 = vld [vmem:[#allocation2 + $0x48] sm:$0xff]   ;;  %v3686_v54 = vld [vmem:[#allocation2 + $0x10] sm:$0xc] }
 0x209   : > { %6968 = vmatprep.subr.bf16.mxu1 %v7718_v16  ;;  %v2115_v36 = vrot.slane %v7797_v3, 1  ;;  %v8885_v3 = vld [vmem:[#allocation2 + $0x20] sm:$0xff]  }
 0x20a   : > { %6779 = vmatmul.mubr.bf16.gmra.mrb[92].mxu0 %v2110_v59  ;;  %v8875_v59 = vld [vmem:[%s9476_s6 + $0x18] sm:$0xff]   ;;  %v3836_v34 = vrot.slane %v8885_v3, 2 }
 0x20b   : > { %6782 = vmatprep.mubr.bf16.mxu0 %v2112_v37  ;;  %v2116_v41 = vsel %vm2097_vm2, %v2113_v20, %v2115_v36  ;;  %v2118_v23 = vsel %vm2097_vm2, %v2115_v36, %v2117_v25  ;;  %v8879_v37 = vcombine.low %v3686_v54, %v8866_v26  ;;  %7124 = vmatprep.subr.bf16.mxu0 %v8875_v59  ;;  %v9504_v36 = vld [vmem:[#allocation13_spill] sm:$0xff] }
 0x20c   : > { %6969 = vmatpush3.bf16.msra.mxu1 %v7718_v16  ;;  %v8869_v16 = vld [vmem:[#allocation2 + $0x18] sm:$0xff]   ;;  %7125 = vmatpush3.bf16.msra.mxu0 %v8875_v59 }
 0x20d   : > { %6970 = vmatprep.subr.bf16.mxu1 %v7719_v49  ;;  %v3834_v20 = vrot.slane %v8869_v16, 2 }
 0x20f   : > { %6935 = vmatmul.mubr.bf16.gmra.mrb[8].mxu1 %v8402_v28  ;;  %v7722_v28 = vld [vmem:[%s9474_s4 + $0x1b8] sm:$0xff]  }
 0x210   : > { %6938 = vmatprep.mubr.bf16.mxu1 %v8414_v38  ;;  %6971 = vmatpush3.bf16.msra.mxu1 %v7719_v49  ;;  %v2119_v38 = vrot.slane %v8459_v13, 1  ;;  %v2121_v13 = vrot.slane %v8475_v8, 1  ;;  %v2125_v8 = vrot.slane %v8512_v42, 1  ;;  %v2129_v42 = vrot.slane %v8544_v12, 1  ;;  %v9501_v12 = vld [vmem:[#allocation11_spill] sm:$0xff] }
 0x211   : > { %6972 = vmatprep.subr.bf16.mxu1 %v7720_v10 }
 0x212   : > { %6783 = vmatmul.mubr.bf16.gmra.mrb[96].mxu0 %v2114_v24  ;;  %v2120_v15 = vsel %vm2097_vm2, %v2117_v25, %v2119_v38  ;;  %v2122_v18 = vsel %vm2097_vm2, %v2119_v38, %v2121_v13  ;;  %v3837_v38 = vsel %vm3369_vm3, %v3834_v20, %v3836_v34 }
 0x213   : > { %6786 = vmatprep.mubr.bf16.mxu0 %v2116_v41  ;;  %v8894_v41 = vld [vmem:[%s9476_s6 + $0x20] sm:$0xff]  }
 0x214   : > { %6973 = vmatpush3.bf16.msra.mxu1 %v7720_v10  ;;  %v3833_v10 = vrot.slane %v8879_v37, 2  ;;  %7126 = vmatprep.subr.bf16.mxu0 %v8894_v41 }
 0x215   : > { %6974 = vmatprep.subr.bf16.mxu1 %v7721_v17  ;;  %7127 = vmatpush3.bf16.msra.mxu0 %v8894_v41 }
 0x216   : > { %v3835_v24 = vsel %vm3369_vm3, %v3833_v10, %v3834_v20 }
 0x217   : > { %6939 = vmatmul.mubr.bf16.gmra.mrb[12].mxu1 %v8435_v4  ;;  %v2123_v4 = vrot.slane %v8496_v7, 1  ;;  %v2127_v7 = vrot.slane %v8528_v62, 1  ;;  %v2131_v62 = vrot.slane %v8560_v48, 1  ;;  %v2133_v48 = vrot.slane %v9501_v12, 1  ;;  %v7768_v12 = vld [vmem:[%s7884_s16 + $0x8] sm:$0xfe]  }
 0x218   : > { %6942 = vmatprep.mubr.bf16.mxu1 %v9494_v19  ;;  %6975 = vmatpush3.bf16.msra.mxu1 %v7721_v17  ;;  %v8889_v17 = vld [vmem:[#allocation2 + $0x28] sm:$0xff]   ;;  %v8904_v19 = vld [vmem:[#allocation2 + $0x30] sm:$0xff]   ;;  %v5158_v20 = vshll.u32 %v7768_v12, 16 }
 0x219   : > { %6976 = vmatprep.subr.bf16.mxu1 %v7722_v28  ;;  %v2124_v31 = vsel %vm2097_vm2, %v2121_v13, %v2123_v4  ;;  %v2126_v30 = vsel %vm2097_vm2, %v2123_v4, %v2125_v8  ;;  %v2128_v40 = vsel %vm2097_vm2, %v2125_v8, %v2127_v7  ;;  %v2130_v32 = vsel %vm2097_vm2, %v2127_v7, %v2129_v42  ;;  %v7733_v13 = vld [vmem:[%s9474_s4 + $0x1d0] sm:$0xff]   ;;  %v8922_v8 = vld [vmem:[#allocation2 + $0x48] sm:$0xff]  }
 0x21a   : > { %6787 = vmatmul.mubr.bf16.gmra.mrb[100].mxu0 %v2118_v23  ;;  %v2132_v21 = vsel %vm2097_vm2, %v2129_v42, %v2131_v62  ;;  %v2134_v49 = vsel %vm2097_vm2, %v2131_v62, %v2133_v48  ;;  %v3838_v25 = vrot.slane %v8889_v17, 2  ;;  %v3840_v4 = vrot.slane %v8904_v19, 2  ;;  %v8927_v7 = vld [vmem:[%s9476_s6 + $0x28] sm:$0xff]   ;;  %v8942_v42 = vld [vmem:[#allocation2 + $0x50] sm:$0xff]  }
 0x21b   : > { %6790 = vmatprep.mubr.bf16.mxu0 %v2120_v15  ;;  %v8907_v15 = vld [vmem:[#allocation2 + $0x38] sm:$0xff]   ;;  %7128 = vmatprep.subr.bf16.mxu0 %v8927_v7  ;;  %v7742_v62 = vld [vmem:[%s9474_s4 + $0x1e8] sm:$0xff]   ;;  %v7769_v48 = vld [vmem:[%s7884_s16 + $0x10] sm:$0xff]   ;;  %v3848_v54 = vrot.slane %v8942_v42, 2 }
 0x21c   : > { %6977 = vmatpush3.bf16.msra.mxu1 %v7722_v28  ;;  %v7729_v28 = vld [vmem:[%s9474_s4 + $0x1c8] sm:$0xff]   ;;  %v3839_v23 = vsel %vm3369_vm3, %v3836_v34, %v3838_v25  ;;  %7129 = vmatpush3.bf16.msra.mxu0 %v8927_v7  ;;  %v5163_v10 = vshrl.u32 %v7769_v48, 16 }
 0x21d   : > { %7014 = vmatprep.subr.bf16.mxu1 %v8822_v0 }
 0x21f   : > { %6943 = vmatmul.mubr.bf16.gmra.mrb[16].mxu1 %v9495_v27  ;;  %v3842_v27 = vrot.slane %v8907_v15, 2 }
 0x220   : > { %6946 = vmatprep.mubr.bf16.mxu1 %v9496_v5  ;;  %v7736_v5 = vld [vmem:[%s9474_s4 + $0x1d8] sm:$0xff]  }
 0x222   : > { %6791 = vmatmul.mubr.bf16.gmra.mrb[104].mxu0 %v2122_v18  ;;  %v3841_v18 = vsel %vm3369_vm3, %v3838_v25, %v3840_v4 }
 0x223   : > { %6794 = vmatprep.mubr.bf16.mxu0 %v2124_v31  ;;  %v8919_v31 = vld [vmem:[#allocation2 + $0x40] sm:$0xff]  }
 0x227   : > { %6947 = vmatmul.mubr.bf16.gmra.mrb[20].mxu1 %v9497_v44  ;;  %v8932_v44 = vld [vmem:[%s9476_s6 + $0x30] sm:$0xff]  }
 0x228   : > { %6950 = vmatprep.mubr.bf16.mxu1 %v9498_v45  ;;  %v7739_v45 = vld [vmem:[%s9474_s4 + $0x1e0] sm:$0xff]   ;;  %7130 = vmatprep.subr.bf16.mxu0 %v8932_v44 }
 0x229   : > { %7131 = vmatpush3.bf16.msra.mxu0 %v8932_v44 }
 0x22a   : > { %6795 = vmatmul.mubr.bf16.gmra.mrb[108].mxu0 %v2126_v30  ;;  %v3844_v30 = vrot.slane %v8919_v31, 2 }
 0x22b   : > { %6798 = vmatprep.mubr.bf16.mxu0 %v2128_v40  ;;  %v3846_v40 = vrot.slane %v8922_v8, 2 }
 0x22f   : > { %6951 = vmatmul.mubr.bf16.gmra.mrb[24].mxu1 %v9499_v56  ;;  %v3845_v56 = vsel %vm3369_vm3, %v3842_v27, %v3844_v30 }
 0x230   : > { %6954 = vmatprep.mubr.bf16.mxu1 %v9500_v58  ;;  %v3847_v58 = vsel %vm3369_vm3, %v3844_v30, %v3846_v40 }
 0x232   : > { %6799 = vmatmul.mubr.bf16.gmra.mrb[112].mxu0 %v2130_v32  ;;  %v8949_v32 = vld [vmem:[#allocation2 + $0x58] sm:$0xff]  }
 0x233   : > { %6802 = vmatprep.mubr.bf16.mxu0 %v2132_v21  ;;  %v8955_v21 = vld [vmem:[%s9476_s6 + $0x38] sm:$0xff]  }
 0x234   : > { %7132 = vmatprep.subr.bf16.mxu0 %v8955_v21 }
 0x235   : > { %7133 = vmatpush3.bf16.msra.mxu0 %v8955_v21 }
 0x237   : > { %6955 = vmatmul.mubr.bf16.gmra.mrb[28].mxu1 %v9502_v60  ;;  %v7745_v60 = vld [vmem:[%s9474_s4 + $0x1f0] sm:$0xff]  }
 0x238   : > { %6958 = vmatprep.mubr.bf16.mxu1 %v9503_v39  ;;  %v7770_v39 = vld [vmem:[%s7884_s16 + $0x18] sm:$0xff]  }
 0x239   : > { %v5172_v34 = vshrl.u32 %v7770_v39, 16  ;;  %v5175_v25 = vshll.u32 %v7770_v39, 16 }
 0x23a   : > { %6803 = vmatmul.mubr.bf16.gmra.mrb[116].mxu0 %v2134_v49  ;;  %v5155_v49 = vshrl.u32 %v7768_v12, 16 }
 0x23f   : > { %6959 = vmatmul.mubr.bf16.gmra.mrb[32].mxu1 %v9504_v36  ;;  %v5166_v36 = vshll.u32 %v7769_v48, 16 }
 0x240   : > { %6978 = vmatprep.mubr.bf16.mxu1 %v3835_v24  ;;  %v3850_v24 = vrot.slane %v8949_v32, 2 }
 0x247   : > { %6979 = vmatmul.mubr.bf16.vlgmr.msra.gmra.mrb[0].mxu1 %v3837_v38  ;;  %v5160_v38 = vrot.slane %v5158_v20, 2  ;;  %v7772_v20 = vld [vmem:[%s7884_s16 + $0x28] sm:$0xff]  }
 0x248   : > { %7015 = vmatpush3.bf16.msra.mxu1 %v8822_v0  ;;  %6982 = vmatprep.mubr.bf16.mxu1 %v3839_v23  ;;  %v3843_v0 = vsel %vm3369_vm3, %v3840_v4, %v3842_v27  ;;  %v5165_v23 = vrot.slane %v5163_v10, 1  ;;  %v7748_v4 = vld [vmem:[%s9474_s4 + $0x1f8] sm:$0xff]   ;;  %v5174_v27 = vrot.slane %v5172_v34, 1 }
 0x249   : > { %7016 = vmatprep.subr.bf16.mxu1 %v7729_v28 }
 0x24c   : > { %7017 = vmatpush3.bf16.msra.mxu1 %v7729_v28  ;;  %v5157_v28 = vrot.slane %v5155_v49, 1 }
 0x24d   : > { %7018 = vmatprep.subr.bf16.mxu1 %v7733_v13 }
 0x24f   : > { %6983 = vmatmul.mubr.bf16.gmra.mrb[4].mxu1 %v3841_v18  ;;  %v3849_v18 = vsel %vm3369_vm3, %v3846_v40, %v3848_v54  ;;  %v8980_v40 = vld [vmem:[%s9474_s4 + $0x200] sm:$0xff]  }
 0x250   : > { %6986 = vmatprep.mubr.bf16.mxu1 %v3843_v0  ;;  %7019 = vmatpush3.bf16.msra.mxu1 %v7733_v13  ;;  %v5168_v13 = vrot.slane %v5166_v36, 2  ;;  %v8971_v0 = vld [vmem:[#allocation2 + $0x60] sm:$0xff]  }
 0x251   : > { %7020 = vmatprep.subr.bf16.mxu1 %v7736_v5  ;;  %v3852_v39 = vrot.slane %v8971_v0, 2 }
 0x252   : > { %v5169_v30 = vor.u32 %v5168_v13, %v5165_v23  ;;  %v3856_v13 = vrot.slane %v8594_v47, 2 }
 0x253   : > { %v3853_v49 = vsel %vm3369_vm3, %v3850_v24, %v3852_v39 }
 0x254   : > { %7021 = vmatpush3.bf16.msra.mxu1 %v7736_v5  ;;  %v5177_v5 = vrot.slane %v5175_v25, 2  ;;  %v5190_v25 = vshrl.u32 %v7772_v20, 16 }
 0x255   : > { %7022 = vmatprep.subr.bf16.mxu1 %v7739_v45 }
 0x257   : > { %6987 = vmatmul.mubr.bf16.gmra.mrb[8].mxu1 %v3845_v56  ;;  %v8974_v56 = vld [vmem:[#allocation2 + $0x68] sm:$0xff]  }
 0x258   : > { %6990 = vmatprep.mubr.bf16.mxu1 %v3847_v58  ;;  %7023 = vmatpush3.bf16.msra.mxu1 %v7739_v45  ;;  %v5161_v45 = vor.u32 %v5160_v38, %v5157_v28  ;;  %v5178_v58 = vor.u32 %v5177_v5, %v5174_v27  ;;  %v5193_v28 = vshll.u32 %v7772_v20, 16  ;;  %v3858_v5 = vrot.slane %v8604_v14, 2 }
 0x259   : > { %7024 = vmatprep.subr.bf16.mxu1 %v7742_v62 }
 0x25a   : > { %v5170_v12 = vsel %vm2898_vm4, %v5161_v45, %v5169_v30  ;;  %v5179_v48 = vsel %vm2898_vm4, %v5169_v30, %v5178_v58  ;;  %v5195_v27 = vrot.slane %v5193_v28, 2  ;;  %v7773_v30 = vld [vmem:[%s7884_s16 + $0x30] sm:$0xff]  }
 0x25b   : > { %7134 = vmatprep.mubr.bf16.mxu0 %v5170_v12 }
 0x25c   : > { %7025 = vmatpush3.bf16.msra.mxu1 %v7742_v62  ;;  %v3851_v62 = vsel %vm3369_vm3, %v3848_v54, %v3850_v24  ;;  %7135 = vmatmul.mubr.bf16.vlgmr.msra.gmra.mrb[120].mxu0 %v5179_v48  ;;  %v3854_v54 = vrot.slane %v8974_v56, 2  ;;  %v7774_v48 = vld [vmem:[%s7884_s16 + $0x38] sm:$0xff]  }
 0x25d   : > { %7026 = vmatprep.subr.bf16.mxu1 %v7745_v60  ;;  %v5208_v14 = vshrl.u32 %v7774_v48, 16  ;;  %v5211_v20 = vshll.u32 %v7774_v48, 16 }
 0x25e   : > { %v3855_v10 = vsel %vm3369_vm3, %v3852_v39, %v3854_v54  ;;  %v3859_v39 = vsel %vm3369_vm3, %v3856_v13, %v3858_v5 }
 0x25f   : > { %6991 = vmatmul.mubr.bf16.gmra.mrb[12].mxu1 %v3849_v18 }
 0x260   : > { %6994 = vmatprep.mubr.bf16.mxu1 %v3851_v62  ;;  %7027 = vmatpush3.bf16.msra.mxu1 %v7745_v60  ;;  %v7771_v60 = vld [vmem:[%s7884_s16 + $0x20] sm:$0xff]   ;;  %v3857_v62 = vsel %vm3369_vm3, %v3854_v54, %v3856_v13  ;;  %v5210_v54 = vrot.slane %v5208_v14, 1  ;;  %v3866_v14 = vrot.slane %v8629_v1, 2 }
 0x261   : > { %7028 = vmatprep.subr.bf16.mxu1 %v7748_v4  ;;  %v5181_v36 = vshrl.u32 %v7771_v60, 16  ;;  %v5184_v34 = vshll.u32 %v7771_v60, 16  ;;  %v5199_v60 = vshrl.u32 %v7773_v30, 16  ;;  %v7775_v13 = vld [vmem:[%s7884_s16 + $0x40] sm:$0xff]  }
 0x263   : > { %v5183_v38 = vrot.slane %v5181_v36, 1  ;;  %v5186_v23 = vrot.slane %v5184_v34, 2  ;;  %v3860_v36 = vrot.slane %v8606_v51, 2  ;;  %v5213_v34 = vrot.slane %v5211_v20, 2 }
 0x264   : > { %7029 = vmatpush3.bf16.msra.mxu1 %v7748_v4  ;;  %v5192_v4 = vrot.slane %v5190_v25, 1  ;;  %v3862_v25 = vrot.slane %v8608_v29, 2  ;;  %v5217_v51 = vshrl.u32 %v7775_v13, 16 }
 0x265   : > { %7066 = vmatprep.subr.bf16.mxu1 %v8980_v40  ;;  %v5187_v24 = vor.u32 %v5186_v23, %v5183_v38  ;;  %v5214_v38 = vor.u32 %v5213_v34, %v5210_v54  ;;  %v7777_v34 = vld [vmem:[%s7884_s16 + $0x50] sm:$0xff]  }
 0x266   : > { %v5196_v18 = vor.u32 %v5195_v27, %v5192_v4  ;;  %v3861_v4 = vsel %vm3369_vm3, %v3858_v5, %v3860_v36  ;;  %v3864_v5 = vrot.slane %v8619_v9, 2 }
 0x267   : > { %6995 = vmatmul.mubr.bf16.gmra.mrb[16].mxu1 %v3853_v49  ;;  %v5188_v45 = vsel %vm2898_vm4, %v5178_v58, %v5187_v24  ;;  %v5202_v49 = vshll.u32 %v7773_v30, 16  ;;  %v5220_v30 = vshll.u32 %v7775_v13, 16 }
 0x268   : > { %6998 = vmatprep.mubr.bf16.mxu1 %v3855_v10  ;;  %7138 = vmatprep.mubr.bf16.mxu0 %v5188_v45  ;;  %v5197_v12 = vsel %vm2898_vm4, %v5187_v24, %v5196_v18  ;;  %v5201_v10 = vrot.slane %v5199_v60, 1  ;;  %v7776_v24 = vld [vmem:[%s7884_s16 + $0x48] sm:$0xff]   ;;  %v3863_v45 = vsel %vm3369_vm3, %v3860_v36, %v3862_v25  ;;  %v3867_v1 = vsel %vm3369_vm3, %v3864_v5, %v3866_v14 }
 0x269   : > { %7139 = vmatmul.mubr.bf16.gmra.mrb[124].mxu0 %v5197_v12  ;;  %v5204_v58 = vrot.slane %v5202_v49, 2  ;;  %v5226_v29 = vshrl.u32 %v7776_v24, 16  ;;  %v4180_v12 = vshrl.u32 %v8869_v16, 16  ;;  %v5222_v48 = vrot.slane %v5220_v30, 2 }
 0x26b   : > { %v5205_v28 = vor.u32 %v5204_v58, %v5201_v10  ;;  %v5228_v60 = vrot.slane %v5226_v29, 1  ;;  %v4172_v10 = vshrl.u32 %v8879_v37, 16  ;;  %v4175_v58 = vshll.u32 %v8879_v37, 16 }
 0x26c   : > { %v4182_v9 = vrot.slane %v4180_v12, 2  ;;  %v4192_v29 = vshll.u32 %v8885_v3, 16 }
 0x26d   : > { %v5206_v23 = vsel %vm2898_vm4, %v5196_v18, %v5205_v28  ;;  %v5215_v27 = vsel %vm2898_vm4, %v5205_v28, %v5214_v38  ;;  %v5219_v18 = vrot.slane %v5217_v51, 1  ;;  %v3865_v28 = vsel %vm3369_vm3, %v3862_v25, %v3864_v5 }
 0x26e   : > { %7142 = vmatprep.mubr.bf16.mxu0 %v5206_v23  ;;  %v7749_v23 = vld [vmem:[#allocation2 + $0xa0] ss:$0 sps:$4 sm:$0x33]   ;;  %v4174_v37 = vrot.slane %v4172_v10, 2  ;;  %v4177_v51 = vrot.slane %v4175_v58, 3  ;;  %v4189_v25 = vshrl.u32 %v8885_v3, 16 }
 0x26f   : > { %6999 = vmatmul.mubr.bf16.gmra.mrb[20].mxu1 %v3857_v62  ;;  %v5229_v62 = vshll.u32 %v7776_v24, 16  ;;  %v5223_v20 = vor.u32 %v5222_v48, %v5219_v18  ;;  %v5235_v24 = vshrl.u32 %v7777_v34, 16  ;;  %v3868_v18 = vrot.slane %v7749_v23, 2 }
 0x270   : > { %7002 = vmatprep.mubr.bf16.mxu1 %v3859_v39  ;;  %v4183_v39 = vshll.u32 %v8869_v16, 16  ;;  %v4198_v5 = vshrl.u32 %v8889_v17, 16  ;;  %v4178_v10 = vor.u32 %v4177_v51, %v4174_v37 }
 0x271   : > { %7143 = vmatmul.mubr.bf16.gmra.mrb[128].mxu0 %v5215_v27  ;;  %v5231_v49 = vrot.slane %v5229_v62, 2  ;;  %v5224_v54 = vsel %vm2898_vm4, %v5214_v38, %v5223_v20  ;;  %v7778_v27 = vld [vmem:[%s7884_s16 + $0x58] sm:$0xff]   ;;  %v5237_v62 = vrot.slane %v5235_v24, 1  ;;  %v3869_v23 = vsel %vm3369_vm3, %v3866_v14, %v3868_v18  ;;  %v7780_v24 = vld [vmem:[%s7884_s16 + $0x68] sm:$0xff]  }
 0x272   : > { %v4185_v13 = vrot.slane %v4183_v39, 3  ;;  %7146 = vmatprep.mubr.bf16.mxu0 %v5224_v54  ;;  %v5244_v38 = vshrl.u32 %v7778_v27, 16  ;;  %v5247_v30 = vshll.u32 %v7778_v27, 16  ;;  %v4191_v54 = vrot.slane %v4189_v25, 2  ;;  %v7779_v27 = vld [vmem:[%s7884_s16 + $0x60] sm:$0xff]  }
 0x273   : > { %v5232_v36 = vor.u32 %v5231_v49, %v5228_v60  ;;  %v4201_v49 = vshll.u32 %v8889_v17, 16  ;;  %v5253_v51 = vshrl.u32 %v7779_v27, 16  ;;  %v5262_v25 = vshrl.u32 %v7780_v24, 16 }
 0x274   : > { %v4186_v48 = vor.u32 %v4185_v13, %v4182_v9  ;;  %v5246_v39 = vrot.slane %v5244_v38, 1  ;;  %v5249_v60 = vrot.slane %v5247_v30, 2  ;;  %v4194_v13 = vrot.slane %v4192_v29, 3 }
 0x275   : > { %v4203_v37 = vrot.slane %v4201_v49, 3  ;;  %v5256_v38 = vshll.u32 %v7779_v27, 16  ;;  %v4216_v30 = vshrl.u32 %v8907_v15, 16  ;;  %v5265_v14 = vshll.u32 %v7780_v24, 16  ;;  %v7782_v24 = vld [vmem:[%s7884_s16 + $0x78] sm:$0xff]  }
 0x276   : > { %v5250_v58 = vor.u32 %v5249_v60, %v5246_v39  ;;  %v4187_v9 = vsel %vm4170_vm5, %v4178_v10, %v4186_v48  ;;  %v5255_v29 = vrot.slane %v5253_v51, 1  ;;  %v4195_v39 = vor.u32 %v4194_v13, %v4191_v54  ;;  %v7781_v13 = vld [vmem:[%s7884_s16 + $0x70] sm:$0xff]  }
 0x277   : > { %7003 = vmatmul.mubr.bf16.gmra.mrb[24].mxu1 %v3861_v4  ;;  %v5233_v4 = vsel %vm2898_vm4, %v5223_v20, %v5232_v36  ;;  %v5258_v18 = vrot.slane %v5256_v38, 2  ;;  %v5264_v60 = vrot.slane %v5262_v25, 1  ;;  %v4218_v10 = vrot.slane %v4216_v30, 2  ;;  %v7752_v30 = vld [vmem:[%s9474_s4 + $0x210] sm:$0xff]  }
 0x278   : > { %7006 = vmatprep.mubr.bf16.mxu1 %v3863_v45  ;;  %v5238_v45 = vshll.u32 %v7777_v34, 16  ;;  %v4207_v34 = vshrl.u32 %v8904_v19, 16  ;;  %v5274_v51 = vshll.u32 %v7781_v13, 16  ;;  %v4228_v38 = vshll.u32 %v8919_v31, 16 }
 0x279   : > { %7147 = vmatmul.mubr.bf16.gmra.mrb[132].mxu0 %v5233_v4  ;;  %v5259_v49 = vor.u32 %v5258_v18, %v5255_v29  ;;  %v5283_v25 = vshll.u32 %v7782_v24, 16 }
 0x27a   : > { %v5240_v12 = vrot.slane %v5238_v45, 2  ;;  %v4200_v45 = vrot.slane %v4198_v5, 2  ;;  %v5276_v18 = vrot.slane %v5274_v51, 2 }
 0x27c   : > { %v5241_v20 = vor.u32 %v5240_v12, %v5237_v62  ;;  %v4209_v62 = vrot.slane %v4207_v34, 2  ;;  %v4204_v5 = vor.u32 %v4203_v37, %v4200_v45  ;;  %v5260_v34 = vsel %vm2898_vm4, %v5250_v58, %v5259_v49 }
 0x27d   : > { %v4225_v37 = vshrl.u32 %v8919_v31, 16 }
 0x27e   : > { %v5242_v4 = vsel %vm2898_vm4, %v5232_v36, %v5241_v20  ;;  %v4219_v36 = vshll.u32 %v8907_v15, 16 }
 0x27f   : > { %7007 = vmatmul.mubr.bf16.gmra.mrb[28].mxu1 %v3865_v28  ;;  %v4210_v28 = vshll.u32 %v8904_v19, 16  ;;  %7150 = vmatprep.mubr.bf16.mxu0 %v5242_v4 }
 0x280   : > { %7010 = vmatprep.mubr.bf16.mxu1 %v3867_v1  ;;  %v5251_v1 = vsel %vm2898_vm4, %v5241_v20, %v5250_v58  ;;  %v5267_v20 = vrot.slane %v5265_v14, 2  ;;  %v4221_v4 = vrot.slane %v4219_v36, 3  ;;  %v5271_v58 = vshrl.u32 %v7781_v13, 16  ;;  %v7783_v14 = vld [vmem:[%s7884_s16 + $0x80] sm:$0xff]  }
 0x281   : > { %7151 = vmatmul.mubr.bf16.gmra.mrb[136].mxu0 %v5251_v1  ;;  %v4212_v12 = vrot.slane %v4210_v28, 3  ;;  %v4196_v28 = vsel %vm4170_vm5, %v4186_v48, %v4195_v39  ;;  %v4205_v1 = vsel %vm4170_vm5, %v4195_v39, %v4204_v5  ;;  %v5280_v36 = vshrl.u32 %v7782_v24, 16 }
 0x282   : > { %v5268_v27 = vor.u32 %v5267_v20, %v5264_v60  ;;  %7154 = vmatprep.mubr.bf16.mxu0 %v5260_v34  ;;  %v4222_v45 = vor.u32 %v4221_v4, %v4218_v10  ;;  %v5273_v29 = vrot.slane %v5271_v58, 1  ;;  %v5285_v60 = vrot.slane %v5283_v25, 2 }
 0x283   : > { %v5282_v39 = vrot.slane %v5280_v36, 1  ;;  %v5289_v20 = vshrl.u32 %v7783_v14, 16  ;;  %v4230_v58 = vrot.slane %v4228_v38, 3 }
 0x284   : > { %v5269_v54 = vsel %vm2898_vm4, %v5259_v49, %v5268_v27  ;;  %v5277_v10 = vor.u32 %v5276_v18, %v5273_v29  ;;  %v4243_v29 = vshrl.u32 %v8942_v42, 16  ;;  %v4252_v18 = vshrl.u32 %v8949_v32, 16 }
 0x285   : > { %v5286_v13 = vor.u32 %v5285_v60, %v5282_v39  ;;  %v7758_v39 = vld [vmem:[%s9474_s4 + $0x228] sm:$0xff]  }
 0x286   : > { %v5278_v51 = vsel %vm2898_vm4, %v5268_v27, %v5277_v10 }
 0x287   : > { %7011 = vmatmul.mubr.bf16.gmra.mrb[32].mxu1 %v3869_v23  ;;  %v4213_v23 = vor.u32 %v4212_v12, %v4209_v62  ;;  %v7784_v62 = vld [vmem:[%s7884_s16 + $0x88] sm:$0xff]   ;;  %v4237_v12 = vshll.u32 %v8922_v8, 16 }
 0x288   : > { %7030 = vmatprep.mubr.bf16.mxu1 %v4187_v9  ;;  %v7751_v9 = vld [vmem:[%s9474_s4 + $0x208] sm:$0xff]   ;;  %v5298_v4 = vshrl.u32 %v7784_v62, 16  ;;  %v5301_v34 = vshll.u32 %v7784_v62, 16  ;;  %v7756_v62 = vld [vmem:[%s9474_s4 + $0x220] sm:$0xff]  }
 0x289   : > { %7155 = vmatmul.mubr.bf16.gmra.mrb[140].mxu0 %v5269_v54  ;;  %v4214_v48 = vsel %vm4170_vm5, %v4204_v5, %v4213_v23  ;;  %v5292_v5 = vshll.u32 %v7783_v14, 16  ;;  %v4223_v49 = vsel %vm4170_vm5, %v4213_v23, %v4222_v45  ;;  %v7754_v54 = vld [vmem:[%s9474_s4 + $0x218] sm:$0xff]   ;;  %v5287_v14 = vsel %vm2898_vm4, %v5277_v10, %v5286_v13 }
 0x28a   : > { %v5300_v36 = vrot.slane %v5298_v4, 1  ;;  %v5303_v25 = vrot.slane %v5301_v34, 2  ;;  %7158 = vmatprep.mubr.bf16.mxu0 %v5278_v51  ;;  %v4254_v4 = vrot.slane %v4252_v18, 2  ;;  %v7762_v51 = vld [vmem:[%s9474_s4 + $0x238] sm:$0xff]  }
 0x28b   : > { %v5294_v24 = vrot.slane %v5292_v5, 2 }
 0x28f   : > { %7031 = vmatmul.mubr.bf16.vlgmr.msra.gmra.mrb[0].mxu1 %v4196_v28  ;;  %v4227_v28 = vrot.slane %v4225_v37, 2 }
 0x290   : > { %7067 = vmatpush3.bf16.msra.mxu1 %v8980_v40  ;;  %7034 = vmatprep.mubr.bf16.mxu1 %v4205_v1  ;;  %v4234_v40 = vshrl.u32 %v8922_v8, 16  ;;  %v5291_v1 = vrot.slane %v5289_v20, 1  ;;  %v4245_v20 = vrot.slane %v4243_v29, 2 }
 0x291   : > { %7068 = vmatprep.subr.bf16.mxu1 %v7751_v9  ;;  %7159 = vmatmul.mubr.bf16.gmra.mrb[144].mxu0 %v5287_v14  ;;  %v4231_v27 = vor.u32 %v4230_v58, %v4227_v28  ;;  %v7760_v28 = vld [vmem:[%s9474_s4 + $0x230] sm:$0xff]   ;;  %v4273_v58 = vshll.u32 %v8974_v56, 16 }
 0x292   : > { %v4236_v23 = vrot.slane %v4234_v40, 2  ;;  %v5295_v37 = vor.u32 %v5294_v24, %v5291_v1  ;;  %v9064_v40 = vor.u32 %v5303_v25, %v5300_v36  ;;  %v4270_v24 = vshrl.u32 %v8974_v56, 16 }
 0x293   : > { %v4232_v60 = vsel %vm4170_vm5, %v4222_v45, %v4231_v27  ;;  %v4261_v45 = vshrl.u32 %v8971_v0, 16 }
 0x294   : > { %7069 = vmatpush3.bf16.msra.mxu1 %v7751_v9  ;;  %v4239_v9 = vrot.slane %v4237_v12, 3  ;;  %v5296_v38 = vsel %vm2898_vm4, %v5286_v13, %v5295_v37  ;;  %v4264_v13 = vshll.u32 %v8971_v0, 16  ;;  %v4272_v14 = vrot.slane %v4270_v24, 2 }
 0x295   : > { %7070 = vmatprep.subr.bf16.mxu1 %v7752_v30  ;;  %7162 = vmatprep.mubr.bf16.mxu0 %v5296_v38  ;;  %v4263_v25 = vrot.slane %v4261_v45, 2 }
 0x296   : > { %v4240_v12 = vor.u32 %v4239_v9, %v4236_v23  ;;  %v4266_v23 = vrot.slane %v4264_v13, 3 }
 0x297   : > { %7035 = vmatmul.mubr.bf16.gmra.mrb[4].mxu1 %v4214_v48  ;;  %v4246_v48 = vshll.u32 %v8942_v42, 16 }
 0x298   : > { %7038 = vmatprep.mubr.bf16.mxu1 %v4223_v49  ;;  %7071 = vmatpush3.bf16.msra.mxu1 %v7752_v30  ;;  %v4255_v30 = vshll.u32 %v8949_v32, 16  ;;  %v5305_v49 = vsel %vm2898_vm4, %v5295_v37, %v9064_v40  ;;  %v4241_v10 = vsel %vm4170_vm5, %v4231_v27, %v4240_v12  ;;  %v4275_v37 = vrot.slane %v4273_v58, 3 }
 0x299   : > { %7072 = vmatprep.subr.bf16.mxu1 %v7754_v54  ;;  %v4248_v5 = vrot.slane %v4246_v48, 3  ;;  %7163 = vmatmul.mubr.bf16.gmra.mrb[148].mxu0 %v5305_v49  ;;  %v4643_v49 = vrot.slane %v8869_v16, 3 }
 0x29a   : > { %v4257_v34 = vrot.slane %v4255_v30, 3  ;;  %v4276_v38 = vor.u32 %v4275_v37, %v4272_v14 }
 0x29c   : > { %7073 = vmatpush3.bf16.msra.mxu1 %v7754_v54  ;;  %v4249_v54 = vor.u32 %v4248_v5, %v4245_v20  ;;  %v4258_v1 = vor.u32 %v4257_v34, %v4254_v4  ;;  %v4286_v48 = vsel %vm4170_vm5, %v4276_v38, %v8641_v55  ;;  %v4620_v20 = vld [vmem:[#allocation2 + $0x10] sm:$0x8] }
 0x29d   : > { %7074 = vmatprep.subr.bf16.mxu1 %v7756_v62  ;;  %v6061_v5 = vcombine.low %v4620_v20, %v8866_v26  ;;  %v4647_v26 = vrot.slane %v8889_v17, 3  ;;  %v4651_v17 = vrot.slane %v8907_v15, 3 }
 0x29e   : > { %v4250_v36 = vsel %vm4170_vm5, %v4240_v12, %v4249_v54  ;;  %v4259_v9 = vsel %vm4170_vm5, %v4249_v54, %v4258_v1  ;;  %v7799_v12 = vld [vmem:[#allocation2 + $0xa0] ss:$0 sps:$4 sm:$0x77]  }
 0x29f   : > { %7039 = vmatmul.mubr.bf16.gmra.mrb[8].mxu1 %v4232_v60  ;;  %v4333_v18 = vshrl.u32 %v7799_v12, 16  ;;  %v4336_v30 = vshll.u32 %v7799_v12, 16 }
 0x2a0   : > { %7042 = vmatprep.mubr.bf16.mxu1 %v4241_v10  ;;  %7075 = vmatpush3.bf16.msra.mxu1 %v7756_v62  ;;  %v4267_v62 = vor.u32 %v4266_v23, %v4263_v25 }
 0x2a1   : > { %7076 = vmatprep.subr.bf16.mxu1 %v7758_v39  ;;  %v4338_v60 = vrot.slane %v4336_v30, 3 }
 0x2a2   : > { %v4268_v27 = vsel %vm4170_vm5, %v4258_v1, %v4267_v62  ;;  %v4277_v29 = vsel %vm4170_vm5, %v4267_v62, %v4276_v38 }
 0x2a4   : > { %7077 = vmatpush3.bf16.msra.mxu1 %v7758_v39  ;;  %v4335_v39 = vrot.slane %v4333_v18, 2 }
 0x2a5   : > { %7078 = vmatprep.subr.bf16.mxu1 %v7760_v28 }
 0x2a6   : > { %v4339_v55 = vor.u32 %v4338_v60, %v4335_v39 }
 0x2a7   : > { %7043 = vmatmul.mubr.bf16.gmra.mrb[12].mxu1 %v4250_v36 }
 0x2a8   : > { %7046 = vmatprep.mubr.bf16.mxu1 %v4259_v9  ;;  %7079 = vmatpush3.bf16.msra.mxu1 %v7760_v28 }
 0x2a9   : > { %7080 = vmatprep.subr.bf16.mxu1 %v7762_v51 }
 0x2ac   : > { %7081 = vmatpush3.bf16.msra.mxu1 %v7762_v51 }
 0x2ad   : > { %7170 = vmatprep.subr.bf16.mxu1 %v8833_v43 }
 0x2af   : > { %7047 = vmatmul.mubr.bf16.gmra.mrb[16].mxu1 %v4268_v27 }
 0x2b0   : > { %7050 = vmatprep.mubr.bf16.mxu1 %v4277_v29 }
 0x2b7   : > { %7051 = vmatmul.mubr.bf16.gmra.mrb[20].mxu1 %v4286_v48 }
 0x2b8   : > { %7054 = vmatprep.mubr.bf16.mxu1 %v8655_v2 }
 0x2bf   : > { %7055 = vmatmul.mubr.bf16.gmra.mrb[24].mxu1 %v8661_v50  ;;  %v4642_v50 = vrot.slane %v6061_v5, 3 }
 0x2c0   : > { %7058 = vmatprep.mubr.bf16.mxu1 %v8664_v63  ;;  %v9505_v63 = vld [vmem:[#allocation14_spill] sm:$0xff] }
 0x2c1   : > { %v4340_v4 = vsel %vm4170_vm5, %v9505_v63, %v4339_v55 }
 0x2c7   : > { %7059 = vmatmul.mubr.bf16.gmra.mrb[28].mxu1 %v8676_v35  ;;  %v4644_v35 = vsel %vm4641_vm6, %v4642_v50, %v4643_v49 }
 0x2c8   : > { %7062 = vmatprep.mubr.bf16.mxu1 %v8680_v6  ;;  %v4645_v6 = vrot.slane %v8885_v3, 3  ;;  %v4649_v3 = vrot.slane %v8904_v19, 3  ;;  %v4655_v19 = vrot.slane %v8922_v8, 3 }
 0x2ca   : > { %v4646_v45 = vsel %vm4641_vm6, %v4643_v49, %v4645_v6  ;;  %v4648_v1 = vsel %vm4641_vm6, %v4645_v6, %v4647_v26  ;;  %v4650_v36 = vsel %vm4641_vm6, %v4647_v26, %v4649_v3  ;;  %v7785_v49 = vld [vmem:[%s7884_s16 + $0x90] sm:$0xff]  }
 0x2cd   : > { %v9099_v2 = vpop.f32.mrb[84].mxu0 }
 0x2ce   : > { %v9101_v10 = vpop.f32.mrb[85].mxu0 }
 0x2cf   : > { %v9105_v34 = vpop.f32.mrb[86].mxu0  ;;  %7063 = vmatmul.mubr.bf16.gmra.mrb[32].mxu1 %v4340_v4  ;;  %v5307_v4 = vshrl.u32 %v7785_v49, 16 }
 0x2d0   : > { %v9108_v28 = vpop.f32.mrb[87].mxu0  ;;  %7082 = vmatprep.mubr.bf16.mxu1 %v4644_v35  ;;  %v5310_v35 = vshll.u32 %v7785_v49, 16 }
 0x2d1   : > { %v5309_v26 = vrot.slane %v5307_v4, 1 }
 0x2d5   : > { %v9112_v16 = vpop.f32.mrb[88].mxu0 }
 0x2d6   : > { %v9114_v54 = vpop.f32.mrb[89].mxu0 }
 0x2d7   : > { %v9117_v13 = vpop.f32.mrb[90].mxu0  ;;  %7083 = vmatmul.mubr.bf16.vlgmr.msra.gmra.mrb[0].mxu1 %v4646_v45 }
 0x2d8   : > { %v9120_v24 = vpop.f32.mrb[91].mxu0  ;;  %7178 = vmatpush3.bf16.msra.mxu1 %v8833_v43  ;;  %7086 = vmatprep.mubr.bf16.mxu1 %v4648_v1  ;;  %v4652_v43 = vsel %vm4641_vm6, %v4649_v3, %v4651_v17 }
 0x2d9   : > { %7171 = vmatprep.subr.bf16.mxu1 %v8846_v53 }
 0x2dc   : > { %7179 = vmatpush3.bf16.msra.mxu1 %v8846_v53  ;;  %v4653_v53 = vrot.slane %v8919_v31, 3  ;;  %v4659_v31 = vrot.slane %v8949_v32, 3 }
 0x2dd   : > { %v9127_v58 = vpop.f32.mrb[92].mxu0  ;;  %7172 = vmatprep.subr.bf16.mxu1 %v8859_v46 }
 0x2de   : > { %v9130_v51 = vpop.f32.mrb[93].mxu0  ;;  %v4654_v14 = vsel %vm4641_vm6, %v4651_v17, %v4653_v53 }
 0x2df   : > { %v9133_v25 = vpop.f32.mrb[94].mxu0  ;;  %7087 = vmatmul.mubr.bf16.gmra.mrb[4].mxu1 %v4650_v36 }
 0x2e0   : > { %v9136_v23 = vpop.f32.mrb[95].mxu0  ;;  %7090 = vmatprep.mubr.bf16.mxu1 %v4652_v43  ;;  %7180 = vmatpush3.bf16.msra.mxu1 %v8859_v46  ;;  %v4656_v46 = vsel %vm4641_vm6, %v4653_v53, %v4655_v19 }
 0x2e1   : > { %7173 = vmatprep.subr.bf16.mxu1 %v8875_v59 }
 0x2e4   : > { %7181 = vmatpush3.bf16.msra.mxu1 %v8875_v59  ;;  %v4657_v59 = vrot.slane %v8942_v42, 3  ;;  %v4663_v42 = vrot.slane %v8974_v56, 3 }
 0x2e5   : > { %v9143_v15 = vpop.f32.mrb[96].mxu0  ;;  %7174 = vmatprep.subr.bf16.mxu1 %v8894_v41 }
 0x2e6   : > { %v9146_v9 = vpop.f32.mrb[97].mxu0  ;;  %v4658_v27 = vsel %vm4641_vm6, %v4655_v19, %v4657_v59 }
 0x2e7   : > { %v9149_v37 = vpop.f32.mrb[98].mxu0  ;;  %7091 = vmatmul.mubr.bf16.gmra.mrb[8].mxu1 %v4654_v14 }
 0x2e8   : > { %v9152_v62 = vpop.f32.mrb[99].mxu0  ;;  %7094 = vmatprep.mubr.bf16.mxu1 %v4656_v46  ;;  %7182 = vmatpush3.bf16.msra.mxu1 %v8894_v41  ;;  %v4660_v41 = vsel %vm4641_vm6, %v4657_v59, %v4659_v31 }
 0x2e9   : > { %7175 = vmatprep.subr.bf16.mxu1 %v8927_v7 }
 0x2ec   : > { %7183 = vmatpush3.bf16.msra.mxu1 %v8927_v7  ;;  %v4661_v7 = vrot.slane %v8971_v0, 3 }
 0x2ed   : > { %v9159_v8 = vpop.f32.mrb[100].mxu0  ;;  %7176 = vmatprep.subr.bf16.mxu1 %v8932_v44 }
 0x2ee   : > { %v9162_v38 = vpop.f32.mrb[101].mxu0  ;;  %v4662_v18 = vsel %vm4641_vm6, %v4659_v31, %v4661_v7 }
 0x2ef   : > { %v9165_v29 = vpop.f32.mrb[102].mxu0  ;;  %7095 = vmatmul.mubr.bf16.gmra.mrb[12].mxu1 %v4658_v27 }
 0x2f0   : > { %v9168_v48 = vpop.f32.mrb[103].mxu0  ;;  %7098 = vmatprep.mubr.bf16.mxu1 %v4660_v41  ;;  %7184 = vmatpush3.bf16.msra.mxu1 %v8932_v44  ;;  %v4664_v44 = vsel %vm4641_vm6, %v4661_v7, %v4663_v42 }
 0x2f1   : > { %7177 = vmatprep.subr.bf16.mxu1 %v8955_v21 }
 0x2f4   : > { %7185 = vmatpush3.bf16.msra.mxu1 %v8955_v21  ;;  %v9506_v21 = vrot.slane %v8594_v47, 3 }
 0x2f5   : > { %v9175_v32 = vpop.f32.mrb[104].mxu0 }
 0x2f6   : > { %v9177_v12 = vpop.f32.mrb[105].mxu0  ;;  %v4666_v60 = vsel %vm4641_vm6, %v4663_v42, %v9506_v21 }
 0x2f7   : > { %v9180_v30 = vpop.f32.mrb[106].mxu0  ;;  %7099 = vmatmul.mubr.bf16.gmra.mrb[16].mxu1 %v4662_v18 }
 0x2f8   : > { %v9183_v39 = vpop.f32.mrb[107].mxu0  ;;  %7102 = vmatprep.mubr.bf16.mxu1 %v4664_v44 }
 0x2fd   : > { %v9185_v0 = vpop.f32.mrb[108].mxu0 }
 0x2fe   : > { %v9187_v56 = vpop.f32.mrb[109].mxu0 }
 0x2ff   : > { %v9192_v20 = vpop.f32.mrb[110].mxu0  ;;  %7103 = vmatmul.mubr.bf16.gmra.mrb[20].mxu1 %v4666_v60 }
 0x300   : > { %9507 = vst [vmem:[#allocation3_spill] sm:$0xff] %v9192_v20  ;;  %v9194_v5 = vpop.f32.mrb[111].mxu0  ;;  %7106 = vmatprep.mubr.bf16.mxu1 %v8708_v61  ;;  %v5312_v61 = vrot.slane %v5310_v35, 2 }
 0x301   : > { %9508 = vst [vmem:[#allocation4_spill] sm:$0xff] %v9194_v5 }
 0x302   : > { %v5313_v17 = vor.u32 %v5312_v61, %v5309_v26 }
 0x304   : > { %v5314_v43 = vsel %vm2898_vm4, %v9064_v40, %v5313_v17 }
 0x305   : > { %v9197_v55 = vpop.f32.mrb[112].mxu0 }
 0x306   : > { %9509 = vst [vmem:[#allocation5_spill] sm:$0xff] %v9197_v55  ;;  %v9200_v50 = vpop.f32.mrb[113].mxu0  ;;  %v9283_v55 = vld [vmem:[%s9475_s5] ss:$0 sm:$0xff] }
 0x307   : > { %9510 = vst [vmem:[#allocation6_spill] sm:$0xff] %v9200_v50  ;;  %v9202_v63 = vpop.f32.mrb[114].mxu0  ;;  %7107 = vmatmul.mubr.bf16.gmra.mrb[24].mxu1 %v8712_v52  ;;  %v7786_v52 = vld [vmem:[%s7884_s16 + $0x98] ss:$0 sps:$4 sm:$0x33]  }
 0x308   : > { %9511 = vst [vmem:[#allocation7_spill] sm:$0xff] %v9202_v63  ;;  %v9205_v47 = vpop.f32.mrb[115].mxu0  ;;  %7110 = vmatprep.mubr.bf16.mxu1 %v8715_v57  ;;  %v5316_v36 = vshrl.u32 %v7786_v52, 16  ;;  %v5319_v57 = vshll.u32 %v7786_v52, 16 }
 0x309   : > { %9512 = vst [vmem:[#allocation8_spill] sm:$0xff] %v9205_v47 }
 0x30a   : > { %v5318_v53 = vrot.slane %v5316_v36, 1  ;;  %v5321_v19 = vrot.slane %v5319_v57, 2 }
 0x30c   : > { %v5322_v14 = vor.u32 %v5321_v19, %v5318_v53 }
 0x30d   : > { %v9208_v6 = vpop.f32.mrb[116].mxu0 }
 0x30e   : > { %9513 = vst [vmem:[#allocation9_spill] sm:$0xff] %v9208_v6  ;;  %v9210_v45 = vpop.f32.mrb[117].mxu0  ;;  %v5323_v46 = vsel %vm2898_vm4, %v5313_v17, %v5322_v14 }
 0x30f   : > { %9514 = vst [vmem:[#allocation11_spill] sm:$0xff] %v9210_v45  ;;  %v9212_v1 = vpop.f32.mrb[118].mxu0  ;;  %7111 = vmatmul.mubr.bf16.gmra.mrb[28].mxu1 %v8720_v33 }
 0x310   : > { %9515 = vst [vmem:[#allocation10_spill] sm:$0xff] %v9212_v1  ;;  %v9215_v3 = vpop.f32.mrb[119].mxu0  ;;  %7114 = vmatprep.mubr.bf16.mxu1 %v8727_v11 }
 0x311   : > { %9516 = vst [vmem:[#allocation12_spill] sm:$0xff] %v9215_v3 }
 0x317   : > { %7115 = vmatmul.mubr.bf16.gmra.mrb[32].mxu1 %v8739_v22 }
 0x318   : > { %7166 = vmatprep.mubr.bf16.mxu1 %v5314_v43 }
 0x323   : > { %7167 = vmatmul.mubr.bf16.vlgmr.msra.gmra.mrb[32].mxu1 %v5323_v46 }
 0x32f   : > { %v7136_v33 = vpop.f32.mrb[120].mxu0 }
 0x330   : > { %v5424_v59 = vpop.f32.mrb[121].mxu0 }
 0x331   : > { %v7137_v31 = vpop.f32.mrb[122].mxu0 }
 0x332   : > { %v5427_v11 = vpop.f32.mrb[123].mxu0 }
 0x33c   : > { %v9223_v27 = vpop.f32.mrb[124].mxu0 }
 0x33d   : > { %v9225_v41 = vpop.f32.mrb[125].mxu0 }
 0x33e   : > { %v9227_v7 = vpop.f32.mrb[126].mxu0 }
 0x33f   : > { %v9229_v40 = vpop.f32.mrb[127].mxu0 }
 0x344   : > { %v9231_v22 = vpop.f32.mrb[128].mxu0 }
 0x345   : > { %v9233_v42 = vpop.f32.mrb[129].mxu0 }
 0x346   : > { %v9235_v18 = vpop.f32.mrb[130].mxu0 }
 0x347   : > { %v9237_v44 = vpop.f32.mrb[131].mxu0 }
 0x34c   : > { %v9239_v21 = vpop.f32.mrb[132].mxu0 }
 0x34d   : > { %v9241_v60 = vpop.f32.mrb[133].mxu0 }
 0x34e   : > { %v9243_v49 = vpop.f32.mrb[134].mxu0 }
 0x34f   : > { %v9245_v4 = vpop.f32.mrb[135].mxu0 }
 0x354   : > { %v9247_v35 = vpop.f32.mrb[136].mxu0 }
 0x355   : > { %v9249_v26 = vpop.f32.mrb[137].mxu0 }
 0x356   : > { %v9251_v61 = vpop.f32.mrb[138].mxu0 }
 0x357   : > { %v9253_v52 = vpop.f32.mrb[139].mxu0 }
 0x35c   : > { %v9255_v17 = vpop.f32.mrb[140].mxu0 }
 0x35d   : > { %v9257_v36 = vpop.f32.mrb[141].mxu0 }
 0x35e   : > { %v9259_v57 = vpop.f32.mrb[142].mxu0 }
 0x35f   : > { %v9261_v43 = vpop.f32.mrb[143].mxu0 }
 0x364   : > { %v9263_v53 = vpop.f32.mrb[144].mxu0 }
 0x365   : > { %9517 = vst [vmem:[#allocation13_spill] sm:$0xff] %v9263_v53  ;;  %v9265_v19 = vpop.f32.mrb[145].mxu0 }
 0x366   : > { %9518 = vst [vmem:[#allocation14_spill] sm:$0xff] %v9265_v19  ;;  %v9267_v14 = vpop.f32.mrb[146].mxu0 }
 0x367   : > { %9519 = vst [vmem:[#allocation15_spill] sm:$0xff] %v9267_v14  ;;  %v9269_v46 = vpop.f32.mrb[147].mxu0 }
 0x368   : > { %9520 = vst [vmem:[#allocation16_spill] sm:$0xff] %v9269_v46 }
 0x36c   : > { %v9271_v3 = vpop.f32.mrb[148].mxu0 }
 0x36d   : > { %9521 = vst [vmem:[#allocation17_spill] sm:$0xff] %v9271_v3  ;;  %v9273_v1 = vpop.f32.mrb[149].mxu0 }
 0x36e   : > { %9522 = vst [vmem:[#allocation18_spill] sm:$0xff] %v9273_v1  ;;  %v9275_v45 = vpop.f32.mrb[150].mxu0 }
 0x36f   : > { %9523 = vst [vmem:[#allocation19_spill] sm:$0xff] %v9275_v45  ;;  %v9277_v6 = vpop.f32.mrb[151].mxu0 }
 0x370   : > { %9524 = vst [vmem:[#allocation20_spill] sm:$0xff] %v9277_v6 }
 0x3aa   : > { %v7084_v47 = vpop.f32.mrb[0].mxu1 }
 0x3ab   : > { %v7186_v63 = vadd.f32 %v7084_v47, %v9099_v2  ;;  %v4779_v50 = vpop.f32.mrb[1].mxu1 }
 0x3ac   : > { %v7190_v14 = vadd.f32 %v4779_v50, %v9101_v10  ;;  %v7085_v46 = vpop.f32.mrb[2].mxu1  ;;  %v9296_v10 = vld [vmem:[%s9477_s7] ss:$0 sm:$0xff] }
 0x3ad   : > { %v7194_v3 = vadd.f32 %v7085_v46, %v9105_v34  ;;  %v4782_v19 = vpop.f32.mrb[3].mxu1  ;;  %v7187_v1 = vadd.f32 %v7186_v63, %v9283_v55 }
 0x3ae   : > { %v7198_v45 = vadd.f32 %v4782_v19, %v9108_v28  ;;  %v7191_v6 = vadd.f32 %v7190_v14, %v9283_v55 }
 0x3af   : > { %v7195_v2 = vadd.f32 %v7194_v3, %v9283_v55  ;;  %v7188_v47 = vadd.f32 %v7187_v1, %v7136_v33 }
 0x3b0   : > { %v7199_v53 = vadd.f32 %v7198_v45, %v9283_v55  ;;  %v7192_v50 = vadd.f32 %v7191_v6, %v5424_v59 }
 0x3b1   : > { %v7189_v34 = vadd.f32 %v7188_v47, %v9296_v10  ;;  %v7196_v63 = vadd.f32 %v7195_v2, %v9296_v10 }
 0x3b2   : > { %v7193_v28 = vadd.f32 %v7192_v50, %v9296_v10  ;;  %v7088_v45 = vpop.f32.mrb[4].mxu1  ;;  %v7200_v1 = vadd.f32 %v7199_v53, %v9296_v10 }
 0x3b3   : > { %v5605_v3 = vmax.f32 %v7189_v34, 0.0  ;;  %v7202_v33 = vadd.f32 %v7088_v45, %v9112_v16  ;;  %v7197_v6 = vadd.f32 %v7196_v63, %v7137_v31  ;;  %v4795_v59 = vpop.f32.mrb[5].mxu1 }
 0x3b4   : > { %v5603_v19 = vmax.f32 %v7193_v28, 0.0  ;;  %v7206_v14 = vadd.f32 %v4795_v59, %v9114_v54  ;;  %v7201_v46 = vadd.f32 %v7200_v1, %v5427_v11  ;;  %v7089_v2 = vpop.f32.mrb[6].mxu1 }
 0x3b5   : > { %5641 = vst [vmem:[%s9303_s28 + $0x10] sm:$0xff] %v5605_v3  ;;  %v7203_v47 = vadd.f32 %v7202_v33, %v9283_v55  ;;  %v5606_v50 = vmax.f32 %v7197_v6, 0.0  ;;  %v7210_v5 = vadd.f32 %v7089_v2, %v9117_v13  ;;  %v4798_v20 = vpop.f32.mrb[7].mxu1 }
 0x3b6   : > { %5639 = vst [vmem:[%s9303_s28] sm:$0xff] %v5603_v19  ;;  %v7207_v53 = vadd.f32 %v7206_v14, %v9283_v55  ;;  %v5604_v16 = vmax.f32 %v7201_v46, 0.0  ;;  %v7214_v31 = vadd.f32 %v4798_v20, %v9120_v24 }
 0x3b7   : > { %5642 = vst [vmem:[%s9303_s28 + $0x18] sm:$0xff] %v5606_v50  ;;  %v7211_v34 = vadd.f32 %v7210_v5, %v9283_v55  ;;  %v7204_v54 = vadd.f32 %v7203_v47, %v9296_v10 }
 0x3b8   : > { %5640 = vst [vmem:[%s9303_s28 + $0x8] sm:$0xff] %v5604_v16  ;;  %v7215_v11 = vadd.f32 %v7214_v31, %v9283_v55  ;;  %v7208_v63 = vadd.f32 %v7207_v53, %v9296_v10 }
 0x3b9   : > { %v7205_v13 = vadd.f32 %v7204_v54, %v9223_v27  ;;  %v7212_v28 = vadd.f32 %v7211_v34, %v9296_v10 }
 0x3ba   : > { %v7209_v45 = vadd.f32 %v7208_v63, %v9225_v41  ;;  %v7092_v1 = vpop.f32.mrb[8].mxu1  ;;  %v7216_v24 = vadd.f32 %v7215_v11, %v9296_v10 }
 0x3bb   : > { %v5609_v20 = vmax.f32 %v7205_v13, 0.0  ;;  %v7218_v5 = vadd.f32 %v7092_v1, %v9127_v58  ;;  %v7213_v3 = vadd.f32 %v7212_v28, %v9227_v7  ;;  %v4811_v33 = vpop.f32.mrb[9].mxu1 }
 0x3bc   : > { %v5607_v6 = vmax.f32 %v7209_v45, 0.0  ;;  %v7222_v59 = vadd.f32 %v4811_v33, %v9130_v51  ;;  %v7217_v27 = vadd.f32 %v7216_v24, %v9229_v40  ;;  %v7093_v19 = vpop.f32.mrb[10].mxu1 }
 0x3bd   : > { %5645 = vst [vmem:[%s9303_s28 + $0x30] sm:$0xff] %v5609_v20  ;;  %v7219_v41 = vadd.f32 %v7218_v5, %v9283_v55  ;;  %v5610_v14 = vmax.f32 %v7213_v3, 0.0  ;;  %v7226_v46 = vadd.f32 %v7093_v19, %v9133_v25  ;;  %v4814_v2 = vpop.f32.mrb[11].mxu1 }
 0x3be   : > { %5643 = vst [vmem:[%s9303_s28 + $0x20] sm:$0xff] %v5607_v6  ;;  %v7223_v58 = vadd.f32 %v7222_v59, %v9283_v55  ;;  %v5608_v47 = vmax.f32 %v7217_v27, 0.0  ;;  %v7230_v7 = vadd.f32 %v4814_v2, %v9136_v23 }
 0x3bf   : > { %5646 = vst [vmem:[%s9303_s28 + $0x38] sm:$0xff] %v5610_v14  ;;  %v7227_v50 = vadd.f32 %v7226_v46, %v9283_v55  ;;  %v7220_v51 = vadd.f32 %v7219_v41, %v9296_v10 }
 0x3c0   : > { %5644 = vst [vmem:[%s9303_s28 + $0x28] sm:$0xff] %v5608_v47  ;;  %v7231_v40 = vadd.f32 %v7230_v7, %v9283_v55  ;;  %v7224_v53 = vadd.f32 %v7223_v58, %v9296_v10 }
 0x3c1   : > { %v7221_v25 = vadd.f32 %v7220_v51, %v9231_v22  ;;  %v7228_v16 = vadd.f32 %v7227_v50, %v9296_v10 }
 0x3c2   : > { %v7225_v31 = vadd.f32 %v7224_v53, %v9233_v42  ;;  %v7096_v34 = vpop.f32.mrb[12].mxu1  ;;  %v7232_v23 = vadd.f32 %v7231_v40, %v9296_v10 }
 0x3c3   : > { %v5613_v54 = vmax.f32 %v7221_v25, 0.0  ;;  %v7234_v11 = vadd.f32 %v7096_v34, %v9143_v15  ;;  %v7229_v63 = vadd.f32 %v7228_v16, %v9235_v18  ;;  %v4827_v13 = vpop.f32.mrb[13].mxu1 }
 0x3c4   : > { %v5611_v28 = vmax.f32 %v7225_v31, 0.0  ;;  %v7238_v45 = vadd.f32 %v4827_v13, %v9146_v9  ;;  %v7233_v22 = vadd.f32 %v7232_v23, %v9237_v44  ;;  %v7097_v1 = vpop.f32.mrb[14].mxu1 }
 0x3c5   : > { %5649 = vst [vmem:[%s9303_s28 + $0x50] sm:$0xff] %v5613_v54  ;;  %v7235_v42 = vadd.f32 %v7234_v11, %v9283_v55  ;;  %v5614_v24 = vmax.f32 %v7229_v63, 0.0  ;;  %v7242_v20 = vadd.f32 %v7097_v1, %v9149_v37  ;;  %v4830_v5 = vpop.f32.mrb[15].mxu1 }
 0x3c6   : > { %5647 = vst [vmem:[%s9303_s28 + $0x40] sm:$0xff] %v5611_v28  ;;  %v7239_v15 = vadd.f32 %v7238_v45, %v9283_v55  ;;  %v5612_v3 = vmax.f32 %v7233_v22, 0.0  ;;  %v7246_v18 = vadd.f32 %v4830_v5, %v9152_v62 }
 0x3c7   : > { %5650 = vst [vmem:[%s9303_s28 + $0x58] sm:$0xff] %v5614_v24  ;;  %v7243_v33 = vadd.f32 %v7242_v20, %v9283_v55  ;;  %v7236_v9 = vadd.f32 %v7235_v42, %v9296_v10 }
 0x3c8   : > { %5648 = vst [vmem:[%s9303_s28 + $0x48] sm:$0xff] %v5612_v3  ;;  %v7247_v44 = vadd.f32 %v7246_v18, %v9283_v55  ;;  %v7240_v6 = vadd.f32 %v7239_v15, %v9296_v10 }
 0x3c9   : > { %v7237_v37 = vadd.f32 %v7236_v9, %v9239_v21  ;;  %v7244_v59 = vadd.f32 %v7243_v33, %v9296_v10 }
 0x3ca   : > { %v7241_v27 = vadd.f32 %v7240_v6, %v9241_v60  ;;  %v7100_v19 = vpop.f32.mrb[16].mxu1  ;;  %v7248_v62 = vadd.f32 %v7247_v44, %v9296_v10 }
 0x3cb   : > { %v5617_v41 = vmax.f32 %v7237_v37, 0.0  ;;  %v7250_v14 = vadd.f32 %v7100_v19, %v9159_v8  ;;  %v7245_v46 = vadd.f32 %v7244_v59, %v9243_v49  ;;  %v4843_v2 = vpop.f32.mrb[17].mxu1 }
 0x3cc   : > { %v5615_v58 = vmax.f32 %v7241_v27, 0.0  ;;  %v7254_v47 = vadd.f32 %v4843_v2, %v9162_v38  ;;  %v7249_v21 = vadd.f32 %v7248_v62, %v9245_v4  ;;  %v7101_v7 = vpop.f32.mrb[18].mxu1 }
 0x3cd   : > { %5653 = vst [vmem:[%s9303_s28 + $0x70] sm:$0xff] %v5617_v41  ;;  %v7251_v60 = vadd.f32 %v7250_v14, %v9283_v55  ;;  %v5618_v50 = vmax.f32 %v7245_v46, 0.0  ;;  %v7258_v51 = vadd.f32 %v7101_v7, %v9165_v29  ;;  %v4846_v40 = vpop.f32.mrb[19].mxu1  ;;  %v9525_v41 = vld [vmem:[#allocation3_spill] sm:$0xff]  ;;  %v9527_v7 = vld [vmem:[#allocation13_spill] sm:$0xff] }
 0x3ce   : > { %5651 = vst [vmem:[%s9303_s28 + $0x60] sm:$0xff] %v5615_v58  ;;  %v7255_v8 = vadd.f32 %v7254_v47, %v9283_v55  ;;  %v5616_v53 = vmax.f32 %v7249_v21, 0.0  ;;  %v7262_v49 = vadd.f32 %v4846_v40, %v9168_v48 }
 0x3cf   : > { %5654 = vst [vmem:[%s9303_s28 + $0x78] sm:$0xff] %v5618_v50  ;;  %v7259_v25 = vadd.f32 %v7258_v51, %v9283_v55  ;;  %v7252_v38 = vadd.f32 %v7251_v60, %v9296_v10  ;;  %v9528_v51 = vld [vmem:[#allocation14_spill] sm:$0xff] }
 0x3d0   : > { %5652 = vst [vmem:[%s9303_s28 + $0x68] sm:$0xff] %v5616_v53  ;;  %v7263_v4 = vadd.f32 %v7262_v49, %v9283_v55  ;;  %v7256_v16 = vadd.f32 %v7255_v8, %v9296_v10 }
 0x3d1   : > { %v7253_v29 = vadd.f32 %v7252_v38, %v9247_v35  ;;  %v7260_v31 = vadd.f32 %v7259_v25, %v9296_v10  ;;  %v9529_v25 = vld [vmem:[#allocation5_spill] sm:$0xff] }
 0x3d2   : > { %v7257_v34 = vadd.f32 %v7256_v16, %v9249_v26  ;;  %v7104_v23 = vpop.f32.mrb[20].mxu1  ;;  %v7264_v48 = vadd.f32 %v7263_v4, %v9296_v10  ;;  %v9530_v4 = vld [vmem:[#allocation15_spill] sm:$0xff] }
 0x3d3   : > { %v5621_v54 = vmax.f32 %v7253_v29, 0.0  ;;  %v7266_v11 = vadd.f32 %v7104_v23, %v9175_v32  ;;  %v7261_v63 = vadd.f32 %v7260_v31, %v9251_v61  ;;  %v4859_v13 = vpop.f32.mrb[21].mxu1 }
 0x3d4   : > { %v5619_v28 = vmax.f32 %v7257_v34, 0.0  ;;  %v7270_v45 = vadd.f32 %v4859_v13, %v9177_v12  ;;  %v7265_v35 = vadd.f32 %v7264_v48, %v9253_v52  ;;  %v7105_v22 = vpop.f32.mrb[22].mxu1  ;;  %v9531_v34 = vld [vmem:[#allocation6_spill] sm:$0xff]  ;;  %v9532_v48 = vld [vmem:[#allocation16_spill] sm:$0xff] }
 0x3d5   : > { %5657 = vst [vmem:[%s9303_s28 + $0x90] sm:$0xff] %v5621_v54  ;;  %v7267_v26 = vadd.f32 %v7266_v11, %v9283_v55  ;;  %v5622_v1 = vmax.f32 %v7261_v63, 0.0  ;;  %v7274_v42 = vadd.f32 %v7105_v22, %v9180_v30  ;;  %v4862_v24 = vpop.f32.mrb[23].mxu1 }
 0x3d6   : > { %5655 = vst [vmem:[%s9303_s28 + $0x80] sm:$0xff] %v5619_v28  ;;  %v7271_v32 = vadd.f32 %v7270_v45, %v9283_v55  ;;  %v5620_v20 = vmax.f32 %v7265_v35, 0.0  ;;  %v7278_v61 = vadd.f32 %v4862_v24, %v9183_v39  ;;  %v9533_v28 = vld [vmem:[#allocation7_spill] sm:$0xff] }
 0x3d7   : > { %5658 = vst [vmem:[%s9303_s28 + $0x98] sm:$0xff] %v5622_v1  ;;  %v7275_v5 = vadd.f32 %v7274_v42, %v9283_v55  ;;  %v7268_v12 = vadd.f32 %v7267_v26, %v9296_v10  ;;  %v9534_v1 = vld [vmem:[#allocation8_spill] sm:$0xff] }
 0x3d8   : > { %5656 = vst [vmem:[%s9303_s28 + $0x88] sm:$0xff] %v5620_v20  ;;  %v7279_v52 = vadd.f32 %v7278_v61, %v9283_v55  ;;  %v7272_v15 = vadd.f32 %v7271_v32, %v9296_v10 }
 0x3d9   : > { %v7269_v30 = vadd.f32 %v7268_v12, %v9255_v17  ;;  %v7276_v3 = vadd.f32 %v7275_v5, %v9296_v10  ;;  %v9535_v5 = vld [vmem:[#allocation17_spill] sm:$0xff] }
 0x3da   : > { %v7273_v18 = vadd.f32 %v7272_v15, %v9257_v36  ;;  %v7108_v33 = vpop.f32.mrb[24].mxu1  ;;  %v7280_v39 = vadd.f32 %v7279_v52, %v9296_v10  ;;  %v9536_v15 = vld [vmem:[#allocation18_spill] sm:$0xff] }
 0x3db   : > { %v5625_v9 = vmax.f32 %v7269_v30, 0.0  ;;  %v7282_v44 = vadd.f32 %v7108_v33, %v9185_v0  ;;  %v7277_v6 = vadd.f32 %v7276_v3, %v9259_v57  ;;  %v4875_v37 = vpop.f32.mrb[25].mxu1  ;;  %v9526_v57 = vld [vmem:[#allocation4_spill] sm:$0xff]  ;;  %v9537_v33 = vld [vmem:[#allocation19_spill] sm:$0xff] }
 0x3dc   : > { %v5623_v59 = vmax.f32 %v7273_v18, 0.0  ;;  %v7286_v27 = vadd.f32 %v4875_v37, %v9187_v56  ;;  %v7281_v17 = vadd.f32 %v7280_v39, %v9261_v43  ;;  %v7109_v19 = vpop.f32.mrb[26].mxu1 }
 0x3dd   : > { %5661 = vst [vmem:[%s9303_s28 + $0xb0] sm:$0xff] %v5625_v9  ;;  %v7283_v36 = vadd.f32 %v7282_v44, %v9283_v55  ;;  %v5626_v62 = vmax.f32 %v7277_v6, 0.0  ;;  %v7290_v14 = vadd.f32 %v7109_v19, %v9525_v41  ;;  %v4878_v46 = vpop.f32.mrb[27].mxu1  ;;  %v9538_v44 = vld [vmem:[#allocation20_spill] sm:$0xff]  ;;  %v9540_v19 = vld [vmem:[#allocation11_spill] sm:$0xff] }
 0x3de   : > { %5659 = vst [vmem:[%s9303_s28 + $0xa0] sm:$0xff] %v5623_v59  ;;  %v7287_v0 = vadd.f32 %v7286_v27, %v9283_v55  ;;  %v5624_v2 = vmax.f32 %v7281_v17, 0.0  ;;  %v7294_v58 = vadd.f32 %v4878_v46, %v9526_v57  ;;  %v9539_v27 = vld [vmem:[#allocation9_spill] sm:$0xff] }
 0x3df   : > { %5662 = vst [vmem:[%s9303_s28 + $0xb8] sm:$0xff] %v5626_v62  ;;  %v7291_v47 = vadd.f32 %v7290_v14, %v9283_v55  ;;  %v7284_v56 = vadd.f32 %v7283_v36, %v9296_v10  ;;  %v7314_v17 = vadd.f32 %v9539_v27, %v9283_v55  ;;  %v7317_v36 = vadd.f32 %v9283_v55, %v9540_v19  ;;  %v9541_v62 = vld [vmem:[#allocation10_spill] sm:$0xff]  ;;  %v9542_v14 = vld [vmem:[#allocation12_spill] sm:$0xff] }
 0x3e0   : > { %5660 = vst [vmem:[%s9303_s28 + $0xa8] sm:$0xff] %v5624_v2  ;;  %v7295_v43 = vadd.f32 %v7294_v58, %v9283_v55  ;;  %v7288_v21 = vadd.f32 %v7287_v0, %v9296_v10  ;;  %v7320_v41 = vadd.f32 %v9541_v62, %v9283_v55  ;;  %v7323_v46 = vadd.f32 %v9283_v55, %v9542_v14 }
 0x3e1   : > { %v7285_v60 = vadd.f32 %v7284_v56, %v9527_v7  ;;  %v7292_v50 = vadd.f32 %v7291_v47, %v9296_v10  ;;  %v7315_v0 = vadd.f32 %v7314_v17, %v9296_v10  ;;  %v7318_v57 = vadd.f32 %v7317_v36, %v9296_v10 }
 0x3e2   : > { %v7289_v40 = vadd.f32 %v7288_v21, %v9528_v51  ;;  %v7112_v8 = vpop.f32.mrb[28].mxu1  ;;  %v7296_v53 = vadd.f32 %v7295_v43, %v9296_v10  ;;  %v7321_v56 = vadd.f32 %v7320_v41, %v9296_v10  ;;  %v7324_v7 = vadd.f32 %v7323_v46, %v9296_v10 }
 0x3e3   : > { %v5629_v49 = vmax.f32 %v7285_v60, 0.0  ;;  %v7298_v38 = vadd.f32 %v7112_v8, %v9529_v25  ;;  %v7293_v16 = vadd.f32 %v7292_v50, %v9530_v4  ;;  %v4891_v29 = vpop.f32.mrb[29].mxu1 }
 0x3e4   : > { %v5627_v31 = vmax.f32 %v7289_v40, 0.0  ;;  %v7302_v23 = vadd.f32 %v4891_v29, %v9531_v34  ;;  %v7297_v54 = vadd.f32 %v7296_v53, %v9532_v48  ;;  %v7113_v11 = vpop.f32.mrb[30].mxu1 }
 0x3e5   : > { %5665 = vst [vmem:[%s9303_s28 + $0xd0] sm:$0xff] %v5629_v49  ;;  %v7299_v63 = vadd.f32 %v7298_v38, %v9283_v55  ;;  %v5630_v13 = vmax.f32 %v7293_v16, 0.0  ;;  %v7306_v45 = vadd.f32 %v7113_v11, %v9533_v28  ;;  %v4894_v35 = vpop.f32.mrb[31].mxu1 }
 0x3e6   : > { %5663 = vst [vmem:[%s9303_s28 + $0xc0] sm:$0xff] %v5627_v31  ;;  %v7303_v22 = vadd.f32 %v7302_v23, %v9283_v55  ;;  %v5628_v26 = vmax.f32 %v7297_v54, 0.0  ;;  %v7310_v42 = vadd.f32 %v4894_v35, %v9534_v1 }
 0x3e7   : > { %5666 = vst [vmem:[%s9303_s28 + $0xd8] sm:$0xff] %v5630_v13  ;;  %v7307_v24 = vadd.f32 %v7306_v45, %v9283_v55  ;;  %v7300_v32 = vadd.f32 %v7299_v63, %v9296_v10 }
 0x3e8   : > { %5664 = vst [vmem:[%s9303_s28 + $0xc8] sm:$0xff] %v5628_v26  ;;  %v7311_v20 = vadd.f32 %v7310_v42, %v9283_v55  ;;  %v7304_v61 = vadd.f32 %v7303_v22, %v9296_v10 }
 0x3e9   : > { %v7301_v12 = vadd.f32 %v7300_v32, %v9535_v5  ;;  %v7308_v52 = vadd.f32 %v7307_v24, %v9296_v10 }
 0x3ea   : > { %v7305_v30 = vadd.f32 %v7304_v61, %v9536_v15  ;;  %v7312_v3 = vadd.f32 %v7311_v20, %v9296_v10 }
 0x3eb   : > { %v5633_v18 = vmax.f32 %v7301_v12, 0.0  ;;  %v7309_v39 = vadd.f32 %v7308_v52, %v9537_v33 }
 0x3ec   : > { %v5631_v9 = vmax.f32 %v7305_v30, 0.0  ;;  %v7313_v6 = vadd.f32 %v7312_v3, %v9538_v44 }
 0x3ed   : > { %5669 = vst [vmem:[%s9303_s28 + $0xf0] sm:$0xff] %v5633_v18  ;;  %v5634_v37 = vmax.f32 %v7309_v39, 0.0 }
 0x3ee   : > { %5667 = vst [vmem:[%s9303_s28 + $0xe0] sm:$0xff] %v5631_v9  ;;  %v5632_v59 = vmax.f32 %v7313_v6, 0.0 }
 0x3ef   : > { %5670 = vst [vmem:[%s9303_s28 + $0xf8] sm:$0xff] %v5634_v37 }
 0x3f0   : > { %5668 = vst [vmem:[%s9303_s28 + $0xe8] sm:$0xff] %v5632_v59 }
 0x3f6   : > { %v7168_v2 = vpop.f32.mrb[32].mxu1 }
 0x3f7   : > { %v7316_v58 = vadd.f32 %v7315_v0, %v7168_v2  ;;  %v5552_v47 = vpop.f32.mrb[33].mxu1 }
 0x3f8   : > { %v7319_v43 = vadd.f32 %v7318_v57, %v5552_v47  ;;  %v7169_v21 = vpop.f32.mrb[34].mxu1 }
 0x3f9   : > { %v5637_v60 = vmax.f32 %v7316_v58, 0.0  ;;  %v7322_v50 = vadd.f32 %v7321_v56, %v7169_v21  ;;  %v5555_v51 = vpop.f32.mrb[35].mxu1 }
 0x3fa   : > { %v5635_v55 = vmax.f32 %v7319_v43, 0.0  ;;  %v7325_v40 = vadd.f32 %v7324_v7, %v5555_v51 }
 0x3fb   : > { %5673 = vst [vmem:[%s9303_s28 + $0x110] sm:$0xff] %v5637_v60  ;;  %v5638_v8 = vmax.f32 %v7322_v50, 0.0 }
 0x3fc   : > { %5671 = vst [vmem:[%s9303_s28 + $0x100] sm:$0xff] %v5635_v55  ;;  %v5636_v53 = vmax.f32 %v7325_v40, 0.0 }
 0x3fd   : > { %5674 = vst [vmem:[%s9303_s28 + $0x118] sm:$0xff] %v5638_v8 }
 0x3fe   : > { %5672 = vst [vmem:[%s9303_s28 + $0x108] sm:$0xff] %v5636_v53 }
 0x3ff PF: > { %s18_s27 = sadd.s32 1, %s7806_s27  }
 0x400   : > { %p15_p4 = scmp.ge.s32.totalorder %s18_s27, 4  }
 0x402   :  { %17 = sbr.rel (!%p15_p4) target bundleno = 1 (0x1), region = 90 }

</bundles_post_ra>
